<compile_context>
chip_gen: v6e
topology: v6e:2x2x1
jax: 0.10.0
libtpu: 0.0.40
codegen_flags: <defaults>
</compile_context>

<pallas_src>
import functools

import jax
import jax.numpy as jnp
from jax.experimental import pallas as pl
from jax.experimental.pallas import tpu as pltpu

HID = 32          # logical hidden width of both SAGEConv layers
HP = 128          # lane-padded hidden width (dense vector stores)
HP2 = 2 * HP      # concatenated [W_l | W_r] output width (one 256-wide MXU pass)


def _round_up(x, m):
    return (x + m - 1) // m * m


def _vmem_limit_bytes():
    """~75% of physical per-core VMEM (~48 MiB v7x, ~96 MiB v5e/v6e)."""
    try:
        cap = int(pltpu.get_tpu_info().vmem_capacity_bytes)
        return max(32 * 1024 * 1024, (cap * 3) // 4)
    except Exception:
        return 48 * 1024 * 1024   # conservative fallback (safe on every generation)


def _masked_log_softmax(h):
    """log_softmax over the HID real columns of a lane-padded [rows, HP] f32 block."""
    col = jax.lax.broadcasted_iota(jnp.int32, h.shape, 1)
    hm = jnp.where(col < HID, h, jnp.float32(-1e30))
    m = jnp.max(hm, axis=-1, keepdims=True)
    lse = jnp.log(jnp.sum(jnp.exp(hm - m), axis=-1, keepdims=True))
    return (h - m) - lse          # padded columns hold junk; wrapper slices [:, :HID]


# ---------------------------------------------------------------------------
# Fused single-kernel path (small graphs: everything resident in VMEM)
# ---------------------------------------------------------------------------

def _fused_kernel(x_ref, a_ref, inv_ref, w0_ref, b0_ref, w1_ref, b1_ref, o_ref):
    x = x_ref[...]                                                # [n, f_pad] bf16
    a = a_ref[...].astype(jnp.float32).astype(jnp.bfloat16)      # exact 0/1 adjacency
    inv = inv_ref[...]                                            # [n, 1] f32 1/deg

    # layer 0: one 256-wide projection  X @ [W_l0 | W_r0]
    pr0 = jnp.dot(x, w0_ref[...], preferred_element_type=jnp.float32)
    p0 = pr0[:, :HP].astype(jnp.bfloat16)
    r0 = pr0[:, HP:] + b0_ref[...]

    # layer-1 mean aggregation (0/1 matmul * inv-degree) + root term + ReLU
    h1 = jnp.maximum(jnp.dot(a, p0, preferred_element_type=jnp.float32) * inv + r0, 0.0)
    h1 = h1.astype(jnp.bfloat16)

    # layer 1->2 projection (one 256-wide matmul)
    pr1 = jnp.dot(h1, w1_ref[...], preferred_element_type=jnp.float32)
    p1 = pr1[:, :HP].astype(jnp.bfloat16)
    r1 = pr1[:, HP:] + b1_ref[...]

    # layer-2 aggregation + root + ReLU (dropout = identity in eval) + log_softmax
    h2 = jnp.maximum(jnp.dot(a, p1, preferred_element_type=jnp.float32) * inv + r1, 0.0)
    o_ref[...] = _masked_log_softmax(h2)


def _fused_forward(xp, ap, invp, pp, vmem_limit):
    n_pad, f_pad = xp.shape
    whole = lambda i: (0, 0)
    return pl.pallas_call(
        _fused_kernel,
        grid=(1,),
        in_specs=[
            pl.BlockSpec((n_pad, f_pad), whole),
            pl.BlockSpec((n_pad, n_pad), whole),
            pl.BlockSpec((n_pad, 1), whole),
            pl.BlockSpec((f_pad, HP2), whole),
            pl.BlockSpec((1, HP), whole),
            pl.BlockSpec((HP, HP2), whole),
            pl.BlockSpec((1, HP), whole),
        ],
        out_specs=pl.BlockSpec((n_pad, HP), whole),
        out_shape=jax.ShapeDtypeStruct((n_pad, HP), jnp.float32),
        compiler_params=pltpu.CompilerParams(
            dimension_semantics=("arbitrary",),
            vmem_limit_bytes=vmem_limit,
        ),
    )(xp, ap, invp, pp["w0"], pp["b0"], pp["w1"], pp["b1"])


# ---------------------------------------------------------------------------
# Tiled 3-call pipeline (general / large graphs)
# ---------------------------------------------------------------------------

def _proj_kernel(x_ref, w_ref, b_ref, p_ref, r_ref):
    """Layer-0 projections for one row tile: single [tm, f_pad] @ [f_pad, 2*HP] matmul."""
    pr = jnp.dot(x_ref[...], w_ref[...], preferred_element_type=jnp.float32)
    p_ref[...] = pr[:, :HP].astype(p_ref.dtype)
    r_ref[...] = (pr[:, HP:] + b_ref[...]).astype(r_ref.dtype)


def _agg_proj_kernel(a_ref, p0_ref, r0_ref, inv_ref, w_ref, b_ref,
                     p1_ref, r1_ref, acc_ref):
    """Layer-1 K-tiled aggregation; finalize: inv-deg scale + root + ReLU + layer-2 proj."""
    k = pl.program_id(1)

    @pl.when(k == 0)
    def _():
        acc_ref[...] = jnp.zeros_like(acc_ref)

    a = a_ref[...].astype(jnp.float32).astype(jnp.bfloat16)      # int8 0/1 -> bf16
    acc_ref[...] += jnp.dot(a, p0_ref[...], preferred_element_type=jnp.float32)

    @pl.when(k == pl.num_programs(1) - 1)
    def _():
        h = acc_ref[...] * inv_ref[...] + r0_ref[...].astype(jnp.float32)
        h = jnp.maximum(h, 0.0).astype(jnp.bfloat16)             # ReLU
        pr = jnp.dot(h, w_ref[...], preferred_element_type=jnp.float32)
        p1_ref[...] = pr[:, :HP].astype(p1_ref.dtype)
        r1_ref[...] = (pr[:, HP:] + b_ref[...]).astype(r1_ref.dtype)


def _agg_softmax_kernel(a_ref, p1_ref, r1_ref, inv_ref, o_ref, acc_ref):
    """Layer-2 K-tiled aggregation; finalize: ReLU + (eval dropout) + masked log_softmax."""
    k = pl.program_id(1)

    @pl.when(k == 0)
    def _():
        acc_ref[...] = jnp.zeros_like(acc_ref)

    a = a_ref[...].astype(jnp.float32).astype(jnp.bfloat16)
    acc_ref[...] += jnp.dot(a, p1_ref[...], preferred_element_type=jnp.float32)

    @pl.when(k == pl.num_programs(1) - 1)
    def _():
        h = acc_ref[...] * inv_ref[...] + r1_ref[...].astype(jnp.float32)
        h = jnp.maximum(h, 0.0)
        o_ref[...] = _masked_log_softmax(h)


def _tiled_forward(xp, ap, invp, pp, vmem_limit):
    n_pad, f_pad = xp.shape

    # Row tile: 512 on large graphs (amortize per-step overhead, esp. v5e), else 256;
    # keep >= 2 row steps so "parallel" can shard across v7x's two TensorCores.
    tm = 512 if (n_pad >= 4096 and n_pad % 512 == 0) else 256
    if n_pad // tm < 2:
        tm = max(128, n_pad // 2)
    tk = 256                                  # source-node (K) reduction tile
    grid_rows = n_pad // tm
    grid_k = n_pad // tk

    row = lambda i: (i, 0)
    whole1 = lambda i: (0, 0)
    tile_a = lambda i, k: (i, k)
    col_k = lambda i, k: (k, 0)
    row_i = lambda i, k: (i, 0)
    whole2 = lambda i, k: (0, 0)

    cp1 = pltpu.CompilerParams(dimension_semantics=("parallel",),
                               vmem_limit_bytes=vmem_limit)
    cp2 = pltpu.CompilerParams(dimension_semantics=("parallel", "arbitrary"),
                               vmem_limit_bytes=vmem_limit)

    # --- call 1: layer-0 projections (single streamed pass over X) -----------------
    p0, r0 = pl.pallas_call(
        _proj_kernel,
        grid=(grid_rows,),
        in_specs=[
            pl.BlockSpec((tm, f_pad), row),
            pl.BlockSpec((f_pad, HP2), whole1),
            pl.BlockSpec((1, HP), whole1),
        ],
        out_specs=(pl.BlockSpec((tm, HP), row), pl.BlockSpec((tm, HP), row)),
        out_shape=(jax.ShapeDtypeStruct((n_pad, HP), jnp.bfloat16),
                   jax.ShapeDtypeStruct((n_pad, HP), jnp.bfloat16)),
        compiler_params=cp1,
    )(xp, pp["w0"], pp["b0"])

    # --- call 2: layer-1 K-tiled aggregation + fused layer-2 projections -----------
    p1, r1 = pl.pallas_call(
        _agg_proj_kernel,
        grid=(grid_rows, grid_k),
        in_specs=[
            pl.BlockSpec((tm, tk), tile_a),
            pl.BlockSpec((tk, HP), col_k),
            pl.BlockSpec((tm, HP), row_i),
            pl.BlockSpec((tm, 1), row_i),
            pl.BlockSpec((HP, HP2), whole2),
            pl.BlockSpec((1, HP), whole2),
        ],
        out_specs=(pl.BlockSpec((tm, HP), row_i), pl.BlockSpec((tm, HP), row_i)),
        out_shape=(jax.ShapeDtypeStruct((n_pad, HP), jnp.bfloat16),
                   jax.ShapeDtypeStruct((n_pad, HP), jnp.bfloat16)),
        scratch_shapes=[pltpu.VMEM((tm, HP), jnp.float32)],
        compiler_params=cp2,
    )(ap, p0, r0, invp, pp["w1"], pp["b1"])

    # --- call 3: layer-2 K-tiled aggregation + ReLU + log_softmax ------------------
    out = pl.pallas_call(
        _agg_softmax_kernel,
        grid=(grid_rows, grid_k),
        in_specs=[
            pl.BlockSpec((tm, tk), tile_a),
            pl.BlockSpec((tk, HP), col_k),
            pl.BlockSpec((tm, HP), row_i),
            pl.BlockSpec((tm, 1), row_i),
        ],
        out_specs=pl.BlockSpec((tm, HP), row_i),
        out_shape=jax.ShapeDtypeStruct((n_pad, HP), jnp.float32),
        scratch_shapes=[pltpu.VMEM((tm, HP), jnp.float32)],
        compiler_params=cp2,
    )(ap, p1, r1, invp)
    return out


# ---------------------------------------------------------------------------
# Forward dispatch (inputs already padded / cast at data-build time)
# ---------------------------------------------------------------------------

@functools.partial(jax.jit, static_argnames=("force_tiled",))
def graphsage_forward_padded(xp, ap, invp, pp, force_tiled=False):
    n_pad, _ = xp.shape
    vmem_limit = _vmem_limit_bytes()
    # Rough whole-graph VMEM residency estimate for the fused path.
    fused_bytes = (xp.size * 2 + ap.size + pp["w0"].size * 2 + pp["w1"].size * 2
                   + 8 * n_pad * HP * 4)
    if (not force_tiled) and n_pad <= 2048 and fused_bytes <= vmem_limit // 2:
        return _fused_forward(xp, ap, invp, pp, vmem_limit)
    return _tiled_forward(xp, ap, invp, pp, vmem_limit)


# ---------------------------------------------------------------------------
# One-time (outside-jit) padding / casting of graph and parameters
# ---------------------------------------------------------------------------

def prepare_graph(x, adj01, inv_deg):
    """Pad/cast once at data-build time: features bf16, exact 0/1 adjacency int8,
    inverse in-degree f32."""
    n, f_in = x.shape
    n_pad = _round_up(n, 256)
    f_pad = _round_up(f_in, 128)
    xp = jnp.zeros((n_pad, f_pad), jnp.bfloat16).at[:n, :f_in].set(x.astype(jnp.bfloat16))
    ap = jnp.zeros((n_pad, n_pad), jnp.int8).at[:n, :n].set(adj01.astype(jnp.int8))
    invp = jnp.zeros((n_pad, 1), jnp.float32).at[:n, 0].set(inv_deg)
    return xp, ap, invp


def prepare_params(params, f_in):
    """Concatenate [W_l | W_r] along the output dim (one 256-wide matmul per layer)."""
    f_pad = _round_up(f_in, 128)
    w0 = jnp.zeros((f_pad, HP2), jnp.float32)
    w0 = w0.at[:f_in, :HID].set(params["w_l0"])
    w0 = w0.at[:f_in, HP:HP + HID].set(params["w_r0"])
    b0 = jnp.zeros((1, HP), jnp.float32).at[:, :HID].set(params["b0"])
    w1 = jnp.zeros((HP, HP2), jnp.float32)
    w1 = w1.at[:HID, :HID].set(params["w_l1"])
    w1 = w1.at[:HID, HP:HP + HID].set(params["w_r1"])
    b1 = jnp.zeros((1, HP), jnp.float32).at[:, :HID].set(params["b1"])
    return dict(w0=w0.astype(jnp.bfloat16), b0=b0,
                w1=w1.astype(jnp.bfloat16), b1=b1)


# ---------------------------------------------------------------------------
# Reference, synthetic data
# ---------------------------------------------------------------------------

def graphsage_reference(x, adj01, inv_deg, params):
    """Pure-JAX f32 reference for the tolerance check."""
    a_norm = adj01 * inv_deg[:, None]
    h = jnp.maximum(a_norm @ (x @ params["w_l0"]) + x @ params["w_r0"] + params["b0"], 0.0)
    h = jnp.maximum(a_norm @ (h @ params["w_l1"]) + h @ params["w_r1"] + params["b1"], 0.0)
    return jax.nn.log_softmax(h, axis=-1)


def init_linear(key, fan_in, fan_out):
    kw, kb = jax.random.split(key)
    bound = 1.0 / jnp.sqrt(fan_in)
    w = jax.random.uniform(kw, (fan_in, fan_out), jnp.float32, -bound, bound)
    b = jax.random.uniform(kb, (1, fan_out), jnp.float32, -bound, bound)
    return w, b


def build_params(key, f_in=1433, hidden=32):
    k0, k1, k2, k3 = jax.random.split(key, 4)
    w_l0, b0 = init_linear(k0, f_in, hidden)     # lin_l (with bias)
    w_r0, _ = init_linear(k1, f_in, hidden)      # lin_r (no bias)
    w_l1, b1 = init_linear(k2, hidden, hidden)
    w_r1, _ = init_linear(k3, hidden, hidden)
    return dict(w_l0=w_l0, w_r0=w_r0, b0=b0, w_l1=w_l1, w_r1=w_r1, b1=b1)


def build_graph(key, n_nodes, n_edges, f_in):
    """Random features + random edge_index as a dense 0/1 adjacency and 1/deg vector
    (mean aggregation over in-neighbors; duplicate edges collapse to weight 1)."""
    kx, ks, kd = jax.random.split(key, 3)
    x = jax.random.normal(kx, (n_nodes, f_in), jnp.float32)
    src = jax.random.randint(ks, (n_edges,), 0, n_nodes)
    dst = jax.random.randint(kd, (n_edges,), 0, n_nodes)
    adj01 = jnp.zeros((n_nodes, n_nodes), jnp.float32).at[dst, src].set(1.0)
    deg = jnp.sum(adj01, axis=1)
    inv_deg = 1.0 / jnp.maximum(deg, 1.0)
    return x, adj01, inv_deg


# ---------------------------------------------------------------------------

if __name__ == "__main__":
    N_NODES, N_EDGES, F_IN, HIDDEN = 64, 256, 1433, 32

    key = jax.random.PRNGKey(0)
    k_g1, k_g2, k_p = jax.random.split(key, 3)

    params = build_params(k_p, F_IN, HIDDEN)
    pp = prepare_params(params, F_IN)

    # --- small graph: fused single-kernel path -------------------------------------
    x1, adj1, inv1 = build_graph(k_g1, N_NODES, N_EDGES, F_IN)
    xp1, ap1, ip1 = prepare_graph(x1, adj1, inv1)
    out1 = jax.block_until_ready(graphsage_forward_padded(xp1, ap1, ip1, pp))
    out1 = out1[:N_NODES, :HIDDEN]
    assert out1.shape == (N_NODES, HIDDEN)
    assert bool(jnp.allclose(jnp.sum(jnp.exp(out1), axis=1), 1.0, atol=1e-3))
    ref1 = graphsage_reference(x1, adj1, inv1, params)
    err1 = float(jnp.max(jnp.abs(out1 - ref1)))
    assert err1 < 0.1, f"fused path: max |out - ref| = {err1}"

    # --- larger graph: exercises the K-tiled 3-call pipeline -----------------------
    N2, E2 = 512, 4096
    x2, adj2, inv2 = build_graph(k_g2, N2, E2, F_IN)
    xp2, ap2, ip2 = prepare_graph(x2, adj2, inv2)
    out2 = jax.block_until_ready(
        graphsage_forward_padded(xp2, ap2, ip2, pp, force_tiled=True))
    out2 = out2[:N2, :HIDDEN]
    assert out2.shape == (N2, HIDDEN)
    assert bool(jnp.allclose(jnp.sum(jnp.exp(out2), axis=1), 1.0, atol=1e-3))
    ref2 = graphsage_reference(x2, adj2, inv2, params)
    err2 = float(jnp.max(jnp.abs(out2 - ref2)))
    assert err2 < 0.1, f"tiled path: max |out - ref| = {err2}"

    print("KERNEL_OK")
</pallas_src>

<mosaic_0001>
module attributes {stable_mosaic.version = 11 : i64} {
  func.func @_fused_kernel(%arg0: i32, %arg1: memref<256x1536xbf16, #tpu.memory_space<vmem>>, %arg2: memref<256x256xi8, #tpu.memory_space<vmem>>, %arg3: memref<256x1xf32, #tpu.memory_space<vmem>>, %arg4: memref<1536x256xbf16, #tpu.memory_space<vmem>>, %arg5: memref<1x128xf32, #tpu.memory_space<vmem>>, %arg6: memref<128x256xbf16, #tpu.memory_space<vmem>>, %arg7: memref<1x128xf32, #tpu.memory_space<vmem>>, %arg8: memref<256x128xf32, #tpu.memory_space<vmem>>) attributes {dimension_semantics = [#tpu.dimension_semantics<arbitrary>], iteration_bounds = array<i64: 1>, scalar_prefetch = 0 : i64, scratch_operands = 0 : i64, tpu.core_type = #tpu.core_type<tc>, window_params = [{pipeline_mode = #tpu.pipeline_mode<synchronous>, transform_indices = @transform_0, window_bounds = array<i64: 256, 1536>}, {pipeline_mode = #tpu.pipeline_mode<synchronous>, transform_indices = @transform_1, window_bounds = array<i64: 256, 256>}, {pipeline_mode = #tpu.pipeline_mode<synchronous>, transform_indices = @transform_2, window_bounds = array<i64: 256, 1>}, {pipeline_mode = #tpu.pipeline_mode<synchronous>, transform_indices = @transform_3, window_bounds = array<i64: 1536, 256>}, {pipeline_mode = #tpu.pipeline_mode<synchronous>, transform_indices = @transform_4, window_bounds = array<i64: 1, 128>}, {pipeline_mode = #tpu.pipeline_mode<synchronous>, transform_indices = @transform_5, window_bounds = array<i64: 128, 256>}, {pipeline_mode = #tpu.pipeline_mode<synchronous>, transform_indices = @transform_6, window_bounds = array<i64: 1, 128>}, {pipeline_mode = #tpu.pipeline_mode<synchronous>, transform_indices = @transform_7, window_bounds = array<i64: 256, 128>}]} {
    %c0 = arith.constant 0 : index
    %c0_0 = arith.constant 0 : index
    %0 = vector.load %arg1[%c0, %c0_0] : memref<256x1536xbf16, #tpu.memory_space<vmem>>, vector<256x1536xbf16>
    %c0_1 = arith.constant 0 : index
    %c0_2 = arith.constant 0 : index
    %1 = vector.load %arg2[%c0_1, %c0_2] : memref<256x256xi8, #tpu.memory_space<vmem>>, vector<256x256xi8>
    %2 = arith.sitofp %1 : vector<256x256xi8> to vector<256x256xf32>
    %3 = arith.truncf %2 : vector<256x256xf32> to vector<256x256xbf16>
    %c0_3 = arith.constant 0 : index
    %c0_4 = arith.constant 0 : index
    %4 = vector.load %arg3[%c0_3, %c0_4] : memref<256x1xf32, #tpu.memory_space<vmem>>, vector<256x1xf32>
    %c0_5 = arith.constant 0 : index
    %c0_6 = arith.constant 0 : index
    %5 = vector.load %arg4[%c0_5, %c0_6] : memref<1536x256xbf16, #tpu.memory_space<vmem>>, vector<1536x256xbf16>
    %cst = arith.constant dense<0.000000e+00> : vector<256x256xf32>
    %6 = tpu.matmul %0, %5, %cst {dimension_numbers = #tpu.dot_dimension_numbers<[1], [0], [0], [1], [0, 0, 1, 1], [], []>} : vector<256x1536xbf16>, vector<1536x256xbf16>, vector<256x256xf32> -> vector<256x256xf32>
    %7 = vector.extract_strided_slice %6 {offsets = [0, 0], sizes = [256, 128], strides = [1, 1]} : vector<256x256xf32> to vector<256x128xf32>
    %8 = arith.truncf %7 : vector<256x128xf32> to vector<256x128xbf16>
    %9 = vector.extract_strided_slice %6 {offsets = [0, 128], sizes = [256, 128], strides = [1, 1]} : vector<256x256xf32> to vector<256x128xf32>
    %c0_7 = arith.constant 0 : index
    %c0_8 = arith.constant 0 : index
    %10 = vector.load %arg5[%c0_7, %c0_8] : memref<1x128xf32, #tpu.memory_space<vmem>>, vector<1x128xf32>
    %11 = vector.broadcast %10 : vector<1x128xf32> to vector<256x128xf32>
    %12 = arith.addf %9, %11 : vector<256x128xf32>
    %cst_9 = arith.constant dense<0.000000e+00> : vector<256x128xf32>
    %13 = tpu.matmul %3, %8, %cst_9 {dimension_numbers = #tpu.dot_dimension_numbers<[1], [0], [0], [1], [0, 0, 1, 1], [], []>} : vector<256x256xbf16>, vector<256x128xbf16>, vector<256x128xf32> -> vector<256x128xf32>
    %14 = vector.broadcast %4 : vector<256x1xf32> to vector<256x128xf32>
    %15 = arith.mulf %13, %14 : vector<256x128xf32>
    %16 = arith.addf %15, %12 : vector<256x128xf32>
    %cst_10 = arith.constant 0.000000e+00 : f32
    %17 = vector.broadcast %cst_10 : f32 to vector<256x128xf32>
    %18 = arith.maximumf %16, %17 : vector<256x128xf32>
    %19 = arith.truncf %18 : vector<256x128xf32> to vector<256x128xbf16>
    %c0_11 = arith.constant 0 : index
    %c0_12 = arith.constant 0 : index
    %20 = vector.load %arg6[%c0_11, %c0_12] : memref<128x256xbf16, #tpu.memory_space<vmem>>, vector<128x256xbf16>
    %cst_13 = arith.constant dense<0.000000e+00> : vector<256x256xf32>
    %21 = tpu.matmul %19, %20, %cst_13 {dimension_numbers = #tpu.dot_dimension_numbers<[1], [0], [0], [1], [0, 0, 1, 1], [], []>} : vector<256x128xbf16>, vector<128x256xbf16>, vector<256x256xf32> -> vector<256x256xf32>
    %22 = vector.extract_strided_slice %21 {offsets = [0, 0], sizes = [256, 128], strides = [1, 1]} : vector<256x256xf32> to vector<256x128xf32>
    %23 = arith.truncf %22 : vector<256x128xf32> to vector<256x128xbf16>
    %24 = vector.extract_strided_slice %21 {offsets = [0, 128], sizes = [256, 128], strides = [1, 1]} : vector<256x256xf32> to vector<256x128xf32>
    %c0_14 = arith.constant 0 : index
    %c0_15 = arith.constant 0 : index
    %25 = vector.load %arg7[%c0_14, %c0_15] : memref<1x128xf32, #tpu.memory_space<vmem>>, vector<1x128xf32>
    %26 = vector.broadcast %25 : vector<1x128xf32> to vector<256x128xf32>
    %27 = arith.addf %24, %26 : vector<256x128xf32>
    %cst_16 = arith.constant dense<0.000000e+00> : vector<256x128xf32>
    %28 = tpu.matmul %3, %23, %cst_16 {dimension_numbers = #tpu.dot_dimension_numbers<[1], [0], [0], [1], [0, 0, 1, 1], [], []>} : vector<256x256xbf16>, vector<256x128xbf16>, vector<256x128xf32> -> vector<256x128xf32>
    %29 = vector.broadcast %4 : vector<256x1xf32> to vector<256x128xf32>
    %30 = arith.mulf %28, %29 : vector<256x128xf32>
    %31 = arith.addf %30, %27 : vector<256x128xf32>
    %cst_17 = arith.constant 0.000000e+00 : f32
    %32 = vector.broadcast %cst_17 : f32 to vector<256x128xf32>
    %33 = arith.maximumf %31, %32 : vector<256x128xf32>
    %34 = tpu.iota {dimensions = array<i32: 1>} : vector<256x128xi32>
    %c32_i32 = arith.constant 32 : i32
    %35 = vector.broadcast %c32_i32 : i32 to vector<256x128xi32>
    %36 = arith.cmpi slt, %34, %35 : vector<256x128xi32>
    %cst_18 = arith.constant -1.000000e+30 : f32
    %37 = vector.broadcast %cst_18 : f32 to vector<256x128xf32>
    %38 = arith.select %36, %33, %37 : vector<256x128xi1>, vector<256x128xf32>
    %cst_19 = arith.constant dense<0xFF800000> : vector<256xf32>
    %39 = vector.multi_reduction <maximumf>, %38, %cst_19 [1] : vector<256x128xf32> to vector<256xf32>
    %40 = vector.shape_cast %39 : vector<256xf32> to vector<256x1xf32>
    %41 = vector.broadcast %40 : vector<256x1xf32> to vector<256x128xf32>
    %42 = arith.subf %38, %41 : vector<256x128xf32>
    %43 = math.exp %42 : vector<256x128xf32>
    %cst_20 = arith.constant dense<0.000000e+00> : vector<256xf32>
    %44 = vector.multi_reduction <add>, %43, %cst_20 [1] : vector<256x128xf32> to vector<256xf32>
    %45 = vector.shape_cast %44 : vector<256xf32> to vector<256x1xf32>
    %46 = math.log %45 : vector<256x1xf32>
    %47 = vector.broadcast %40 : vector<256x1xf32> to vector<256x128xf32>
    %48 = arith.subf %33, %47 : vector<256x128xf32>
    %49 = vector.broadcast %46 : vector<256x1xf32> to vector<256x128xf32>
    %50 = arith.subf %48, %49 : vector<256x128xf32>
    %c0_21 = arith.constant 0 : index
    %c0_22 = arith.constant 0 : index
    %51 = vector.load %arg8[%c0_21, %c0_22] : memref<256x128xf32, #tpu.memory_space<vmem>>, vector<256x128xf32>
    tpu.vector_store %arg8[%c0_21, %c0_22], %50 {strides = array<i32>} : memref<256x128xf32, #tpu.memory_space<vmem>>, vector<256x128xf32>,
    return
  }
  func.func @transform_0(%arg0: i32) -> (i32, i32) {
    %c0_i32 = arith.constant 0 : i32
    %c0_i32_0 = arith.constant 0 : i32
    %c0_i32_1 = arith.constant 0 : i32
    return %c0_i32, %c0_i32_0 : i32, i32
  }
  func.func @transform_1(%arg0: i32) -> (i32, i32) {
    %c0_i32 = arith.constant 0 : i32
    %c0_i32_0 = arith.constant 0 : i32
    %c0_i32_1 = arith.constant 0 : i32
    return %c0_i32, %c0_i32_0 : i32, i32
  }
  func.func @transform_2(%arg0: i32) -> (i32, i32) {
    %c0_i32 = arith.constant 0 : i32
    %c0_i32_0 = arith.constant 0 : i32
    %c0_i32_1 = arith.constant 0 : i32
    return %c0_i32, %c0_i32_0 : i32, i32
  }
  func.func @transform_3(%arg0: i32) -> (i32, i32) {
    %c0_i32 = arith.constant 0 : i32
    %c0_i32_0 = arith.constant 0 : i32
    %c0_i32_1 = arith.constant 0 : i32
    return %c0_i32, %c0_i32_0 : i32, i32
  }
  func.func @transform_4(%arg0: i32) -> (i32, i32) {
    %c0_i32 = arith.constant 0 : i32
    %c0_i32_0 = arith.constant 0 : i32
    %c0_i32_1 = arith.constant 0 : i32
    return %c0_i32, %c0_i32_0 : i32, i32
  }
  func.func @transform_5(%arg0: i32) -> (i32, i32) {
    %c0_i32 = arith.constant 0 : i32
    %c0_i32_0 = arith.constant 0 : i32
    %c0_i32_1 = arith.constant 0 : i32
    return %c0_i32, %c0_i32_0 : i32, i32
  }
  func.func @transform_6(%arg0: i32) -> (i32, i32) {
    %c0_i32 = arith.constant 0 : i32
    %c0_i32_0 = arith.constant 0 : i32
    %c0_i32_1 = arith.constant 0 : i32
    return %c0_i32, %c0_i32_0 : i32, i32
  }
  func.func @transform_7(%arg0: i32) -> (i32, i32) {
    %c0_i32 = arith.constant 0 : i32
    %c0_i32_0 = arith.constant 0 : i32
    %c0_i32_1 = arith.constant 0 : i32
    return %c0_i32, %c0_i32_0 : i32, i32
  }
}

</mosaic_0001>

<bundles_post_ra>
// kernel: graphsage_forward_padded.1
= control target key start
LH: loop header
LB: loop body
LE: loop exit
PB: predicated region body
PF: predicated region fallthrough
CT: control target
= control target key end

     0   :  { %12 = vsyncpa [#allocation3], 0  ;;  %s8829_s0 = inlined_call_operand.hbm [shape: bf16[256,1536], index: 0, kind: input, shape index: {}]   ;;  %s8830_s1 = inlined_call_operand.vmem [shape: s8[256,256], index: 1, kind: input, shape index: {}]   ;;  %s8831_s2 = inlined_call_operand.vmem [shape: f32[256,1], index: 2, kind: input, shape index: {}]   ;;  %s8832_s3 = inlined_call_operand.hbm [shape: bf16[1536,256], index: 3, kind: input, shape index: {}]   ;;  %s8833_s4 = inlined_call_operand.vmem [shape: f32[1,128], index: 4, kind: input, shape index: {}]   ;;  %s8834_s5 = inlined_call_operand.vmem [shape: bf16[128,256], index: 5, kind: input, shape index: {}]   ;;  %s8835_s6 = inlined_call_operand.vmem [shape: f32[1,128], index: 6, kind: input, shape index: {}]   ;;  %s8836_s7 = inlined_call_operand.hbm [shape: f32[256,128], index: 7, kind: output, shape index: {}]  }
   0x1   :  { %13 = vsyncpa [#allocation6], 0 }
   0x2   :  { %14 = vsyncpa [#allocation4], 0  ;;  %s6586_s24 = smov [#allocation2]  }
   0x3   :  { %s20_s25 = sshll.u32 %s6586_s24, 4  ;;  %s21_s25 = int_to_ptr.vmem [resolvable:$true] %s20_s25 }
   0x4   :  { %s6528_s26 = scalar_lea.vmem %s21_s25, 24576  ;;  %p6533_p1 = scmp.lt.s32.totalorder %s21_s25, %s21_s25 }
   0x5   :  { %p6529_p0 = scmp.ne.s32.totalorder %s21_s25, %s6528_s26  ;;  %p6534_p2 = scmp.lt.s32.totalorder %s6528_s26, %s6528_s26 }
   0x7   :  { %p6535_p3 = por %p6534_p2, %p6533_p1 }
   0x9   :  { %p6536_p4 = pnand %p6535_p3, %p6529_p0 }
   0xb   :  { %6539 = shalt.err (!%p6536_p4)
}
   0xc   :  { %s6587_s27 = smov 768   ;;  %s6588_s28 = smov 48  }
   0xd   :  { %26 = dma.hbm_to_vmem [thread:$0]  %s8829_s0, 24576, %s21_s25, [#allocation3], %s6587_s27, %s6587_s27, %s6588_s28  }
   0xe   :  { %s6589_s8 = smov [#allocation5]  }
   0xf   :  { %s36_s9 = sshll.u32 %s6589_s8, 4  ;;  %s37_s9 = int_to_ptr.vmem [resolvable:$true] %s36_s9 }
  0x10   :  { %s6548_s10 = scalar_lea.vmem %s37_s9, 24576  ;;  %p6553_p6 = scmp.lt.s32.totalorder %s37_s9, %s37_s9 }
  0x11   :  { %p6549_p5 = scmp.ne.s32.totalorder %s37_s9, %s6548_s10  ;;  %p6554_p7 = scmp.lt.s32.totalorder %s6548_s10, %s6548_s10 }
  0x13   :  { %p6555_p8 = por %p6554_p7, %p6553_p6 }
  0x15   :  { %p6556_p9 = pnand %p6555_p8, %p6549_p5 }
  0x17   :  { %6559 = shalt.err (!%p6556_p9)
}
  0x18   :  { %s6590_s11 = smov 128   ;;  %s6591_s12 = smov 8  }
  0x19   :  { %42 = dma.hbm_to_vmem [thread:$0]  %s8832_s3, 24576, %s37_s9, [#allocation6], %s6590_s11, %s6590_s11, %s6591_s12  }
  0x1a   :  { %6580 = dma.done.wait [#allocation3], 24576  }
  0x1b   :  { %6581 = vsyncadd [#allocation3], 4294942720 }
  0x1c   :  { %6582 = dma.done.wait [#allocation6], 24576  }
  0x1d   :  { %6583 = vsyncadd [#allocation6], 4294942720  ;;  %v5792_v0 = vld [vmem:[#allocation5 + $0x74] ss:$8 sps:$4 sm:$0xff]   ;;  %v5794_v1 = vld [vmem:[#allocation5 + $0x70] ss:$8 sps:$4 sm:$0xff]  }
  0x1e   :  { %5750 = vmatprep.subr.bf16.mxu1 %v5792_v0  ;;  %2440 = vmatprep.subr.bf16.mxu0 %v5792_v0  ;;  %v5795_v2 = vld [vmem:[#allocation5 + $0x64] ss:$8 sps:$4 sm:$0xff]   ;;  %v5797_v3 = vld [vmem:[#allocation5 + $0x60] ss:$8 sps:$4 sm:$0xff]   ;;  %v5798_v4 = vld [vmem:[#allocation5 + $0x54] ss:$8 sps:$4 sm:$0xff]  }
  0x1f   :  { %5766 = vmatpush1.bf16.msra.mxu1 %v5794_v1  ;;  %2441 = vmatpush1.bf16.msra.mxu0 %v5794_v1  ;;  %v5800_v5 = vld [vmem:[#allocation5 + $0x50] ss:$8 sps:$4 sm:$0xff]   ;;  %v5801_v6 = vld [vmem:[#allocation5 + $0x44] ss:$8 sps:$4 sm:$0xff]   ;;  %v5803_v7 = vld [vmem:[#allocation5 + $0x40] ss:$8 sps:$4 sm:$0xff]  }
  0x20   :  { %5751 = vmatprep.subr.bf16.mxu1 %v5795_v2  ;;  %2442 = vmatprep.subr.bf16.mxu0 %v5795_v2  ;;  %v5804_v8 = vld [vmem:[#allocation5 + $0x34] ss:$8 sps:$4 sm:$0xff]   ;;  %v5806_v9 = vld [vmem:[#allocation5 + $0x30] ss:$8 sps:$4 sm:$0xff]   ;;  %v5807_v10 = vld [vmem:[#allocation5 + $0x24] ss:$8 sps:$4 sm:$0xff]  }
  0x21   :  { %v5809_v11 = vld [vmem:[#allocation5 + $0x20] ss:$8 sps:$4 sm:$0xff]   ;;  %v5810_v12 = vld [vmem:[#allocation5 + $0x14] ss:$8 sps:$4 sm:$0xff]   ;;  %v5812_v14 = vld [vmem:[#allocation5 + $0x10] ss:$8 sps:$4 sm:$0xff]  }
  0x22   :  { %v5842_v13 = vld [vmem:[#allocation2 + $0x304] ss:$48 sps:$4 sm:$0xff]   ;;  %v5815_v17 = vld [vmem:[#allocation5] ss:$8 sps:$4 sm:$0xff]   ;;  %v5818_v19 = vld [vmem:[#allocation5 + $0xf0] ss:$8 sps:$4 sm:$0xff]  }
  0x23   :  { %5767 = vmatpush1.bf16.msra.mxu1 %v5797_v3  ;;  %2443 = vmatpush1.bf16.msra.mxu0 %v5797_v3  ;;  %v5813_v15 = vld [vmem:[#allocation5 + $0x4] ss:$8 sps:$4 sm:$0xff]   ;;  %v5816_v18 = vld [vmem:[#allocation5 + $0xf4] ss:$8 sps:$4 sm:$0xff]   ;;  %v5821_v21 = vld [vmem:[#allocation5 + $0xe0] ss:$8 sps:$4 sm:$0xff]  }
  0x24   :  { %5752 = vmatprep.subr.bf16.mxu1 %v5798_v4  ;;  %2444 = vmatprep.subr.bf16.mxu0 %v5798_v4  ;;  %v5848_v16 = vld [vmem:[#allocation2 + $0x4] ss:$48 sps:$4 sm:$0xff]   ;;  %v5824_v23 = vld [vmem:[#allocation5 + $0xd0] ss:$8 sps:$4 sm:$0xff]   ;;  %v5827_v25 = vld [vmem:[#allocation5 + $0xc0] ss:$8 sps:$4 sm:$0xff]  }
  0x25   :  { %2552 = vmatprep.mubr.bf16.mxu1 %v5842_v13  ;;  %2472 = vmatprep.mubr.bf16.mxu0 %v5848_v16  ;;  %v5819_v20 = vld [vmem:[#allocation5 + $0xe4] ss:$8 sps:$4 sm:$0xff]   ;;  %v5822_v22 = vld [vmem:[#allocation5 + $0xd4] ss:$8 sps:$4 sm:$0xff]   ;;  %v5830_v27 = vld [vmem:[#allocation5 + $0xb0] ss:$8 sps:$4 sm:$0xff]  }
  0x26   :  { %v5825_v24 = vld [vmem:[#allocation5 + $0xc4] ss:$8 sps:$4 sm:$0xff]   ;;  %v5828_v26 = vld [vmem:[#allocation5 + $0xb4] ss:$8 sps:$4 sm:$0xff]   ;;  %v5833_v29 = vld [vmem:[#allocation5 + $0xa0] ss:$8 sps:$4 sm:$0xff]  }
  0x27   :  { %5768 = vmatpush1.bf16.msra.mxu1 %v5800_v5  ;;  %2445 = vmatpush1.bf16.msra.mxu0 %v5800_v5  ;;  %v5831_v28 = vld [vmem:[#allocation5 + $0xa4] ss:$8 sps:$4 sm:$0xff]   ;;  %v5834_v30 = vld [vmem:[#allocation5 + $0x94] ss:$8 sps:$4 sm:$0xff]   ;;  %v5836_v31 = vld [vmem:[#allocation5 + $0x90] ss:$8 sps:$4 sm:$0xff]  }
  0x28   :  { %5753 = vmatprep.subr.bf16.mxu1 %v5801_v6  ;;  %2446 = vmatprep.subr.bf16.mxu0 %v5801_v6  ;;  %v5837_v32 = vld [vmem:[#allocation5 + $0x84] ss:$8 sps:$4 sm:$0xff]   ;;  %v5839_v33 = vld [vmem:[#allocation5 + $0x80] ss:$8 sps:$4 sm:$0xff]   ;;  %v5845_v34 = vld [vmem:[#allocation5 + $0x174] ss:$8 sps:$4 sm:$0xff]  }
  0x29   :  { %v5840_v35 = vld [vmem:[#allocation2 + $0x300] ss:$48 sps:$4 sm:$0xff]   ;;  %v5851_v36 = vld [vmem:[#allocation5 + $0x274] ss:$8 sps:$4 sm:$0xff]   ;;  %v5854_v40 = vld [vmem:[#allocation5 + $0x164] ss:$8 sps:$4 sm:$0xff]  }
  0x2a   :  { %v5843_v37 = vld [vmem:[#allocation5 + $0x170] ss:$8 sps:$4 sm:$0xff]   ;;  %v5857_v41 = vld [vmem:[#allocation5 + $0x264] ss:$8 sps:$4 sm:$0xff]   ;;  %v5852_v44 = vld [vmem:[#allocation5 + $0x160] ss:$8 sps:$4 sm:$0xff]  }
  0x2b   :  { %5769 = vmatpush1.bf16.msra.mxu1 %v5803_v7  ;;  %2447 = vmatpush1.bf16.msra.mxu0 %v5803_v7  ;;  %v5846_v38 = vld [vmem:[#allocation2] ss:$48 sps:$4 sm:$0xff]   ;;  %v5858_v42 = vld [vmem:[#allocation2 + $0x364] ss:$48 sps:$4 sm:$0xff]  }
  0x2c   :  { %5754 = vmatprep.subr.bf16.mxu1 %v5804_v8  ;;  %2448 = vmatprep.subr.bf16.mxu0 %v5804_v8  ;;  %v5849_v39 = vld [vmem:[#allocation5 + $0x270] ss:$8 sps:$4 sm:$0xff]   ;;  %v5864_v43 = vld [vmem:[#allocation2 + $0x64] ss:$48 sps:$4 sm:$0xff]   ;;  %v5855_v45 = vld [vmem:[#allocation5 + $0x260] ss:$8 sps:$4 sm:$0xff]  }
  0x2d   :  { %v5863_v46 = vld [vmem:[#allocation5 + $0x154] ss:$8 sps:$4 sm:$0xff]   ;;  %v5860_v47 = vld [vmem:[#allocation2 + $0x360] ss:$48 sps:$4 sm:$0xff]   ;;  %v5872_v52 = vld [vmem:[#allocation5 + $0x144] ss:$8 sps:$4 sm:$0xff]  }
  0x2e   :  { %v5869_v48 = vld [vmem:[#allocation5 + $0x254] ss:$8 sps:$4 sm:$0xff]   ;;  %v5861_v49 = vld [vmem:[#allocation5 + $0x150] ss:$8 sps:$4 sm:$0xff]   ;;  %v5875_v53 = vld [vmem:[#allocation5 + $0x244] ss:$8 sps:$4 sm:$0xff]  }
  0x2f   :  { %5770 = vmatpush1.bf16.msra.mxu1 %v5806_v9  ;;  %2449 = vmatpush1.bf16.msra.mxu0 %v5806_v9  ;;  %v5866_v50 = vld [vmem:[#allocation2 + $0x60] ss:$48 sps:$4 sm:$0xff]   ;;  %v5876_v54 = vld [vmem:[#allocation2 + $0x3c4] ss:$48 sps:$4 sm:$0xff]  }
  0x30   :  { %5755 = vmatprep.subr.bf16.mxu1 %v5807_v10  ;;  %2450 = vmatprep.subr.bf16.mxu0 %v5807_v10  ;;  %v5867_v51 = vld [vmem:[#allocation5 + $0x250] ss:$8 sps:$4 sm:$0xff]   ;;  %v5882_v55 = vld [vmem:[#allocation2 + $0xc4] ss:$48 sps:$4 sm:$0xff]   ;;  %v5870_v56 = vld [vmem:[#allocation5 + $0x140] ss:$8 sps:$4 sm:$0xff]  }
  0x31   :  { %v5873_v57 = vld [vmem:[#allocation5 + $0x240] ss:$8 sps:$4 sm:$0xff]   ;;  %v5881_v58 = vld [vmem:[#allocation5 + $0x134] ss:$8 sps:$4 sm:$0xff]   ;;  %v5879_v61 = vld [vmem:[#allocation5 + $0x130] ss:$8 sps:$4 sm:$0xff]  }
  0x32   :  { %v5878_v59 = vld [vmem:[#allocation2 + $0x3c0] ss:$48 sps:$4 sm:$0xff]   ;;  %v5887_v60 = vld [vmem:[#allocation5 + $0x234] ss:$8 sps:$4 sm:$0xff]   ;;  %v5890_v0 = vld [vmem:[#allocation5 + $0x124] ss:$8 sps:$4 sm:$0xff]  }
  0x33   :  { %5771 = vmatpush1.bf16.msra.mxu1 %v5809_v11  ;;  %2451 = vmatpush1.bf16.msra.mxu0 %v5809_v11  ;;  %v5884_v62 = vld [vmem:[#allocation2 + $0xc0] ss:$48 sps:$4 sm:$0xff]   ;;  %v5893_v1 = vld [vmem:[#allocation5 + $0x224] ss:$8 sps:$4 sm:$0xff]   ;;  %v5899_v6 = vld [vmem:[#allocation5 + $0x114] ss:$8 sps:$4 sm:$0xff]  }
  0x34   :  { %5756 = vmatprep.subr.bf16.mxu1 %v5810_v12  ;;  %2452 = vmatprep.subr.bf16.mxu0 %v5810_v12  ;;  %v5885_v63 = vld [vmem:[#allocation5 + $0x230] ss:$8 sps:$4 sm:$0xff]   ;;  %v5894_v2 = vld [vmem:[#allocation2 + $0x424] ss:$48 sps:$4 sm:$0xff]   ;;  %v5888_v4 = vld [vmem:[#allocation5 + $0x120] ss:$8 sps:$4 sm:$0xff]  }
  0x35   :  { %v5900_v3 = vld [vmem:[#allocation2 + $0x124] ss:$48 sps:$4 sm:$0xff]   ;;  %v5891_v5 = vld [vmem:[#allocation5 + $0x220] ss:$8 sps:$4 sm:$0xff]   ;;  %v5897_v9 = vld [vmem:[#allocation5 + $0x110] ss:$8 sps:$4 sm:$0xff]  }
  0x36   :  { %v5896_v7 = vld [vmem:[#allocation2 + $0x420] ss:$48 sps:$4 sm:$0xff]   ;;  %v5905_v8 = vld [vmem:[#allocation5 + $0x214] ss:$8 sps:$4 sm:$0xff]   ;;  %v5908_v12 = vld [vmem:[#allocation5 + $0x104] ss:$8 sps:$4 sm:$0xff]  }
  0x37   :  { %5772 = vmatpush1.bf16.msra.mxu1 %v5812_v14  ;;  %2453 = vmatpush1.bf16.msra.mxu0 %v5812_v14  ;;  %v5902_v10 = vld [vmem:[#allocation2 + $0x120] ss:$48 sps:$4 sm:$0xff]   ;;  %v5911_v13 = vld [vmem:[#allocation5 + $0x204] ss:$8 sps:$4 sm:$0xff]  }
  0x38   :  { %5757 = vmatprep.subr.bf16.mxu1 %v5813_v15  ;;  %2454 = vmatprep.subr.bf16.mxu0 %v5813_v15  ;;  %v5903_v11 = vld [vmem:[#allocation5 + $0x210] ss:$8 sps:$4 sm:$0xff]   ;;  %v5912_v14 = vld [vmem:[#allocation2 + $0x484] ss:$48 sps:$4 sm:$0xff]   ;;  %v5906_v16 = vld [vmem:[#allocation5 + $0x100] ss:$8 sps:$4 sm:$0xff]  }
  0x39   :  { %v5918_v15 = vld [vmem:[#allocation2 + $0x184] ss:$48 sps:$4 sm:$0xff]  }
  0x3b   :  { %5773 = vmatpush1.bf16.msra.mxu1 %v5815_v17  ;;  %2455 = vmatpush1.bf16.msra.mxu0 %v5815_v17  ;;  %v5909_v17 = vld [vmem:[#allocation5 + $0x200] ss:$8 sps:$4 sm:$0xff]  }
  0x3c   :  { %5758 = vmatprep.subr.bf16.mxu1 %v5816_v18  ;;  %2456 = vmatprep.subr.bf16.mxu0 %v5816_v18  ;;  %v5917_v18 = vld [vmem:[#allocation5 + $0x1f4] ss:$8 sps:$4 sm:$0xff]  }
  0x3f   :  { %5774 = vmatpush2.bf16.msra.mxu1 %v5818_v19  ;;  %2457 = vmatpush2.bf16.msra.mxu0 %v5818_v19  ;;  %v5914_v19 = vld [vmem:[#allocation2 + $0x480] ss:$48 sps:$4 sm:$0xff]  }
  0x40   :  { %5759 = vmatprep.subr.bf16.mxu1 %v5819_v20  ;;  %2458 = vmatprep.subr.bf16.mxu0 %v5819_v20  ;;  %v5923_v20 = vld [vmem:[#allocation5 + $0x2f4] ss:$8 sps:$4 sm:$0xff]  }
  0x43   :  { %5775 = vmatpush2.bf16.msra.mxu1 %v5821_v21  ;;  %2459 = vmatpush2.bf16.msra.mxu0 %v5821_v21  ;;  %v5915_v21 = vld [vmem:[#allocation5 + $0x1f0] ss:$8 sps:$4 sm:$0xff]  }
  0x44   :  { %5760 = vmatprep.subr.bf16.mxu1 %v5822_v22  ;;  %2460 = vmatprep.subr.bf16.mxu0 %v5822_v22  ;;  %v5920_v22 = vld [vmem:[#allocation2 + $0x180] ss:$48 sps:$4 sm:$0xff]  }
  0x47   :  { %5776 = vmatpush2.bf16.msra.mxu1 %v5824_v23  ;;  %2461 = vmatpush2.bf16.msra.mxu0 %v5824_v23  ;;  %v5921_v23 = vld [vmem:[#allocation5 + $0x2f0] ss:$8 sps:$4 sm:$0xff]  }
  0x48   :  { %5761 = vmatprep.subr.bf16.mxu1 %v5825_v24  ;;  %2462 = vmatprep.subr.bf16.mxu0 %v5825_v24  ;;  %v5926_v24 = vld [vmem:[#allocation5 + $0x1e4] ss:$8 sps:$4 sm:$0xff]  }
  0x4b   :  { %5777 = vmatpush2.bf16.msra.mxu1 %v5827_v25  ;;  %2463 = vmatpush2.bf16.msra.mxu0 %v5827_v25  ;;  %v5929_v25 = vld [vmem:[#allocation5 + $0x2e4] ss:$8 sps:$4 sm:$0xff]  }
  0x4c   :  { %5762 = vmatprep.subr.bf16.mxu1 %v5828_v26  ;;  %2464 = vmatprep.subr.bf16.mxu0 %v5828_v26  ;;  %v5930_v26 = vld [vmem:[#allocation2 + $0x4e4] ss:$48 sps:$4 sm:$0xff]  }
  0x4f   :  { %5778 = vmatpush2.bf16.msra.mxu1 %v5830_v27  ;;  %2465 = vmatpush2.bf16.msra.mxu0 %v5830_v27  ;;  %v5936_v27 = vld [vmem:[#allocation2 + $0x1e4] ss:$48 sps:$4 sm:$0xff]  }
  0x50   :  { %5763 = vmatprep.subr.bf16.mxu1 %v5831_v28  ;;  %2466 = vmatprep.subr.bf16.mxu0 %v5831_v28  ;;  %v5924_v28 = vld [vmem:[#allocation5 + $0x1e0] ss:$8 sps:$4 sm:$0xff]  }
  0x53   :  { %5779 = vmatpush2.bf16.msra.mxu1 %v5833_v29  ;;  %2467 = vmatpush2.bf16.msra.mxu0 %v5833_v29  ;;  %v5927_v29 = vld [vmem:[#allocation5 + $0x2e0] ss:$8 sps:$4 sm:$0xff]  }
  0x54   :  { %5764 = vmatprep.subr.bf16.mxu1 %v5834_v30  ;;  %2468 = vmatprep.subr.bf16.mxu0 %v5834_v30  ;;  %v5935_v30 = vld [vmem:[#allocation5 + $0x1d4] ss:$8 sps:$4 sm:$0xff]  }
  0x57   :  { %5780 = vmatpush2.bf16.msra.mxu1 %v5836_v31  ;;  %2469 = vmatpush2.bf16.msra.mxu0 %v5836_v31  ;;  %v5932_v31 = vld [vmem:[#allocation2 + $0x4e0] ss:$48 sps:$4 sm:$0xff]  }
  0x58   :  { %5765 = vmatprep.subr.bf16.mxu1 %v5837_v32  ;;  %2470 = vmatprep.subr.bf16.mxu0 %v5837_v32  ;;  %v5941_v32 = vld [vmem:[#allocation5 + $0x2d4] ss:$8 sps:$4 sm:$0xff]  }
  0x5b   :  { %5781 = vmatpush2.bf16.msra.mxu1 %v5839_v33  ;;  %2471 = vmatpush2.bf16.msra.mxu0 %v5839_v33  ;;  %v5933_v33 = vld [vmem:[#allocation5 + $0x1d0] ss:$8 sps:$4 sm:$0xff]  }
  0x5c   :  { %2633 = vmatprep.subr.bf16.mxu1 %v5845_v34  ;;  %2826 = vmatprep.subr.bf16.mxu0 %v5851_v36  ;;  %v5938_v34 = vld [vmem:[#allocation2 + $0x1e0] ss:$48 sps:$4 sm:$0xff]   ;;  %v5944_v36 = vld [vmem:[#allocation5 + $0x1c4] ss:$8 sps:$4 sm:$0xff]  }
  0x5e   :  { %2553 = vmatmul.mubr.bf16.vlgmr.msra.gmra.mxu1 %v5840_v35  ;;  %2473 = vmatmul.mubr.bf16.vlgmr.msra.gmra.mxu0 %v5846_v38  ;;  %v5939_v35 = vld [vmem:[#allocation5 + $0x2d0] ss:$8 sps:$4 sm:$0xff]   ;;  %v5948_v38 = vld [vmem:[#allocation2 + $0x544] ss:$48 sps:$4 sm:$0xff]  }
  0x5f   :  { %2634 = vmatpush1.bf16.msra.mxu1 %v5843_v37  ;;  %2827 = vmatpush1.bf16.msra.mxu0 %v5849_v39  ;;  %v5947_v37 = vld [vmem:[#allocation5 + $0x2c4] ss:$8 sps:$4 sm:$0xff]  }
  0x60   :  { %2635 = vmatprep.subr.bf16.mxu1 %v5854_v40  ;;  %2828 = vmatprep.subr.bf16.mxu0 %v5857_v41  ;;  %v5954_v39 = vld [vmem:[#allocation2 + $0x244] ss:$48 sps:$4 sm:$0xff]   ;;  %v5942_v40 = vld [vmem:[#allocation5 + $0x1c0] ss:$8 sps:$4 sm:$0xff]  }
  0x61   :  { %2562 = vmatprep.mubr.bf16.mxu1 %v5858_v42  ;;  %2482 = vmatprep.mubr.bf16.mxu0 %v5864_v43  ;;  %v5945_v41 = vld [vmem:[#allocation5 + $0x2c0] ss:$8 sps:$4 sm:$0xff]   ;;  %v5953_v42 = vld [vmem:[#allocation5 + $0x1b4] ss:$8 sps:$4 sm:$0xff]  }
  0x62   :  { %v5950_v43 = vld [vmem:[#allocation2 + $0x540] ss:$48 sps:$4 sm:$0xff]  }
  0x63   :  { %2636 = vmatpush1.bf16.msra.mxu1 %v5852_v44  ;;  %2829 = vmatpush1.bf16.msra.mxu0 %v5855_v45  ;;  %v5959_v44 = vld [vmem:[#allocation5 + $0x2b4] ss:$8 sps:$4 sm:$0xff]   ;;  %v5951_v45 = vld [vmem:[#allocation5 + $0x1b0] ss:$8 sps:$4 sm:$0xff]  }
  0x64   :  { %2637 = vmatprep.subr.bf16.mxu1 %v5863_v46  ;;  %2830 = vmatprep.subr.bf16.mxu0 %v5869_v48  ;;  %v5956_v46 = vld [vmem:[#allocation2 + $0x240] ss:$48 sps:$4 sm:$0xff]   ;;  %v5962_v48 = vld [vmem:[#allocation5 + $0x1a4] ss:$8 sps:$4 sm:$0xff]  }
  0x66   :  { %2563 = vmatmul.mubr.bf16.gmra.mxu1 %v5860_v47  ;;  %2483 = vmatmul.mubr.bf16.gmra.mxu0 %v5866_v50  ;;  %v5957_v47 = vld [vmem:[#allocation5 + $0x2b0] ss:$8 sps:$4 sm:$0xff]   ;;  %v5966_v50 = vld [vmem:[#allocation2 + $0x5a4] ss:$48 sps:$4 sm:$0xff]  }
  0x67   :  { %2638 = vmatpush1.bf16.msra.mxu1 %v5861_v49  ;;  %2831 = vmatpush1.bf16.msra.mxu0 %v5867_v51  ;;  %v5965_v49 = vld [vmem:[#allocation5 + $0x2a4] ss:$8 sps:$4 sm:$0xff]  }
  0x68   :  { %2639 = vmatprep.subr.bf16.mxu1 %v5872_v52  ;;  %2832 = vmatprep.subr.bf16.mxu0 %v5875_v53  ;;  %v5972_v51 = vld [vmem:[#allocation2 + $0x2a4] ss:$48 sps:$4 sm:$0xff]   ;;  %v5960_v52 = vld [vmem:[#allocation5 + $0x1a0] ss:$8 sps:$4 sm:$0xff]  }
  0x69   :  { %2572 = vmatprep.mubr.bf16.mxu1 %v5876_v54  ;;  %2492 = vmatprep.mubr.bf16.mxu0 %v5882_v55  ;;  %v5963_v53 = vld [vmem:[#allocation5 + $0x2a0] ss:$8 sps:$4 sm:$0xff]   ;;  %v5971_v54 = vld [vmem:[#allocation5 + $0x194] ss:$8 sps:$4 sm:$0xff]  }
  0x6a   :  { %v5968_v55 = vld [vmem:[#allocation2 + $0x5a0] ss:$48 sps:$4 sm:$0xff]  }
  0x6b   :  { %2640 = vmatpush1.bf16.msra.mxu1 %v5870_v56  ;;  %2833 = vmatpush1.bf16.msra.mxu0 %v5873_v57  ;;  %v5977_v56 = vld [vmem:[#allocation5 + $0x294] ss:$8 sps:$4 sm:$0xff]   ;;  %v5969_v57 = vld [vmem:[#allocation5 + $0x190] ss:$8 sps:$4 sm:$0xff]  }
  0x6c   :  { %2641 = vmatprep.subr.bf16.mxu1 %v5881_v58  ;;  %2834 = vmatprep.subr.bf16.mxu0 %v5887_v60  ;;  %v5974_v58 = vld [vmem:[#allocation2 + $0x2a0] ss:$48 sps:$4 sm:$0xff]   ;;  %v5980_v60 = vld [vmem:[#allocation5 + $0x184] ss:$8 sps:$4 sm:$0xff]  }
  0x6e   :  { %2573 = vmatmul.mubr.bf16.gmra.mxu1 %v5878_v59  ;;  %2493 = vmatmul.mubr.bf16.gmra.mxu0 %v5884_v62  ;;  %v5975_v59 = vld [vmem:[#allocation5 + $0x290] ss:$8 sps:$4 sm:$0xff]   ;;  %v5986_v62 = vld [vmem:[#allocation2 + $0xc] ss:$48 sps:$4 sm:$0xff]  }
  0x6f   :  { %2642 = vmatpush1.bf16.msra.mxu1 %v5879_v61  ;;  %2835 = vmatpush1.bf16.msra.mxu0 %v5885_v63  ;;  %v5983_v61 = vld [vmem:[#allocation5 + $0x284] ss:$8 sps:$4 sm:$0xff]  }
  0x70   :  { %2643 = vmatprep.subr.bf16.mxu1 %v5890_v0  ;;  %2836 = vmatprep.subr.bf16.mxu0 %v5893_v1  ;;  %v5989_v63 = vld [vmem:[#allocation2 + $0x14] ss:$48 sps:$4 sm:$0xff]   ;;  %v5978_v0 = vld [vmem:[#allocation5 + $0x180] ss:$8 sps:$4 sm:$0xff]  }
  0x71   :  { %2582 = vmatprep.mubr.bf16.mxu1 %v5894_v2  ;;  %2502 = vmatprep.mubr.bf16.mxu0 %v5900_v3  ;;  %v5981_v1 = vld [vmem:[#allocation5 + $0x280] ss:$8 sps:$4 sm:$0xff]   ;;  %v6037_v2 = vld [vmem:[#allocation5 + $0x374] ss:$8 sps:$4 sm:$0xff]  }
  0x72   :  { %v5984_v3 = vld [vmem:[#allocation2 + $0x8] ss:$48 sps:$4 sm:$0xff]  }
  0x73   :  { %2644 = vmatpush1.bf16.msra.mxu1 %v5888_v4  ;;  %2837 = vmatpush1.bf16.msra.mxu0 %v5891_v5  ;;  %v6043_v4 = vld [vmem:[#allocation5 + $0x474] ss:$8 sps:$4 sm:$0xff]   ;;  %v5987_v5 = vld [vmem:[#allocation2 + $0x10] ss:$48 sps:$4 sm:$0xff]  }
  0x74   :  { %2645 = vmatprep.subr.bf16.mxu1 %v5899_v6  ;;  %2838 = vmatprep.subr.bf16.mxu0 %v5905_v8  ;;  %v5990_v6 = vld [vmem:[#allocation2 + $0x6c] ss:$48 sps:$4 sm:$0xff]   ;;  %v6035_v8 = vld [vmem:[#allocation5 + $0x370] ss:$8 sps:$4 sm:$0xff]  }
  0x76   :  { %2583 = vmatmul.mubr.bf16.gmra.mxu1 %v5896_v7  ;;  %2503 = vmatmul.mubr.bf16.gmra.mxu0 %v5902_v10  ;;  %v5993_v7 = vld [vmem:[#allocation2 + $0x74] ss:$48 sps:$4 sm:$0xff]  }
  0x77   :  { %2646 = vmatpush1.bf16.msra.mxu1 %v5897_v9  ;;  %2839 = vmatpush1.bf16.msra.mxu0 %v5903_v11  ;;  %v6041_v9 = vld [vmem:[#allocation5 + $0x470] ss:$8 sps:$4 sm:$0xff]   ;;  %v6046_v10 = vld [vmem:[#allocation5 + $0x364] ss:$8 sps:$4 sm:$0xff]  }
  0x78   :  { %2647 = vmatprep.subr.bf16.mxu1 %v5908_v12  ;;  %2840 = vmatprep.subr.bf16.mxu0 %v5911_v13  ;;  %v6049_v11 = vld [vmem:[#allocation5 + $0x464] ss:$8 sps:$4 sm:$0xff]   ;;  %v6044_v12 = vld [vmem:[#allocation5 + $0x360] ss:$8 sps:$4 sm:$0xff]  }
  0x79   :  { %2592 = vmatprep.mubr.bf16.mxu1 %v5912_v14  ;;  %2512 = vmatprep.mubr.bf16.mxu0 %v5918_v15  ;;  %v6047_v13 = vld [vmem:[#allocation5 + $0x460] ss:$8 sps:$4 sm:$0xff]  }
  0x7a   :  { %v5992_v14 = vld [vmem:[#allocation2 + $0x68] ss:$48 sps:$4 sm:$0xff]   ;;  %v5995_v15 = vld [vmem:[#allocation2 + $0x70] ss:$48 sps:$4 sm:$0xff]  }
  0x7b   :  { %2648 = vmatpush1.bf16.msra.mxu1 %v5906_v16  ;;  %2841 = vmatpush1.bf16.msra.mxu0 %v5909_v17  ;;  %v6055_v16 = vld [vmem:[#allocation5 + $0x354] ss:$8 sps:$4 sm:$0xff]  }
  0x7c   :  { %2649 = vmatprep.subr.bf16.mxu1 %v5917_v18  ;;  %2842 = vmatprep.subr.bf16.mxu0 %v5923_v20  ;;  %v6061_v17 = vld [vmem:[#allocation5 + $0x454] ss:$8 sps:$4 sm:$0xff]   ;;  %v6053_v20 = vld [vmem:[#allocation5 + $0x350] ss:$8 sps:$4 sm:$0xff]  }
  0x7d   :  { %v5996_v18 = vld [vmem:[#allocation2 + $0xcc] ss:$48 sps:$4 sm:$0xff]  }
  0x7e   :  { %2593 = vmatmul.mubr.bf16.gmra.mxu1 %v5914_v19  ;;  %2513 = vmatmul.mubr.bf16.gmra.mxu0 %v5920_v22  ;;  %v5999_v19 = vld [vmem:[#allocation2 + $0xd4] ss:$48 sps:$4 sm:$0xff]  }
  0x7f   :  { %2650 = vmatpush2.bf16.msra.mxu1 %v5915_v21  ;;  %2843 = vmatpush2.bf16.msra.mxu0 %v5921_v23  ;;  %v6059_v21 = vld [vmem:[#allocation5 + $0x450] ss:$8 sps:$4 sm:$0xff]   ;;  %v6064_v22 = vld [vmem:[#allocation5 + $0x344] ss:$8 sps:$4 sm:$0xff]  }
  0x80   :  { %2651 = vmatprep.subr.bf16.mxu1 %v5926_v24  ;;  %2844 = vmatprep.subr.bf16.mxu0 %v5929_v25  ;;  %v6067_v23 = vld [vmem:[#allocation5 + $0x444] ss:$8 sps:$4 sm:$0xff]   ;;  %v6062_v24 = vld [vmem:[#allocation5 + $0x340] ss:$8 sps:$4 sm:$0xff]  }
  0x81   :  { %2602 = vmatprep.mubr.bf16.mxu1 %v5930_v26  ;;  %2522 = vmatprep.mubr.bf16.mxu0 %v5936_v27  ;;  %v6065_v25 = vld [vmem:[#allocation5 + $0x440] ss:$8 sps:$4 sm:$0xff]  }
  0x82   :  { %v5998_v26 = vld [vmem:[#allocation2 + $0xc8] ss:$48 sps:$4 sm:$0xff]   ;;  %v6001_v27 = vld [vmem:[#allocation2 + $0xd0] ss:$48 sps:$4 sm:$0xff]  }
  0x83   :  { %2652 = vmatpush2.bf16.msra.mxu1 %v5924_v28  ;;  %2845 = vmatpush2.bf16.msra.mxu0 %v5927_v29  ;;  %v6073_v28 = vld [vmem:[#allocation5 + $0x334] ss:$8 sps:$4 sm:$0xff]  }
  0x84   :  { %2653 = vmatprep.subr.bf16.mxu1 %v5935_v30  ;;  %2846 = vmatprep.subr.bf16.mxu0 %v5941_v32  ;;  %v6079_v29 = vld [vmem:[#allocation5 + $0x434] ss:$8 sps:$4 sm:$0xff]   ;;  %v6071_v32 = vld [vmem:[#allocation5 + $0x330] ss:$8 sps:$4 sm:$0xff]  }
  0x85   :  { %v6002_v30 = vld [vmem:[#allocation2 + $0x12c] ss:$48 sps:$4 sm:$0xff]  }
  0x86   :  { %2603 = vmatmul.mubr.bf16.gmra.mxu1 %v5932_v31  ;;  %2523 = vmatmul.mubr.bf16.gmra.mxu0 %v5938_v34  ;;  %v6005_v31 = vld [vmem:[#allocation2 + $0x134] ss:$48 sps:$4 sm:$0xff]  }
  0x87   :  { %2654 = vmatpush2.bf16.msra.mxu1 %v5933_v33  ;;  %2847 = vmatpush2.bf16.msra.mxu0 %v5939_v35  ;;  %v6077_v33 = vld [vmem:[#allocation5 + $0x430] ss:$8 sps:$4 sm:$0xff]   ;;  %v6082_v34 = vld [vmem:[#allocation5 + $0x324] ss:$8 sps:$4 sm:$0xff]  }
  0x88   :  { %2655 = vmatprep.subr.bf16.mxu1 %v5944_v36  ;;  %2848 = vmatprep.subr.bf16.mxu0 %v5947_v37  ;;  %v6085_v35 = vld [vmem:[#allocation5 + $0x424] ss:$8 sps:$4 sm:$0xff]   ;;  %v6080_v36 = vld [vmem:[#allocation5 + $0x320] ss:$8 sps:$4 sm:$0xff]  }
  0x89   :  { %2612 = vmatprep.mubr.bf16.mxu1 %v5948_v38  ;;  %2532 = vmatprep.mubr.bf16.mxu0 %v5954_v39  ;;  %v6083_v37 = vld [vmem:[#allocation5 + $0x420] ss:$8 sps:$4 sm:$0xff]  }
  0x8a   :  { %v6004_v38 = vld [vmem:[#allocation2 + $0x128] ss:$48 sps:$4 sm:$0xff]   ;;  %v6007_v39 = vld [vmem:[#allocation2 + $0x130] ss:$48 sps:$4 sm:$0xff]  }
  0x8b   :  { %2656 = vmatpush2.bf16.msra.mxu1 %v5942_v40  ;;  %2849 = vmatpush2.bf16.msra.mxu0 %v5945_v41  ;;  %v6091_v40 = vld [vmem:[#allocation5 + $0x314] ss:$8 sps:$4 sm:$0xff]  }
  0x8c   :  { %2657 = vmatprep.subr.bf16.mxu1 %v5953_v42  ;;  %2850 = vmatprep.subr.bf16.mxu0 %v5959_v44  ;;  %v6097_v41 = vld [vmem:[#allocation5 + $0x414] ss:$8 sps:$4 sm:$0xff]   ;;  %v6089_v44 = vld [vmem:[#allocation5 + $0x310] ss:$8 sps:$4 sm:$0xff]  }
  0x8d   :  { %v6008_v42 = vld [vmem:[#allocation2 + $0x18c] ss:$48 sps:$4 sm:$0xff]  }
  0x8e   :  { %2613 = vmatmul.mubr.bf16.gmra.mxu1 %v5950_v43  ;;  %2533 = vmatmul.mubr.bf16.gmra.mxu0 %v5956_v46  ;;  %v6011_v43 = vld [vmem:[#allocation2 + $0x194] ss:$48 sps:$4 sm:$0xff]  }
  0x8f   :  { %2658 = vmatpush2.bf16.msra.mxu1 %v5951_v45  ;;  %2851 = vmatpush2.bf16.msra.mxu0 %v5957_v47  ;;  %v6095_v45 = vld [vmem:[#allocation5 + $0x410] ss:$8 sps:$4 sm:$0xff]   ;;  %v6100_v46 = vld [vmem:[#allocation5 + $0x304] ss:$8 sps:$4 sm:$0xff]  }
  0x90   :  { %2659 = vmatprep.subr.bf16.mxu1 %v5962_v48  ;;  %2852 = vmatprep.subr.bf16.mxu0 %v5965_v49  ;;  %v6103_v47 = vld [vmem:[#allocation5 + $0x404] ss:$8 sps:$4 sm:$0xff]   ;;  %v6098_v48 = vld [vmem:[#allocation5 + $0x300] ss:$8 sps:$4 sm:$0xff]  }
  0x91   :  { %2622 = vmatprep.mubr.bf16.mxu1 %v5966_v50  ;;  %2542 = vmatprep.mubr.bf16.mxu0 %v5972_v51  ;;  %v6101_v49 = vld [vmem:[#allocation5 + $0x400] ss:$8 sps:$4 sm:$0xff]  }
  0x92   :  { %v6010_v50 = vld [vmem:[#allocation2 + $0x188] ss:$48 sps:$4 sm:$0xff]   ;;  %v6013_v51 = vld [vmem:[#allocation2 + $0x190] ss:$48 sps:$4 sm:$0xff]  }
  0x93   :  { %2660 = vmatpush2.bf16.msra.mxu1 %v5960_v52  ;;  %2853 = vmatpush2.bf16.msra.mxu0 %v5963_v53  ;;  %v6109_v52 = vld [vmem:[#allocation5 + $0x3f4] ss:$8 sps:$4 sm:$0xff]  }
  0x94   :  { %2661 = vmatprep.subr.bf16.mxu1 %v5971_v54  ;;  %2854 = vmatprep.subr.bf16.mxu0 %v5977_v56  ;;  %v6115_v53 = vld [vmem:[#allocation5 + $0x4f4] ss:$8 sps:$4 sm:$0xff]   ;;  %v6107_v56 = vld [vmem:[#allocation5 + $0x3f0] ss:$8 sps:$4 sm:$0xff]  }
  0x95   :  { %v6014_v54 = vld [vmem:[#allocation2 + $0x1ec] ss:$48 sps:$4 sm:$0xff]  }
  0x96   :  { %2623 = vmatmul.mubr.bf16.gmra.mxu1 %v5968_v55  ;;  %2543 = vmatmul.mubr.bf16.gmra.mxu0 %v5974_v58  ;;  %v6017_v55 = vld [vmem:[#allocation2 + $0x1f4] ss:$48 sps:$4 sm:$0xff]  }
  0x97   :  { %2662 = vmatpush2.bf16.msra.mxu1 %v5969_v57  ;;  %2855 = vmatpush2.bf16.msra.mxu0 %v5975_v59  ;;  %v6113_v57 = vld [vmem:[#allocation5 + $0x4f0] ss:$8 sps:$4 sm:$0xff]   ;;  %v6118_v58 = vld [vmem:[#allocation5 + $0x3e4] ss:$8 sps:$4 sm:$0xff]  }
  0x98   :  { %2663 = vmatprep.subr.bf16.mxu1 %v5980_v60  ;;  %2856 = vmatprep.subr.bf16.mxu0 %v5983_v61  ;;  %v6121_v59 = vld [vmem:[#allocation5 + $0x4e4] ss:$8 sps:$4 sm:$0xff]   ;;  %v6116_v60 = vld [vmem:[#allocation5 + $0x3e0] ss:$8 sps:$4 sm:$0xff]  }
  0x99   :  { %2665 = vmatprep.mubr.bf16.mxu1 %v5986_v62  ;;  %2858 = vmatprep.mubr.bf16.mxu0 %v5989_v63  ;;  %v6119_v61 = vld [vmem:[#allocation5 + $0x4e0] ss:$8 sps:$4 sm:$0xff]  }
  0x9a   :  { %v6016_v62 = vld [vmem:[#allocation2 + $0x1e8] ss:$48 sps:$4 sm:$0xff]   ;;  %v6019_v63 = vld [vmem:[#allocation2 + $0x1f0] ss:$48 sps:$4 sm:$0xff]  }
  0x9b   :  { %2664 = vmatpush2.bf16.msra.mxu1 %v5978_v0  ;;  %2857 = vmatpush2.bf16.msra.mxu0 %v5981_v1  ;;  %v6127_v0 = vld [vmem:[#allocation5 + $0x3d4] ss:$8 sps:$4 sm:$0xff]  }
  0x9c   :  { %3019 = vmatprep.subr.bf16.mxu1 %v6037_v2  ;;  %3212 = vmatprep.subr.bf16.mxu0 %v6043_v4  ;;  %v6133_v1 = vld [vmem:[#allocation5 + $0x4d4] ss:$8 sps:$4 sm:$0xff]   ;;  %v6125_v4 = vld [vmem:[#allocation5 + $0x3d0] ss:$8 sps:$4 sm:$0xff]  }
  0x9d   :  { %v6020_v2 = vld [vmem:[#allocation2 + $0x24c] ss:$48 sps:$4 sm:$0xff]  }
  0x9e   :  { %2666 = vmatmul.mubr.bf16.vlgmr.msra.gmra.mxu1 %v5984_v3  ;;  %2859 = vmatmul.mubr.bf16.vlgmr.msra.gmra.mxu0 %v5987_v5  ;;  %v6023_v3 = vld [vmem:[#allocation2 + $0x254] ss:$48 sps:$4 sm:$0xff]   ;;  %v6131_v5 = vld [vmem:[#allocation5 + $0x4d0] ss:$8 sps:$4 sm:$0xff]  }
  0x9f   :  { %2675 = vmatprep.mubr.bf16.mxu1 %v5990_v6  ;;  %2868 = vmatprep.mubr.bf16.mxu0 %v5993_v7  ;;  %v6136_v6 = vld [vmem:[#allocation5 + $0x3c4] ss:$8 sps:$4 sm:$0xff]  }
  0xa0   :  { %3020 = vmatpush1.bf16.msra.mxu1 %v6035_v8  ;;  %3213 = vmatpush1.bf16.msra.mxu0 %v6041_v9  ;;  %v6139_v7 = vld [vmem:[#allocation5 + $0x4c4] ss:$8 sps:$4 sm:$0xff]   ;;  %v6134_v8 = vld [vmem:[#allocation5 + $0x3c0] ss:$8 sps:$4 sm:$0xff]  }
  0xa1   :  { %3021 = vmatprep.subr.bf16.mxu1 %v6046_v10  ;;  %3214 = vmatprep.subr.bf16.mxu0 %v6049_v11  ;;  %v6137_v9 = vld [vmem:[#allocation5 + $0x4c0] ss:$8 sps:$4 sm:$0xff]  }
  0xa2   :  { %v6022_v10 = vld [vmem:[#allocation2 + $0x248] ss:$48 sps:$4 sm:$0xff]   ;;  %v6025_v11 = vld [vmem:[#allocation2 + $0x250] ss:$48 sps:$4 sm:$0xff]  }
  0xa4   :  { %3022 = vmatpush1.bf16.msra.mxu1 %v6044_v12  ;;  %3215 = vmatpush1.bf16.msra.mxu0 %v6047_v13  ;;  %v6145_v12 = vld [vmem:[#allocation5 + $0x3b4] ss:$8 sps:$4 sm:$0xff]  }
  0xa5   :  { %3023 = vmatprep.subr.bf16.mxu1 %v6055_v16  ;;  %3216 = vmatprep.subr.bf16.mxu0 %v6061_v17  ;;  %v6151_v13 = vld [vmem:[#allocation5 + $0x4b4] ss:$8 sps:$4 sm:$0xff]   ;;  %v6143_v16 = vld [vmem:[#allocation5 + $0x3b0] ss:$8 sps:$4 sm:$0xff]  }
  0xa6   :  { %2676 = vmatmul.mubr.bf16.gmra.mxu1 %v5992_v14  ;;  %2869 = vmatmul.mubr.bf16.gmra.mxu0 %v5995_v15  ;;  %v6026_v14 = vld [vmem:[#allocation2 + $0x2ac] ss:$48 sps:$4 sm:$0xff]   ;;  %v6029_v15 = vld [vmem:[#allocation2 + $0x2b4] ss:$48 sps:$4 sm:$0xff]   ;;  %v6149_v17 = vld [vmem:[#allocation5 + $0x4b0] ss:$8 sps:$4 sm:$0xff]  }
  0xa7   :  { %2685 = vmatprep.mubr.bf16.mxu1 %v5996_v18  ;;  %2878 = vmatprep.mubr.bf16.mxu0 %v5999_v19  ;;  %v6154_v18 = vld [vmem:[#allocation5 + $0x3a4] ss:$8 sps:$4 sm:$0xff]  }
  0xa8   :  { %3024 = vmatpush1.bf16.msra.mxu1 %v6053_v20  ;;  %3217 = vmatpush1.bf16.msra.mxu0 %v6059_v21  ;;  %v6157_v19 = vld [vmem:[#allocation5 + $0x4a4] ss:$8 sps:$4 sm:$0xff]   ;;  %v6152_v20 = vld [vmem:[#allocation5 + $0x3a0] ss:$8 sps:$4 sm:$0xff]  }
  0xa9   :  { %3025 = vmatprep.subr.bf16.mxu1 %v6064_v22  ;;  %3218 = vmatprep.subr.bf16.mxu0 %v6067_v23  ;;  %v6155_v21 = vld [vmem:[#allocation5 + $0x4a0] ss:$8 sps:$4 sm:$0xff]  }
  0xaa   :  { %v6028_v22 = vld [vmem:[#allocation2 + $0x2a8] ss:$48 sps:$4 sm:$0xff]   ;;  %v6031_v23 = vld [vmem:[#allocation2 + $0x2b0] ss:$48 sps:$4 sm:$0xff]  }
  0xac   :  { %3026 = vmatpush1.bf16.msra.mxu1 %v6062_v24  ;;  %3219 = vmatpush1.bf16.msra.mxu0 %v6065_v25  ;;  %v6163_v24 = vld [vmem:[#allocation5 + $0x394] ss:$8 sps:$4 sm:$0xff]  }
  0xad   :  { %3027 = vmatprep.subr.bf16.mxu1 %v6073_v28  ;;  %3220 = vmatprep.subr.bf16.mxu0 %v6079_v29  ;;  %v6169_v25 = vld [vmem:[#allocation5 + $0x494] ss:$8 sps:$4 sm:$0xff]   ;;  %v6161_v28 = vld [vmem:[#allocation5 + $0x390] ss:$8 sps:$4 sm:$0xff]  }
  0xae   :  { %2686 = vmatmul.mubr.bf16.gmra.mxu1 %v5998_v26  ;;  %2879 = vmatmul.mubr.bf16.gmra.mxu0 %v6001_v27  ;;  %v6032_v26 = vld [vmem:[#allocation2 + $0x30c] ss:$48 sps:$4 sm:$0xff]   ;;  %v6038_v27 = vld [vmem:[#allocation2 + $0x314] ss:$48 sps:$4 sm:$0xff]   ;;  %v6167_v29 = vld [vmem:[#allocation5 + $0x490] ss:$8 sps:$4 sm:$0xff]  }
  0xaf   :  { %2695 = vmatprep.mubr.bf16.mxu1 %v6002_v30  ;;  %2888 = vmatprep.mubr.bf16.mxu0 %v6005_v31  ;;  %v6172_v30 = vld [vmem:[#allocation5 + $0x384] ss:$8 sps:$4 sm:$0xff]  }
  0xb0   :  { %3028 = vmatpush1.bf16.msra.mxu1 %v6071_v32  ;;  %3221 = vmatpush1.bf16.msra.mxu0 %v6077_v33  ;;  %v6175_v31 = vld [vmem:[#allocation5 + $0x484] ss:$8 sps:$4 sm:$0xff]   ;;  %v6170_v32 = vld [vmem:[#allocation5 + $0x380] ss:$8 sps:$4 sm:$0xff]  }
  0xb1   :  { %3029 = vmatprep.subr.bf16.mxu1 %v6082_v34  ;;  %3222 = vmatprep.subr.bf16.mxu0 %v6085_v35  ;;  %v6173_v33 = vld [vmem:[#allocation5 + $0x480] ss:$8 sps:$4 sm:$0xff]  }
  0xb2   :  { %v6034_v34 = vld [vmem:[#allocation2 + $0x308] ss:$48 sps:$4 sm:$0xff]   ;;  %v6040_v35 = vld [vmem:[#allocation2 + $0x310] ss:$48 sps:$4 sm:$0xff]  }
  0xb4   :  { %3030 = vmatpush1.bf16.msra.mxu1 %v6080_v36  ;;  %3223 = vmatpush1.bf16.msra.mxu0 %v6083_v37  ;;  %v6050_v36 = vld [vmem:[#allocation2 + $0x36c] ss:$48 sps:$4 sm:$0xff]   ;;  %v6056_v37 = vld [vmem:[#allocation2 + $0x374] ss:$48 sps:$4 sm:$0xff]  }
  0xb5   :  { %3031 = vmatprep.subr.bf16.mxu1 %v6091_v40  ;;  %3224 = vmatprep.subr.bf16.mxu0 %v6097_v41  ;;  %v6058_v40 = vld [vmem:[#allocation2 + $0x370] ss:$48 sps:$4 sm:$0xff]   ;;  %v6068_v41 = vld [vmem:[#allocation2 + $0x3cc] ss:$48 sps:$4 sm:$0xff]  }
  0xb6   :  { %2696 = vmatmul.mubr.bf16.gmra.mxu1 %v6004_v38  ;;  %2889 = vmatmul.mubr.bf16.gmra.mxu0 %v6007_v39  ;;  %v6229_v38 = vld [vmem:[#allocation5 + $0x574] ss:$8 sps:$4 sm:$0xff]   ;;  %v6052_v39 = vld [vmem:[#allocation2 + $0x368] ss:$48 sps:$4 sm:$0xff]  }
  0xb7   :  { %2705 = vmatprep.mubr.bf16.mxu1 %v6008_v42  ;;  %2898 = vmatprep.mubr.bf16.mxu0 %v6011_v43  ;;  %v6074_v42 = vld [vmem:[#allocation2 + $0x3d4] ss:$48 sps:$4 sm:$0xff]   ;;  %v6070_v43 = vld [vmem:[#allocation2 + $0x3c8] ss:$48 sps:$4 sm:$0xff]  }
  0xb8   :  { %3032 = vmatpush1.bf16.msra.mxu1 %v6089_v44  ;;  %3225 = vmatpush1.bf16.msra.mxu0 %v6095_v45  ;;  %v6076_v44 = vld [vmem:[#allocation2 + $0x3d0] ss:$48 sps:$4 sm:$0xff]   ;;  %v6086_v45 = vld [vmem:[#allocation2 + $0x42c] ss:$48 sps:$4 sm:$0xff]  }
  0xb9   :  { %3033 = vmatprep.subr.bf16.mxu1 %v6100_v46  ;;  %3226 = vmatprep.subr.bf16.mxu0 %v6103_v47  ;;  %v6092_v46 = vld [vmem:[#allocation2 + $0x434] ss:$48 sps:$4 sm:$0xff]   ;;  %v6088_v47 = vld [vmem:[#allocation2 + $0x428] ss:$48 sps:$4 sm:$0xff]  }
  0xbc   :  { %3034 = vmatpush1.bf16.msra.mxu1 %v6098_v48  ;;  %3227 = vmatpush1.bf16.msra.mxu0 %v6101_v49  ;;  %v6094_v48 = vld [vmem:[#allocation2 + $0x430] ss:$48 sps:$4 sm:$0xff]   ;;  %v6104_v49 = vld [vmem:[#allocation2 + $0x48c] ss:$48 sps:$4 sm:$0xff]  }
  0xbd   :  { %3035 = vmatprep.subr.bf16.mxu1 %v6109_v52  ;;  %3228 = vmatprep.subr.bf16.mxu0 %v6115_v53  ;;  %v6112_v52 = vld [vmem:[#allocation2 + $0x490] ss:$48 sps:$4 sm:$0xff]   ;;  %v6122_v53 = vld [vmem:[#allocation2 + $0x4ec] ss:$48 sps:$4 sm:$0xff]  }
  0xbe   :  { %2706 = vmatmul.mubr.bf16.gmra.mxu1 %v6010_v50  ;;  %2899 = vmatmul.mubr.bf16.gmra.mxu0 %v6013_v51  ;;  %v6110_v50 = vld [vmem:[#allocation2 + $0x494] ss:$48 sps:$4 sm:$0xff]   ;;  %v6106_v51 = vld [vmem:[#allocation2 + $0x488] ss:$48 sps:$4 sm:$0xff]  }
  0xbf   :  { %2715 = vmatprep.mubr.bf16.mxu1 %v6014_v54  ;;  %2908 = vmatprep.mubr.bf16.mxu0 %v6017_v55  ;;  %v6128_v54 = vld [vmem:[#allocation2 + $0x4f4] ss:$48 sps:$4 sm:$0xff]   ;;  %v6124_v55 = vld [vmem:[#allocation2 + $0x4e8] ss:$48 sps:$4 sm:$0xff]  }
  0xc0   :  { %3036 = vmatpush2.bf16.msra.mxu1 %v6107_v56  ;;  %3229 = vmatpush2.bf16.msra.mxu0 %v6113_v57  ;;  %v6130_v56 = vld [vmem:[#allocation2 + $0x4f0] ss:$48 sps:$4 sm:$0xff]   ;;  %v6140_v57 = vld [vmem:[#allocation2 + $0x54c] ss:$48 sps:$4 sm:$0xff]  }
  0xc1   :  { %3037 = vmatprep.subr.bf16.mxu1 %v6118_v58  ;;  %3230 = vmatprep.subr.bf16.mxu0 %v6121_v59  ;;  %v6146_v58 = vld [vmem:[#allocation2 + $0x554] ss:$48 sps:$4 sm:$0xff]   ;;  %v6142_v59 = vld [vmem:[#allocation2 + $0x548] ss:$48 sps:$4 sm:$0xff]  }
  0xc4   :  { %3038 = vmatpush2.bf16.msra.mxu1 %v6116_v60  ;;  %3231 = vmatpush2.bf16.msra.mxu0 %v6119_v61  ;;  %v6148_v60 = vld [vmem:[#allocation2 + $0x550] ss:$48 sps:$4 sm:$0xff]   ;;  %v6158_v61 = vld [vmem:[#allocation2 + $0x5ac] ss:$48 sps:$4 sm:$0xff]  }
  0xc5   :  { %3039 = vmatprep.subr.bf16.mxu1 %v6127_v0  ;;  %3232 = vmatprep.subr.bf16.mxu0 %v6133_v1  ;;  %v6166_v0 = vld [vmem:[#allocation2 + $0x5b0] ss:$48 sps:$4 sm:$0xff]   ;;  %v6178_v1 = vld [vmem:[#allocation2 + $0x1c] ss:$48 sps:$4 sm:$0xff]  }
  0xc6   :  { %2716 = vmatmul.mubr.bf16.gmra.mxu1 %v6016_v62  ;;  %2909 = vmatmul.mubr.bf16.gmra.mxu0 %v6019_v63  ;;  %v6164_v62 = vld [vmem:[#allocation2 + $0x5b4] ss:$48 sps:$4 sm:$0xff]   ;;  %v6160_v63 = vld [vmem:[#allocation2 + $0x5a8] ss:$48 sps:$4 sm:$0xff]  }
  0xc7   :  { %2725 = vmatprep.mubr.bf16.mxu1 %v6020_v2  ;;  %2918 = vmatprep.mubr.bf16.mxu0 %v6023_v3  ;;  %v6181_v2 = vld [vmem:[#allocation2 + $0x24] ss:$48 sps:$4 sm:$0xff]   ;;  %v6176_v3 = vld [vmem:[#allocation2 + $0x18] ss:$48 sps:$4 sm:$0xff]  }
  0xc8   :  { %3040 = vmatpush2.bf16.msra.mxu1 %v6125_v4  ;;  %3233 = vmatpush2.bf16.msra.mxu0 %v6131_v5  ;;  %v6179_v4 = vld [vmem:[#allocation2 + $0x20] ss:$48 sps:$4 sm:$0xff]   ;;  %v6182_v5 = vld [vmem:[#allocation2 + $0x7c] ss:$48 sps:$4 sm:$0xff]  }
  0xc9   :  { %3041 = vmatprep.subr.bf16.mxu1 %v6136_v6  ;;  %3234 = vmatprep.subr.bf16.mxu0 %v6139_v7  ;;  %v6185_v6 = vld [vmem:[#allocation2 + $0x84] ss:$48 sps:$4 sm:$0xff]   ;;  %v6227_v7 = vld [vmem:[#allocation5 + $0x570] ss:$8 sps:$4 sm:$0xff]  }
  0xcc   :  { %3042 = vmatpush2.bf16.msra.mxu1 %v6134_v8  ;;  %3235 = vmatpush2.bf16.msra.mxu0 %v6137_v9  ;;  %v6235_v8 = vld [vmem:[#allocation5 + $0x564] ss:$8 sps:$4 sm:$0xff]  }
  0xcd   :  { %3043 = vmatprep.subr.bf16.mxu1 %v6145_v12  ;;  %3236 = vmatprep.subr.bf16.mxu0 %v6151_v13  ;;  %v6233_v13 = vld [vmem:[#allocation5 + $0x560] ss:$8 sps:$4 sm:$0xff]  }
  0xce   :  { %2726 = vmatmul.mubr.bf16.gmra.mxu1 %v6022_v10  ;;  %2919 = vmatmul.mubr.bf16.gmra.mxu0 %v6025_v11 }
  0xcf   :  { %2735 = vmatprep.mubr.bf16.mxu1 %v6026_v14  ;;  %2928 = vmatprep.mubr.bf16.mxu0 %v6029_v15  ;;  %v6241_v14 = vld [vmem:[#allocation5 + $0x554] ss:$8 sps:$4 sm:$0xff]  }
  0xd0   :  { %3044 = vmatpush2.bf16.msra.mxu1 %v6143_v16  ;;  %3237 = vmatpush2.bf16.msra.mxu0 %v6149_v17  ;;  %v6184_v17 = vld [vmem:[#allocation2 + $0x78] ss:$48 sps:$4 sm:$0xff]  }
  0xd1   :  { %3045 = vmatprep.subr.bf16.mxu1 %v6154_v18  ;;  %3238 = vmatprep.subr.bf16.mxu0 %v6157_v19  ;;  %v6187_v18 = vld [vmem:[#allocation2 + $0x80] ss:$48 sps:$4 sm:$0xff]   ;;  %v6188_v19 = vld [vmem:[#allocation2 + $0xdc] ss:$48 sps:$4 sm:$0xff]  }
  0xd4   :  { %3046 = vmatpush2.bf16.msra.mxu1 %v6152_v20  ;;  %3239 = vmatpush2.bf16.msra.mxu0 %v6155_v21  ;;  %v6191_v20 = vld [vmem:[#allocation2 + $0xe4] ss:$48 sps:$4 sm:$0xff]  }
  0xd5   :  { %3047 = vmatprep.subr.bf16.mxu1 %v6163_v24  ;;  %3240 = vmatprep.subr.bf16.mxu0 %v6169_v25  ;;  %v6247_v24 = vld [vmem:[#allocation5 + $0x544] ss:$8 sps:$4 sm:$0xff]  }
  0xd6   :  { %2736 = vmatmul.mubr.bf16.gmra.mxu1 %v6028_v22  ;;  %2929 = vmatmul.mubr.bf16.gmra.mxu0 %v6031_v23  ;;  %v6239_v23 = vld [vmem:[#allocation5 + $0x550] ss:$8 sps:$4 sm:$0xff]  }
  0xd7   :  { %2745 = vmatprep.mubr.bf16.mxu1 %v6032_v26  ;;  %2938 = vmatprep.mubr.bf16.mxu0 %v6038_v27 }
  0xd8   :  { %3048 = vmatpush2.bf16.msra.mxu1 %v6161_v28  ;;  %3241 = vmatpush2.bf16.msra.mxu0 %v6167_v29  ;;  %v6245_v29 = vld [vmem:[#allocation5 + $0x540] ss:$8 sps:$4 sm:$0xff]  }
  0xd9   :  { %3049 = vmatprep.subr.bf16.mxu1 %v6172_v30  ;;  %3242 = vmatprep.subr.bf16.mxu0 %v6175_v31  ;;  %v6253_v30 = vld [vmem:[#allocation5 + $0x534] ss:$8 sps:$4 sm:$0xff]  }
  0xdc   :  { %3050 = vmatpush2.bf16.msra.mxu1 %v6170_v32  ;;  %3243 = vmatpush2.bf16.msra.mxu0 %v6173_v33  ;;  %v6190_v33 = vld [vmem:[#allocation2 + $0xd8] ss:$48 sps:$4 sm:$0xff]  }
  0xdd   :  { %3405 = vmatprep.subr.bf16.mxu1 %v6229_v38 }
  0xde   :  { %2746 = vmatmul.mubr.bf16.gmra.mxu1 %v6034_v34  ;;  %2939 = vmatmul.mubr.bf16.gmra.mxu0 %v6040_v35  ;;  %v6193_v34 = vld [vmem:[#allocation2 + $0xe0] ss:$48 sps:$4 sm:$0xff]   ;;  %v6194_v35 = vld [vmem:[#allocation2 + $0x13c] ss:$48 sps:$4 sm:$0xff]  }
  0xdf   :  { %2755 = vmatprep.mubr.bf16.mxu1 %v6050_v36  ;;  %2948 = vmatprep.mubr.bf16.mxu0 %v6056_v37  ;;  %v6197_v36 = vld [vmem:[#allocation2 + $0x144] ss:$48 sps:$4 sm:$0xff]  }
  0xe6   :  { %2756 = vmatmul.mubr.bf16.gmra.mxu1 %v6052_v39  ;;  %2949 = vmatmul.mubr.bf16.gmra.mxu0 %v6058_v40  ;;  %v6251_v39 = vld [vmem:[#allocation5 + $0x530] ss:$8 sps:$4 sm:$0xff]   ;;  %v6259_v40 = vld [vmem:[#allocation5 + $0x524] ss:$8 sps:$4 sm:$0xff]  }
  0xe7   :  { %2765 = vmatprep.mubr.bf16.mxu1 %v6068_v41  ;;  %2958 = vmatprep.mubr.bf16.mxu0 %v6074_v42 }
  0xee   :  { %2766 = vmatmul.mubr.bf16.gmra.mxu1 %v6070_v43  ;;  %2959 = vmatmul.mubr.bf16.gmra.mxu0 %v6076_v44 }
  0xef   :  { %2775 = vmatprep.mubr.bf16.mxu1 %v6086_v45  ;;  %2968 = vmatprep.mubr.bf16.mxu0 %v6092_v46  ;;  %v6257_v45 = vld [vmem:[#allocation5 + $0x520] ss:$8 sps:$4 sm:$0xff]   ;;  %v6265_v46 = vld [vmem:[#allocation5 + $0x514] ss:$8 sps:$4 sm:$0xff]  }
  0xf6   :  { %2776 = vmatmul.mubr.bf16.gmra.mxu1 %v6088_v47  ;;  %2969 = vmatmul.mubr.bf16.gmra.mxu0 %v6094_v48 }
  0xf7   :  { %2785 = vmatprep.mubr.bf16.mxu1 %v6104_v49  ;;  %2978 = vmatprep.mubr.bf16.mxu0 %v6110_v50  ;;  %v6196_v49 = vld [vmem:[#allocation2 + $0x138] ss:$48 sps:$4 sm:$0xff]   ;;  %v6199_v50 = vld [vmem:[#allocation2 + $0x140] ss:$48 sps:$4 sm:$0xff]  }
  0xfe   :  { %2786 = vmatmul.mubr.bf16.gmra.mxu1 %v6106_v51  ;;  %2979 = vmatmul.mubr.bf16.gmra.mxu0 %v6112_v52  ;;  %v6202_v51 = vld [vmem:[#allocation2 + $0x19c] ss:$48 sps:$4 sm:$0xff]   ;;  %v6205_v52 = vld [vmem:[#allocation2 + $0x1a4] ss:$48 sps:$4 sm:$0xff]  }
  0xff   :  { %2795 = vmatprep.mubr.bf16.mxu1 %v6122_v53  ;;  %2988 = vmatprep.mubr.bf16.mxu0 %v6128_v54 }
 0x106   :  { %2796 = vmatmul.mubr.bf16.gmra.mxu1 %v6124_v55  ;;  %2989 = vmatmul.mubr.bf16.gmra.mxu0 %v6130_v56  ;;  %v6263_v55 = vld [vmem:[#allocation5 + $0x510] ss:$8 sps:$4 sm:$0xff]   ;;  %v6271_v56 = vld [vmem:[#allocation5 + $0x504] ss:$8 sps:$4 sm:$0xff]  }
 0x107   :  { %2805 = vmatprep.mubr.bf16.mxu1 %v6140_v57  ;;  %2998 = vmatprep.mubr.bf16.mxu0 %v6146_v58 }
 0x10e   :  { %2806 = vmatmul.mubr.bf16.gmra.mxu1 %v6142_v59  ;;  %2999 = vmatmul.mubr.bf16.gmra.mxu0 %v6148_v60 }
 0x10f   :  { %2815 = vmatprep.mubr.bf16.mxu1 %v6158_v61  ;;  %3008 = vmatprep.mubr.bf16.mxu0 %v6164_v62  ;;  %v6269_v61 = vld [vmem:[#allocation5 + $0x500] ss:$8 sps:$4 sm:$0xff]   ;;  %v6277_v62 = vld [vmem:[#allocation5 + $0x5f4] ss:$8 sps:$4 sm:$0xff]  }
 0x116   :  { %2816 = vmatmul.mubr.bf16.gmra.mxu1 %v6160_v63  ;;  %3009 = vmatmul.mubr.bf16.gmra.mxu0 %v6166_v0 }
 0x117   :  { %3051 = vmatprep.mubr.bf16.mxu1 %v6178_v1  ;;  %3244 = vmatprep.mubr.bf16.mxu0 %v6181_v2  ;;  %v6200_v1 = vld [vmem:[#allocation2 + $0x198] ss:$48 sps:$4 sm:$0xff]   ;;  %v6203_v2 = vld [vmem:[#allocation2 + $0x1a0] ss:$48 sps:$4 sm:$0xff]  }
 0x11e   :  { %v6643_v9 = vpop.f32.mrf.mxu1  ;;  %3052 = vmatmul.mubr.bf16.vlgmr.msra.gmra.mxu1 %v6176_v3  ;;  %v6645_v10 = vpop.f32.mrf.mxu0  ;;  %3245 = vmatmul.mubr.bf16.vlgmr.msra.gmra.mxu0 %v6179_v4  ;;  %v6208_v3 = vld [vmem:[#allocation2 + $0x1fc] ss:$48 sps:$4 sm:$0xff]   ;;  %v6211_v4 = vld [vmem:[#allocation2 + $0x204] ss:$48 sps:$4 sm:$0xff]  }
 0x11f   :  { %3061 = vmatprep.mubr.bf16.mxu1 %v6182_v5  ;;  %3254 = vmatprep.mubr.bf16.mxu0 %v6185_v6 }
 0x120   :  { %v6647_v11 = vpop.f32.mrf.mxu1  ;;  %v6649_v12 = vpop.f32.mrf.mxu0  ;;  %3406 = vmatpush1.bf16.msra.mxu1 %v6227_v7  ;;  %v6275_v7 = vld [vmem:[#allocation5 + $0x5f0] ss:$8 sps:$4 sm:$0xff]  }
 0x121   :  { %3407 = vmatprep.subr.bf16.mxu1 %v6235_v8  ;;  %v6283_v8 = vld [vmem:[#allocation5 + $0x5e4] ss:$8 sps:$4 sm:$0xff]  }
 0x122   :  { %v6651_v15 = vpop.f32.mrf.mxu1  ;;  %v6653_v16 = vpop.f32.mrf.mxu0 }
 0x124   :  { %v6655_v21 = vpop.f32.mrf.mxu1  ;;  %v6657_v22 = vpop.f32.mrf.mxu0  ;;  %3408 = vmatpush1.bf16.msra.mxu1 %v6233_v13 }
 0x125   :  { %8942 = vst [vmem:[#allocation11_spill] sm:$0xff] %v6655_v21  ;;  %3409 = vmatprep.subr.bf16.mxu1 %v6241_v14  ;;  %v6230_v21 = vld [vmem:[#allocation2 + $0x320] ss:$48 sps:$4 sm:$0xff]  }
 0x126   :  { %v6659_v25 = vpop.f32.mrf.mxu1  ;;  %3062 = vmatmul.mubr.bf16.gmra.mxu1 %v6184_v17  ;;  %v6661_v26 = vpop.f32.mrf.mxu0  ;;  %3255 = vmatmul.mubr.bf16.gmra.mxu0 %v6187_v18 }
 0x127   :  { %3071 = vmatprep.mubr.bf16.mxu1 %v6188_v19  ;;  %3264 = vmatprep.mubr.bf16.mxu0 %v6191_v20  ;;  %v6281_v19 = vld [vmem:[#allocation5 + $0x5e0] ss:$8 sps:$4 sm:$0xff]   ;;  %v6289_v20 = vld [vmem:[#allocation5 + $0x5d4] ss:$8 sps:$4 sm:$0xff]  }
 0x128   :  { %v6663_v27 = vpop.f32.mrf.mxu1  ;;  %v6665_v28 = vpop.f32.mrf.mxu0  ;;  %3410 = vmatpush1.bf16.msra.mxu1 %v6239_v23 }
 0x129   :  { %3411 = vmatprep.subr.bf16.mxu1 %v6247_v24 }
 0x12a   :  { %v6667_v31 = vpop.f32.mrf.mxu1  ;;  %v6669_v32 = vpop.f32.mrf.mxu0 }
 0x12c   :  { %v6671_v37 = vpop.f32.mrf.mxu1  ;;  %v6673_v38 = vpop.f32.mrf.mxu0  ;;  %3412 = vmatpush1.bf16.msra.mxu1 %v6245_v29  ;;  %v6206_v29 = vld [vmem:[#allocation2 + $0x1f8] ss:$48 sps:$4 sm:$0xff]  }
 0x12d   :  { %8943 = vst [vmem:[#allocation12_spill] sm:$0xff] %v6671_v37  ;;  %3413 = vmatprep.subr.bf16.mxu1 %v6253_v30  ;;  %v6209_v30 = vld [vmem:[#allocation2 + $0x200] ss:$48 sps:$4 sm:$0xff]  }
 0x12e   :  { %v6675_v41 = vpop.f32.mrf.mxu1  ;;  %3072 = vmatmul.mubr.bf16.gmra.mxu1 %v6190_v33  ;;  %v6677_v42 = vpop.f32.mrf.mxu0  ;;  %3265 = vmatmul.mubr.bf16.gmra.mxu0 %v6193_v34  ;;  %v6214_v33 = vld [vmem:[#allocation2 + $0x25c] ss:$48 sps:$4 sm:$0xff]   ;;  %v6217_v34 = vld [vmem:[#allocation2 + $0x264] ss:$48 sps:$4 sm:$0xff]  }
 0x12f   :  { %3081 = vmatprep.mubr.bf16.mxu1 %v6194_v35  ;;  %3274 = vmatprep.mubr.bf16.mxu0 %v6197_v36 }
 0x130   :  { %v6679_v43 = vpop.f32.mrf.mxu1  ;;  %v6681_v44 = vpop.f32.mrf.mxu0  ;;  %3414 = vmatpush1.bf16.msra.mxu1 %v6251_v39  ;;  %v6287_v39 = vld [vmem:[#allocation5 + $0x5d0] ss:$8 sps:$4 sm:$0xff]  }
 0x131   :  { %3415 = vmatprep.subr.bf16.mxu1 %v6259_v40  ;;  %v6295_v40 = vld [vmem:[#allocation5 + $0x5c4] ss:$8 sps:$4 sm:$0xff]  }
 0x132   :  { %v6683_v47 = vpop.f32.mrf.mxu1  ;;  %v6685_v48 = vpop.f32.mrf.mxu0 }
 0x134   :  { %v6687_v53 = vpop.f32.mrf.mxu1  ;;  %v6689_v54 = vpop.f32.mrf.mxu0  ;;  %3416 = vmatpush1.bf16.msra.mxu1 %v6257_v45 }
 0x135   :  { %8944 = vst [vmem:[#allocation13_spill] sm:$0xff] %v6687_v53  ;;  %3417 = vmatprep.subr.bf16.mxu1 %v6265_v46 }
 0x136   :  { %v6691_v57 = vpop.f32.mrf.mxu1  ;;  %3082 = vmatmul.mubr.bf16.gmra.mxu1 %v6196_v49  ;;  %v6693_v58 = vpop.f32.mrf.mxu0  ;;  %3275 = vmatmul.mubr.bf16.gmra.mxu0 %v6199_v50 }
 0x137   :  { %3091 = vmatprep.mubr.bf16.mxu1 %v6202_v51  ;;  %3284 = vmatprep.mubr.bf16.mxu0 %v6205_v52  ;;  %v6293_v51 = vld [vmem:[#allocation5 + $0x5c0] ss:$8 sps:$4 sm:$0xff]   ;;  %v6301_v52 = vld [vmem:[#allocation5 + $0x5b4] ss:$8 sps:$4 sm:$0xff]  }
 0x138   :  { %v6695_v59 = vpop.f32.mrf.mxu1  ;;  %v6697_v60 = vpop.f32.mrf.mxu0  ;;  %3418 = vmatpush1.bf16.msra.mxu1 %v6263_v55 }
 0x139   :  { %3419 = vmatprep.subr.bf16.mxu1 %v6271_v56 }
 0x13a   :  { %v6699_v63 = vpop.f32.mrf.mxu1  ;;  %v6701_v0 = vpop.f32.mrf.mxu0 }
 0x13c   :  { %v6703_v5 = vpop.f32.mrf.mxu1  ;;  %v6705_v6 = vpop.f32.mrf.mxu0  ;;  %3420 = vmatpush1.bf16.msra.mxu1 %v6269_v61  ;;  %v6212_v61 = vld [vmem:[#allocation2 + $0x258] ss:$48 sps:$4 sm:$0xff]  }
 0x13d   :  { %8945 = vst [vmem:[#allocation14_spill] sm:$0xff] %v6703_v5  ;;  %3421 = vmatprep.subr.bf16.mxu1 %v6277_v62  ;;  %v6215_v62 = vld [vmem:[#allocation2 + $0x260] ss:$48 sps:$4 sm:$0xff]  }
 0x13e   :  { %v6707_v13 = vpop.f32.mrf.mxu1  ;;  %3092 = vmatmul.mubr.bf16.gmra.mxu1 %v6200_v1  ;;  %v6709_v14 = vpop.f32.mrf.mxu0  ;;  %3285 = vmatmul.mubr.bf16.gmra.mxu0 %v6203_v2  ;;  %v6220_v1 = vld [vmem:[#allocation2 + $0x2bc] ss:$48 sps:$4 sm:$0xff]   ;;  %v6223_v2 = vld [vmem:[#allocation2 + $0x2c4] ss:$48 sps:$4 sm:$0xff]  }
 0x13f   :  { %3101 = vmatprep.mubr.bf16.mxu1 %v6208_v3  ;;  %3294 = vmatprep.mubr.bf16.mxu0 %v6211_v4 }
 0x140   :  { %v6711_v17 = vpop.f32.mrf.mxu1  ;;  %v6713_v18 = vpop.f32.mrf.mxu0  ;;  %3422 = vmatpush2.bf16.msra.mxu1 %v6275_v7  ;;  %v6299_v7 = vld [vmem:[#allocation5 + $0x5b0] ss:$8 sps:$4 sm:$0xff]  }
 0x141   :  { %3423 = vmatprep.subr.bf16.mxu1 %v6283_v8  ;;  %v6307_v8 = vld [vmem:[#allocation5 + $0x5a4] ss:$8 sps:$4 sm:$0xff]  }
 0x142   :  { %v6715_v23 = vpop.f32.mrf.mxu1  ;;  %v6717_v24 = vpop.f32.mrf.mxu0 }
 0x143   :  { %8946 = vst [vmem:[#allocation15_spill] sm:$0xff] %v6715_v23 }
 0x144   :  { %v6719_v35 = vpop.f32.mrf.mxu1  ;;  %v6721_v36 = vpop.f32.mrf.mxu0  ;;  %3424 = vmatpush2.bf16.msra.mxu1 %v6281_v19 }
 0x145   :  { %8947 = vst [vmem:[#allocation16_spill] sm:$0xff] %v6719_v35  ;;  %3425 = vmatprep.subr.bf16.mxu1 %v6289_v20 }
 0x146   :  { %v6723_v45 = vpop.f32.mrf.mxu1  ;;  %3102 = vmatmul.mubr.bf16.gmra.mxu1 %v6206_v29  ;;  %v6725_v46 = vpop.f32.mrf.mxu0  ;;  %3295 = vmatmul.mubr.bf16.gmra.mxu0 %v6209_v30 }
 0x147   :  { %8948 = vst [vmem:[#allocation17_spill] sm:$0xff] %v6723_v45  ;;  %3111 = vmatprep.mubr.bf16.mxu1 %v6214_v33  ;;  %3304 = vmatprep.mubr.bf16.mxu0 %v6217_v34  ;;  %v6305_v33 = vld [vmem:[#allocation5 + $0x5a0] ss:$8 sps:$4 sm:$0xff]   ;;  %v6313_v34 = vld [vmem:[#allocation5 + $0x594] ss:$8 sps:$4 sm:$0xff]  }
 0x148   :  { %v6727_v49 = vpop.f32.mrf.mxu1  ;;  %v6729_v50 = vpop.f32.mrf.mxu0  ;;  %3426 = vmatpush2.bf16.msra.mxu1 %v6287_v39 }
 0x149   :  { %8949 = vst [vmem:[#allocation18_spill] sm:$0xff] %v6727_v49  ;;  %3427 = vmatprep.subr.bf16.mxu1 %v6295_v40  ;;  %v6242_v49 = vld [vmem:[#allocation2 + $0x380] ss:$48 sps:$4 sm:$0xff]  }
 0x14a   :  { %v6731_v55 = vpop.f32.mrf.mxu1  ;;  %v6733_v56 = vpop.f32.mrf.mxu0 }
 0x14b   :  { %8950 = vst [vmem:[#allocation19_spill] sm:$0xff] %v6731_v55 }
 0x14c   :  { %v6735_v3 = vpop.f32.mrf.mxu1  ;;  %v6737_v4 = vpop.f32.mrf.mxu0  ;;  %3428 = vmatpush2.bf16.msra.mxu1 %v6293_v51  ;;  %v6218_v51 = vld [vmem:[#allocation2 + $0x2b8] ss:$48 sps:$4 sm:$0xff]  }
 0x14d   :  { %8951 = vst [vmem:[#allocation20_spill] sm:$0xff] %v6735_v3  ;;  %3429 = vmatprep.subr.bf16.mxu1 %v6301_v52  ;;  %v6221_v52 = vld [vmem:[#allocation2 + $0x2c0] ss:$48 sps:$4 sm:$0xff]   ;;  %v6232_v3 = vld [vmem:[#allocation2 + $0x324] ss:$48 sps:$4 sm:$0xff]  }
 0x14e   :  { %v6739_v19 = vpop.f32.mrf.mxu1  ;;  %3112 = vmatmul.mubr.bf16.gmra.mxu1 %v6212_v61  ;;  %v6741_v20 = vpop.f32.mrf.mxu0  ;;  %3305 = vmatmul.mubr.bf16.gmra.mxu0 %v6215_v62  ;;  %v6226_v61 = vld [vmem:[#allocation2 + $0x31c] ss:$48 sps:$4 sm:$0xff]  }
 0x14f   :  { %8952 = vst [vmem:[#allocation21_spill] sm:$0xff] %v6739_v19  ;;  %3121 = vmatprep.mubr.bf16.mxu1 %v6220_v1  ;;  %3314 = vmatprep.mubr.bf16.mxu0 %v6223_v2  ;;  %v6311_v1 = vld [vmem:[#allocation5 + $0x590] ss:$8 sps:$4 sm:$0xff]   ;;  %v6319_v2 = vld [vmem:[#allocation5 + $0x584] ss:$8 sps:$4 sm:$0xff]  }
 0x150   :  { %v6743_v29 = vpop.f32.mrf.mxu1  ;;  %v6745_v30 = vpop.f32.mrf.mxu0  ;;  %3430 = vmatpush2.bf16.msra.mxu1 %v6299_v7 }
 0x151   :  { %8953 = vst [vmem:[#allocation22_spill] sm:$0xff] %v6743_v29  ;;  %3431 = vmatprep.subr.bf16.mxu1 %v6307_v8 }
 0x152   :  { %v6747_v39 = vpop.f32.mrf.mxu1  ;;  %v6749_v40 = vpop.f32.mrf.mxu0 }
 0x153   :  { %8954 = vst [vmem:[#allocation23_spill] sm:$0xff] %v6747_v39 }
 0x154   :  { %v6751_v35 = vpop.f32.mrf.mxu1  ;;  %v6753_v62 = vpop.f32.mrf.mxu0  ;;  %3432 = vmatpush2.bf16.msra.mxu1 %v6305_v33 }
 0x155   :  { %8955 = vst [vmem:[#allocation24_spill] sm:$0xff] %v6751_v35  ;;  %3433 = vmatprep.subr.bf16.mxu1 %v6313_v34  ;;  %v6317_v35 = vld [vmem:[#allocation5 + $0x580] ss:$8 sps:$4 sm:$0xff]  }
 0x156   :  { %v6755_v7 = vpop.f32.mrf.mxu1  ;;  %3122 = vmatmul.mubr.bf16.gmra.mxu1 %v6218_v51  ;;  %v6757_v8 = vpop.f32.mrf.mxu0  ;;  %3315 = vmatmul.mubr.bf16.gmra.mxu0 %v6221_v52  ;;  %v6224_v34 = vld [vmem:[#allocation2 + $0x318] ss:$48 sps:$4 sm:$0xff]   ;;  %v6244_v51 = vld [vmem:[#allocation2 + $0x384] ss:$48 sps:$4 sm:$0xff]  }
 0x157   :  { %8956 = vst [vmem:[#allocation25_spill] sm:$0xff] %v6755_v7  ;;  %3131 = vmatprep.mubr.bf16.mxu1 %v6226_v61  ;;  %3324 = vmatprep.mubr.bf16.mxu0 %v6232_v3  ;;  %v6238_v7 = vld [vmem:[#allocation2 + $0x37c] ss:$48 sps:$4 sm:$0xff]  }
 0x158   :  { %v6759_v5 = vpop.f32.mrf.mxu1  ;;  %v6761_v53 = vpop.f32.mrf.mxu0  ;;  %3434 = vmatpush2.bf16.msra.mxu1 %v6311_v1 }
 0x159   :  { %8957 = vst [vmem:[#allocation26_spill] sm:$0xff] %v6759_v5  ;;  %3435 = vmatprep.subr.bf16.mxu1 %v6319_v2 }
 0x15a   :  { %v6763_v37 = vpop.f32.mrf.mxu1  ;;  %v6765_v33 = vpop.f32.mrf.mxu0 }
 0x15b   :  { %8958 = vst [vmem:[#allocation27_spill] sm:$0xff] %v6763_v37 }
 0x15c   :  { %v6767_v39 = vpop.f32.mrf.mxu1  ;;  %v6769_v52 = vpop.f32.mrf.mxu0  ;;  %3436 = vmatpush2.bf16.msra.mxu1 %v6317_v35 }
 0x15d   :  { %8959 = vst [vmem:[#allocation28_spill] sm:$0xff] %v6767_v39  ;;  %v6236_v39 = vld [vmem:[#allocation2 + $0x378] ss:$48 sps:$4 sm:$0xff]  }
 0x15e   :  { %v2667_v3 = vpop.f32.mrf.mxu1  ;;  %3132 = vmatmul.mubr.bf16.gmra.mxu1 %v6224_v34  ;;  %v2860_v61 = vpop.f32.mrf.mxu0  ;;  %3325 = vmatmul.mubr.bf16.gmra.mxu0 %v6230_v21  ;;  %v6250_v34 = vld [vmem:[#allocation2 + $0x3dc] ss:$48 sps:$4 sm:$0xff]   ;;  %v6256_v21 = vld [vmem:[#allocation2 + $0x3e4] ss:$48 sps:$4 sm:$0xff]  }
 0x15f   :  { %v2668_v1 = vadd.f32 %v2667_v3, %v6645_v10  ;;  %3141 = vmatprep.mubr.bf16.mxu1 %v6238_v7  ;;  %3334 = vmatprep.mubr.bf16.mxu0 %v6244_v51 }
 0x160   :  { %v2669_v2 = vpop.f32.mrf.mxu1  ;;  %v2862_v37 = vpop.f32.mrf.mxu0 }
 0x161   :  { %v2670_v5 = vadd.f32 %v2669_v2, %v6649_v12  ;;  %v6773_v29 = vadd.f32 %v2860_v61, %v2668_v1 }
 0x162   :  { %v2671_v19 = vpop.f32.mrf.mxu1  ;;  %v2864_v55 = vpop.f32.mrf.mxu0 }
 0x163   :  { %v2672_v35 = vadd.f32 %v2671_v19, %v6653_v16  ;;  %v6776_v45 = vadd.f32 %v2862_v37, %v2670_v5 }
 0x164   :  { %v2673_v23 = vpop.f32.mrf.mxu1  ;;  %v2866_v10 = vpop.f32.mrf.mxu0 }
 0x165   :  { %v2674_v7 = vadd.f32 %v2673_v23, %v6657_v22  ;;  %v6779_v51 = vadd.f32 %v2864_v55, %v2672_v35  ;;  %v6248_v23 = vld [vmem:[#allocation2 + $0x3d8] ss:$48 sps:$4 sm:$0xff]   ;;  %v6254_v55 = vld [vmem:[#allocation2 + $0x3e0] ss:$48 sps:$4 sm:$0xff]  }
 0x166   :  { %v2677_v3 = vpop.f32.mrf.mxu1  ;;  %3142 = vmatmul.mubr.bf16.gmra.mxu1 %v6236_v39  ;;  %v2870_v12 = vpop.f32.mrf.mxu0  ;;  %3335 = vmatmul.mubr.bf16.gmra.mxu0 %v6242_v49  ;;  %v6262_v49 = vld [vmem:[#allocation2 + $0x43c] ss:$48 sps:$4 sm:$0xff]  }
 0x167   :  { %v2678_v61 = vadd.f32 %v2677_v3, %v6661_v26  ;;  %v6782_v1 = vadd.f32 %v2866_v10, %v2674_v7  ;;  %3151 = vmatprep.mubr.bf16.mxu1 %v6250_v34  ;;  %3344 = vmatprep.mubr.bf16.mxu0 %v6256_v21  ;;  %v6268_v26 = vld [vmem:[#allocation2 + $0x444] ss:$48 sps:$4 sm:$0xff]  }
 0x168   :  { %v2679_v16 = vpop.f32.mrf.mxu1  ;;  %v2872_v37 = vpop.f32.mrf.mxu0 }
 0x169   :  { %v2680_v5 = vadd.f32 %v2679_v16, %v6665_v28  ;;  %v6785_v19 = vadd.f32 %v2870_v12, %v2678_v61 }
 0x16a   :  { %v2681_v2 = vpop.f32.mrf.mxu1  ;;  %v2874_v22 = vpop.f32.mrf.mxu0 }
 0x16b   :  { %v2682_v39 = vadd.f32 %v2681_v2, %v6669_v32  ;;  %v6788_v35 = vadd.f32 %v2872_v37, %v2680_v5 }
 0x16c   :  { %v2683_v10 = vpop.f32.mrf.mxu1  ;;  %v2876_v7 = vpop.f32.mrf.mxu0 }
 0x16d   :  { %v2684_v34 = vadd.f32 %v2683_v10, %v6673_v38  ;;  %v6791_v21 = vadd.f32 %v2874_v22, %v2682_v39  ;;  %v6260_v22 = vld [vmem:[#allocation2 + $0x438] ss:$48 sps:$4 sm:$0xff]   ;;  %v6266_v39 = vld [vmem:[#allocation2 + $0x440] ss:$48 sps:$4 sm:$0xff]  }
 0x16e   :  { %v2687_v3 = vpop.f32.mrf.mxu1  ;;  %3152 = vmatmul.mubr.bf16.gmra.mxu1 %v6248_v23  ;;  %v2880_v28 = vpop.f32.mrf.mxu0  ;;  %3345 = vmatmul.mubr.bf16.gmra.mxu0 %v6254_v55  ;;  %v6274_v55 = vld [vmem:[#allocation2 + $0x49c] ss:$48 sps:$4 sm:$0xff]  }
 0x16f   :  { %v2688_v12 = vadd.f32 %v2687_v3, %v6677_v42  ;;  %v6794_v61 = vadd.f32 %v2876_v7, %v2684_v34  ;;  %3161 = vmatprep.mubr.bf16.mxu1 %v6262_v49  ;;  %3354 = vmatprep.mubr.bf16.mxu0 %v6268_v26  ;;  %v6280_v42 = vld [vmem:[#allocation2 + $0x4a4] ss:$48 sps:$4 sm:$0xff]  }
 0x170   :  { %v2689_v32 = vpop.f32.mrf.mxu1  ;;  %v2882_v16 = vpop.f32.mrf.mxu0 }
 0x171   :  { %v2690_v37 = vadd.f32 %v2689_v32, %v6681_v44  ;;  %v6797_v5 = vadd.f32 %v2880_v28, %v2688_v12 }
 0x172   :  { %v2691_v2 = vpop.f32.mrf.mxu1  ;;  %v2884_v38 = vpop.f32.mrf.mxu0 }
 0x173   :  { %v2692_v23 = vadd.f32 %v2691_v2, %v6685_v48  ;;  %v6800_v10 = vadd.f32 %v2882_v16, %v2690_v37 }
 0x174   :  { %v2693_v7 = vpop.f32.mrf.mxu1  ;;  %v2886_v34 = vpop.f32.mrf.mxu0 }
 0x175   :  { %v2694_v49 = vadd.f32 %v2693_v7, %v6689_v54  ;;  %v6803_v26 = vadd.f32 %v2884_v38, %v2692_v23  ;;  %v6272_v38 = vld [vmem:[#allocation2 + $0x498] ss:$48 sps:$4 sm:$0xff]   ;;  %v6278_v23 = vld [vmem:[#allocation2 + $0x4a0] ss:$48 sps:$4 sm:$0xff]  }
 0x176   :  { %v2697_v3 = vpop.f32.mrf.mxu1  ;;  %3162 = vmatmul.mubr.bf16.gmra.mxu1 %v6260_v22  ;;  %v2890_v44 = vpop.f32.mrf.mxu0  ;;  %3355 = vmatmul.mubr.bf16.gmra.mxu0 %v6266_v39  ;;  %v6286_v39 = vld [vmem:[#allocation2 + $0x4fc] ss:$48 sps:$4 sm:$0xff]  }
 0x177   :  { %v2698_v28 = vadd.f32 %v2697_v3, %v6693_v58  ;;  %v6806_v12 = vadd.f32 %v2886_v34, %v2694_v49  ;;  %3171 = vmatprep.mubr.bf16.mxu1 %v6274_v55  ;;  %3364 = vmatprep.mubr.bf16.mxu0 %v6280_v42  ;;  %v6292_v58 = vld [vmem:[#allocation2 + $0x504] ss:$48 sps:$4 sm:$0xff]  }
 0x178   :  { %v2699_v48 = vpop.f32.mrf.mxu1  ;;  %v2892_v32 = vpop.f32.mrf.mxu0 }
 0x179   :  { %v2700_v16 = vadd.f32 %v2699_v48, %v6697_v60  ;;  %v6809_v37 = vadd.f32 %v2890_v44, %v2698_v28 }
 0x17a   :  { %v2701_v2 = vpop.f32.mrf.mxu1  ;;  %v2894_v54 = vpop.f32.mrf.mxu0 }
 0x17b   :  { %v2702_v22 = vadd.f32 %v2701_v2, %v6701_v0  ;;  %v6812_v7 = vadd.f32 %v2892_v32, %v2700_v16 }
 0x17c   :  { %v2703_v34 = vpop.f32.mrf.mxu1  ;;  %v2896_v49 = vpop.f32.mrf.mxu0 }
 0x17d   :  { %v2704_v55 = vadd.f32 %v2703_v34, %v6705_v6  ;;  %v6815_v42 = vadd.f32 %v2894_v54, %v2702_v22  ;;  %v6284_v54 = vld [vmem:[#allocation2 + $0x4f8] ss:$48 sps:$4 sm:$0xff]   ;;  %v6290_v22 = vld [vmem:[#allocation2 + $0x500] ss:$48 sps:$4 sm:$0xff]  }
 0x17e   :  { %v2707_v3 = vpop.f32.mrf.mxu1  ;;  %3172 = vmatmul.mubr.bf16.gmra.mxu1 %v6272_v38  ;;  %v2900_v60 = vpop.f32.mrf.mxu0  ;;  %3365 = vmatmul.mubr.bf16.gmra.mxu0 %v6278_v23  ;;  %v6298_v23 = vld [vmem:[#allocation2 + $0x55c] ss:$48 sps:$4 sm:$0xff]  }
 0x17f   :  { %v2708_v44 = vadd.f32 %v2707_v3, %v6709_v14  ;;  %v6818_v28 = vadd.f32 %v2896_v49, %v2704_v55  ;;  %3181 = vmatprep.mubr.bf16.mxu1 %v6286_v39  ;;  %3374 = vmatprep.mubr.bf16.mxu0 %v6292_v58  ;;  %v6304_v14 = vld [vmem:[#allocation2 + $0x564] ss:$48 sps:$4 sm:$0xff]  }
 0x180   :  { %v2709_v0 = vpop.f32.mrf.mxu1  ;;  %v2902_v48 = vpop.f32.mrf.mxu0 }
 0x181   :  { %v2710_v32 = vadd.f32 %v2709_v0, %v6713_v18  ;;  %v6821_v16 = vadd.f32 %v2900_v60, %v2708_v44 }
 0x182   :  { %v2711_v2 = vpop.f32.mrf.mxu1  ;;  %v2904_v6 = vpop.f32.mrf.mxu0 }
 0x183   :  { %v2712_v38 = vadd.f32 %v2711_v2, %v6717_v24  ;;  %v6824_v34 = vadd.f32 %v2902_v48, %v2710_v32 }
 0x184   :  { %v2713_v49 = vpop.f32.mrf.mxu1  ;;  %v6826_v55 = vpop.f32.mrf.mxu0 }
 0x185   :  { %8960 = vst [vmem:[#allocation29_spill] sm:$0xff] %v6826_v55  ;;  %v6829_v39 = vadd.f32 %v2713_v49, %v6721_v36  ;;  %v6831_v58 = vadd.f32 %v2904_v6, %v2712_v38  ;;  %v6296_v36 = vld [vmem:[#allocation2 + $0x558] ss:$48 sps:$4 sm:$0xff]   ;;  %v6302_v49 = vld [vmem:[#allocation2 + $0x560] ss:$48 sps:$4 sm:$0xff]  }
 0x186   :  { %v2717_v18 = vpop.f32.mrf.mxu1  ;;  %3182 = vmatmul.mubr.bf16.gmra.mxu1 %v6284_v54  ;;  %v2910_v3 = vpop.f32.mrf.mxu0  ;;  %3375 = vmatmul.mubr.bf16.gmra.mxu0 %v6290_v22  ;;  %v6310_v54 = vld [vmem:[#allocation2 + $0x5bc] ss:$48 sps:$4 sm:$0xff]   ;;  %v6316_v22 = vld [vmem:[#allocation2 + $0x5c4] ss:$48 sps:$4 sm:$0xff]  }
 0x187   :  { %8961 = vst [vmem:[#allocation30_spill] sm:$0xff] %v6829_v39  ;;  %v2718_v60 = vadd.f32 %v2717_v18, %v6725_v46  ;;  %3191 = vmatprep.mubr.bf16.mxu1 %v6298_v23  ;;  %3384 = vmatprep.mubr.bf16.mxu0 %v6304_v14 }
 0x188   :  { %v2719_v24 = vpop.f32.mrf.mxu1  ;;  %v2912_v44 = vpop.f32.mrf.mxu0 }
 0x189   :  { %v2720_v0 = vadd.f32 %v2719_v24, %v6729_v50  ;;  %v6835_v48 = vadd.f32 %v2910_v3, %v2718_v60 }
 0x18a   :  { %v2721_v32 = vpop.f32.mrf.mxu1  ;;  %v2914_v2 = vpop.f32.mrf.mxu0 }
 0x18b   :  { %v2722_v6 = vadd.f32 %v2721_v32, %v6733_v56  ;;  %v6838_v38 = vadd.f32 %v2912_v44, %v2720_v0 }
 0x18c   :  { %v2723_v55 = vpop.f32.mrf.mxu1  ;;  %v6840_v46 = vpop.f32.mrf.mxu0 }
 0x18d   :  { %8962 = vst [vmem:[#allocation31_spill] sm:$0xff] %v6840_v46  ;;  %v6843_v23 = vadd.f32 %v2723_v55, %v6737_v4  ;;  %v6845_v14 = vadd.f32 %v2914_v2, %v2722_v6  ;;  %v6308_v4 = vld [vmem:[#allocation2 + $0x5b8] ss:$48 sps:$4 sm:$0xff]   ;;  %v6314_v55 = vld [vmem:[#allocation2 + $0x5c0] ss:$48 sps:$4 sm:$0xff]  }
 0x18e   :  { %v2727_v50 = vpop.f32.mrf.mxu1  ;;  %3192 = vmatmul.mubr.bf16.gmra.mxu1 %v6296_v36  ;;  %v2920_v18 = vpop.f32.mrf.mxu0  ;;  %3385 = vmatmul.mubr.bf16.gmra.mxu0 %v6302_v49  ;;  %v6322_v36 = vld [vmem:[#allocation2 + $0x2c] ss:$48 sps:$4 sm:$0xff]  }
 0x18f   :  { %8963 = vst [vmem:[#allocation32_spill] sm:$0xff] %v6843_v23  ;;  %v2728_v3 = vadd.f32 %v2727_v50, %v6741_v20  ;;  %3201 = vmatprep.mubr.bf16.mxu1 %v6310_v54  ;;  %3394 = vmatprep.mubr.bf16.mxu0 %v6316_v22  ;;  %v8987_v23 = vld [vmem:[#allocation22_spill] sm:$0xff] }
 0x190   :  { %v2729_v56 = vpop.f32.mrf.mxu1  ;;  %v2922_v60 = vpop.f32.mrf.mxu0 }
 0x191   :  { %v2730_v24 = vadd.f32 %v2729_v56, %v6745_v30  ;;  %v6849_v44 = vadd.f32 %v2920_v18, %v2728_v3 }
 0x192   :  { %v2731_v0 = vpop.f32.mrf.mxu1  ;;  %v2924_v32 = vpop.f32.mrf.mxu0 }
 0x193   :  { %v2732_v2 = vadd.f32 %v2731_v0, %v6749_v40  ;;  %v6852_v6 = vadd.f32 %v2922_v60, %v2730_v24  ;;  %v6320_v0 = vld [vmem:[#allocation2 + $0x28] ss:$48 sps:$4 sm:$0xff]  }
 0x194   :  { %v2733_v49 = vpop.f32.mrf.mxu1  ;;  %v6854_v46 = vpop.f32.mrf.mxu0 }
 0x195   :  { %8964 = vst [vmem:[#allocation33_spill] sm:$0xff] %v6854_v46  ;;  %v6857_v20 = vadd.f32 %v2733_v49, %v6753_v62  ;;  %v6859_v54 = vadd.f32 %v2924_v32, %v2732_v2  ;;  %v6325_v2 = vld [vmem:[#allocation2 + $0x8c] ss:$48 sps:$4 sm:$0xff]  }
 0x196   :  { %v2737_v30 = vpop.f32.mrf.mxu1  ;;  %3202 = vmatmul.mubr.bf16.gmra.mxu1 %v6308_v4  ;;  %v2930_v22 = vpop.f32.mrf.mxu0  ;;  %3395 = vmatmul.mubr.bf16.gmra.mxu0 %v6314_v55 }
 0x197   :  { %8965 = vst [vmem:[#allocation34_spill] sm:$0xff] %v6857_v20  ;;  %v2738_v50 = vadd.f32 %v2737_v30, %v6757_v8  ;;  %3437 = vmatprep.mubr.bf16.mxu1 %v6322_v36 }
 0x198   :  { %v2739_v18 = vpop.f32.mrf.mxu1  ;;  %v2932_v40 = vpop.f32.mrf.mxu0 }
 0x199   :  { %v2740_v3 = vadd.f32 %v2739_v18, %v6761_v53  ;;  %v6863_v56 = vadd.f32 %v2930_v22, %v2738_v50 }
 0x19a   :  { %v2741_v60 = vpop.f32.mrf.mxu1  ;;  %v2934_v24 = vpop.f32.mrf.mxu0 }
 0x19b   :  { %v2742_v62 = vadd.f32 %v2741_v60, %v6765_v33  ;;  %v6866_v32 = vadd.f32 %v2932_v40, %v2740_v3  ;;  %v6323_v60 = vld [vmem:[#allocation2 + $0x88] ss:$48 sps:$4 sm:$0xff]  }
 0x19c   :  { %v2743_v4 = vpop.f32.mrf.mxu1  ;;  %v6868_v49 = vpop.f32.mrf.mxu0 }
 0x19d   :  { %8966 = vst [vmem:[#allocation35_spill] sm:$0xff] %v6868_v49  ;;  %v6871_v8 = vadd.f32 %v2743_v4, %v6769_v52  ;;  %v6873_v55 = vadd.f32 %v2934_v24, %v2742_v62  ;;  %v6328_v24 = vld [vmem:[#allocation2 + $0xec] ss:$48 sps:$4 sm:$0xff]  }
 0x19e   :  { %v2747_v36 = vpop.f32.mrf.mxu1  ;;  %3438 = vmatmul.mubr.bf16.vlgmr.msra.gmra.mxu1 %v6320_v0  ;;  %v2940_v53 = vpop.f32.mrf.mxu0 }
 0x19f   :  { %8967 = vst [vmem:[#allocation36_spill] sm:$0xff] %v6871_v8  ;;  %v2748_v30 = vadd.f32 %v2747_v36, %v6643_v9  ;;  %3447 = vmatprep.mubr.bf16.mxu1 %v6325_v2  ;;  %v8980_v8 = vld [vmem:[#allocation18_spill] sm:$0xff] }
 0x1a0   :  { %v2749_v22 = vpop.f32.mrf.mxu1  ;;  %v2942_v50 = vpop.f32.mrf.mxu0 }
 0x1a1   :  { %v2750_v33 = vadd.f32 %v2749_v22, %v6647_v11  ;;  %v6877_v18 = vadd.f32 %v2940_v53, %v2748_v30 }
 0x1a2   :  { %v2751_v40 = vpop.f32.mrf.mxu1  ;;  %v2944_v3 = vpop.f32.mrf.mxu0 }
 0x1a3   :  { %v2752_v52 = vadd.f32 %v2751_v40, %v6651_v15  ;;  %v6880_v4 = vadd.f32 %v2942_v50, %v2750_v33  ;;  %v6326_v40 = vld [vmem:[#allocation2 + $0xe8] ss:$48 sps:$4 sm:$0xff]  }
 0x1a4   :  { %v6882_v62 = vpop.f32.mrf.mxu1  ;;  %v6884_v0 = vpop.f32.mrf.mxu0 }
 0x1a5   :  { %8968 = vst [vmem:[#allocation37_spill] sm:$0xff] %v6882_v62  ;;  %8969 = vst [vmem:[#allocation38_spill] sm:$0xff] %v6884_v0  ;;  %v6886_v9 = vadd.f32 %v2944_v3, %v2752_v52  ;;  %v6331_v3 = vld [vmem:[#allocation2 + $0x14c] ss:$48 sps:$4 sm:$0xff]  }
 0x1a6   :  { %v2757_v2 = vpop.f32.mrf.mxu1  ;;  %3448 = vmatmul.mubr.bf16.gmra.mxu1 %v6323_v60  ;;  %v2950_v36 = vpop.f32.mrf.mxu0 }
 0x1a7   :  { %v2758_v11 = vadd.f32 %v2757_v2, %v6659_v25  ;;  %3457 = vmatprep.mubr.bf16.mxu1 %v6328_v24 }
 0x1a8   :  { %v2759_v53 = vpop.f32.mrf.mxu1  ;;  %v2952_v30 = vpop.f32.mrf.mxu0 }
 0x1a9   :  { %v2760_v22 = vadd.f32 %v2759_v53, %v6663_v27  ;;  %v6890_v15 = vadd.f32 %v2950_v36, %v2758_v11 }
 0x1aa   :  { %v2761_v50 = vpop.f32.mrf.mxu1  ;;  %v2954_v33 = vpop.f32.mrf.mxu0 }
 0x1ab   :  { %v2762_v62 = vadd.f32 %v2761_v50, %v6667_v31  ;;  %v6893_v0 = vadd.f32 %v2952_v30, %v2760_v22  ;;  %v6329_v50 = vld [vmem:[#allocation2 + $0x148] ss:$48 sps:$4 sm:$0xff]  }
 0x1ac   :  { %v6895_v52 = vpop.f32.mrf.mxu1  ;;  %v6897_v60 = vpop.f32.mrf.mxu0 }
 0x1ad   :  { %8970 = vst [vmem:[#allocation39_spill] sm:$0xff] %v6895_v52  ;;  %8971 = vst [vmem:[#allocation40_spill] sm:$0xff] %v6897_v60  ;;  %v6899_v25 = vadd.f32 %v2954_v33, %v2762_v62  ;;  %v6334_v62 = vld [vmem:[#allocation2 + $0x1ac] ss:$48 sps:$4 sm:$0xff]  }
 0x1ae   :  { %v2767_v24 = vpop.f32.mrf.mxu1  ;;  %3458 = vmatmul.mubr.bf16.gmra.mxu1 %v6326_v40  ;;  %v2960_v2 = vpop.f32.mrf.mxu0 }
 0x1af   :  { %v2768_v27 = vadd.f32 %v2767_v24, %v6675_v41  ;;  %3467 = vmatprep.mubr.bf16.mxu1 %v6331_v3 }
 0x1b0   :  { %v2769_v36 = vpop.f32.mrf.mxu1  ;;  %v2962_v11 = vpop.f32.mrf.mxu0 }
 0x1b1   :  { %v2770_v53 = vadd.f32 %v2769_v36, %v6679_v43  ;;  %v6903_v31 = vadd.f32 %v2960_v2, %v2768_v27 }
 0x1b2   :  { %v2771_v30 = vpop.f32.mrf.mxu1  ;;  %v2964_v22 = vpop.f32.mrf.mxu0 }
 0x1b3   :  { %v2772_v52 = vadd.f32 %v2771_v30, %v6683_v47  ;;  %v6906_v60 = vadd.f32 %v2962_v11, %v2770_v53  ;;  %v6332_v30 = vld [vmem:[#allocation2 + $0x1a8] ss:$48 sps:$4 sm:$0xff]  }
 0x1b4   :  { %v6908_v33 = vpop.f32.mrf.mxu1  ;;  %v6910_v40 = vpop.f32.mrf.mxu0 }
 0x1b5   :  { %8972 = vst [vmem:[#allocation41_spill] sm:$0xff] %v6908_v33  ;;  %8973 = vst [vmem:[#allocation42_spill] sm:$0xff] %v6910_v40  ;;  %v6912_v41 = vadd.f32 %v2964_v22, %v2772_v52  ;;  %v6337_v52 = vld [vmem:[#allocation2 + $0x20c] ss:$48 sps:$4 sm:$0xff]  }
 0x1b6   :  { %v2777_v3 = vpop.f32.mrf.mxu1  ;;  %3468 = vmatmul.mubr.bf16.gmra.mxu1 %v6329_v50  ;;  %v2970_v24 = vpop.f32.mrf.mxu0 }
 0x1b7   :  { %v2778_v43 = vadd.f32 %v2777_v3, %v6691_v57  ;;  %3477 = vmatprep.mubr.bf16.mxu1 %v6334_v62 }
 0x1b8   :  { %v2779_v2 = vpop.f32.mrf.mxu1  ;;  %v2972_v27 = vpop.f32.mrf.mxu0 }
 0x1b9   :  { %v2780_v36 = vadd.f32 %v2779_v2, %v6695_v59  ;;  %v6916_v47 = vadd.f32 %v2970_v24, %v2778_v43 }
 0x1ba   :  { %v2781_v11 = vpop.f32.mrf.mxu1  ;;  %v2974_v53 = vpop.f32.mrf.mxu0 }
 0x1bb   :  { %v2782_v33 = vadd.f32 %v2781_v11, %v6699_v63  ;;  %v6919_v40 = vadd.f32 %v2972_v27, %v2780_v36  ;;  %v6335_v11 = vld [vmem:[#allocation2 + $0x208] ss:$48 sps:$4 sm:$0xff]  }
 0x1bc   :  { %v6921_v22 = vpop.f32.mrf.mxu1  ;;  %v6923_v50 = vpop.f32.mrf.mxu0 }
 0x1bd   :  { %8974 = vst [vmem:[#allocation43_spill] sm:$0xff] %v6921_v22  ;;  %8975 = vst [vmem:[#allocation44_spill] sm:$0xff] %v6923_v50  ;;  %v6925_v57 = vadd.f32 %v2974_v53, %v2782_v33  ;;  %v8976_v22 = vld [vmem:[#allocation15_spill] sm:$0xff]  ;;  %v6340_v33 = vld [vmem:[#allocation2 + $0x26c] ss:$48 sps:$4 sm:$0xff]  }
 0x1be   :  { %v2787_v62 = vpop.f32.mrf.mxu1  ;;  %3478 = vmatmul.mubr.bf16.gmra.mxu1 %v6332_v30  ;;  %v2980_v3 = vpop.f32.mrf.mxu0 }
 0x1bf   :  { %v2788_v59 = vadd.f32 %v2787_v62, %v6707_v13  ;;  %3487 = vmatprep.mubr.bf16.mxu1 %v6337_v52 }
 0x1c0   :  { %v2789_v24 = vpop.f32.mrf.mxu1  ;;  %v2982_v43 = vpop.f32.mrf.mxu0 }
 0x1c1   :  { %v2790_v2 = vadd.f32 %v2789_v24, %v6711_v17  ;;  %v6929_v63 = vadd.f32 %v2980_v3, %v2788_v59  ;;  %v8979_v17 = vld [vmem:[#allocation17_spill] sm:$0xff] }
 0x1c2   :  { %v2791_v27 = vpop.f32.mrf.mxu1  ;;  %v2984_v36 = vpop.f32.mrf.mxu0 }
 0x1c3   :  { %v2792_v49 = vadd.f32 %v2791_v27, %v8976_v22  ;;  %v6932_v50 = vadd.f32 %v2982_v43, %v2790_v2  ;;  %v6338_v27 = vld [vmem:[#allocation2 + $0x268] ss:$48 sps:$4 sm:$0xff]  }
 0x1c4   :  { %v6934_v53 = vpop.f32.mrf.mxu1  ;;  %v6936_v30 = vpop.f32.mrf.mxu0 }
 0x1c5   :  { %8977 = vst [vmem:[#allocation15_spill] sm:$0xff] %v6934_v53  ;;  %8978 = vst [vmem:[#allocation45_spill] sm:$0xff] %v6936_v30  ;;  %v6938_v13 = vadd.f32 %v2984_v36, %v2792_v49  ;;  %v8981_v53 = vld [vmem:[#allocation19_spill] sm:$0xff]  ;;  %v6343_v49 = vld [vmem:[#allocation2 + $0x2cc] ss:$48 sps:$4 sm:$0xff]  }
 0x1c6   :  { %v2797_v52 = vpop.f32.mrf.mxu1  ;;  %3488 = vmatmul.mubr.bf16.gmra.mxu1 %v6335_v11  ;;  %v2990_v62 = vpop.f32.mrf.mxu0 }
 0x1c7   :  { %v2798_v3 = vadd.f32 %v2797_v52, %v8979_v17  ;;  %3497 = vmatprep.mubr.bf16.mxu1 %v6340_v33 }
 0x1c8   :  { %v2799_v59 = vpop.f32.mrf.mxu1  ;;  %v2992_v24 = vpop.f32.mrf.mxu0 }
 0x1c9   :  { %v2800_v46 = vadd.f32 %v2799_v59, %v8980_v8  ;;  %v6942_v22 = vadd.f32 %v2990_v62, %v2798_v3  ;;  %v8986_v8 = vld [vmem:[#allocation21_spill] sm:$0xff] }
 0x1ca   :  { %v2801_v43 = vpop.f32.mrf.mxu1  ;;  %v2994_v2 = vpop.f32.mrf.mxu0 }
 0x1cb   :  { %v2802_v20 = vadd.f32 %v2801_v43, %v8981_v53  ;;  %v6945_v30 = vadd.f32 %v2992_v24, %v2800_v46  ;;  %v6341_v43 = vld [vmem:[#allocation2 + $0x2c8] ss:$48 sps:$4 sm:$0xff]  }
 0x1cc   :  { %v6947_v36 = vpop.f32.mrf.mxu1  ;;  %v6949_v11 = vpop.f32.mrf.mxu0 }
 0x1cd   :  { %8982 = vst [vmem:[#allocation17_spill] sm:$0xff] %v6945_v30  ;;  %8983 = vst [vmem:[#allocation18_spill] sm:$0xff] %v6947_v36  ;;  %v6951_v52 = vadd.f32 %v2994_v2, %v2802_v20  ;;  %v8989_v36 = vld [vmem:[#allocation23_spill] sm:$0xff]  ;;  %v6346_v20 = vld [vmem:[#allocation2 + $0x32c] ss:$48 sps:$4 sm:$0xff]  }
 0x1ce   :  { %8984 = vst [vmem:[#allocation19_spill] sm:$0xff] %v6949_v11  ;;  %v2807_v33 = vpop.f32.mrf.mxu1  ;;  %3498 = vmatmul.mubr.bf16.gmra.mxu1 %v6338_v27  ;;  %v3000_v17 = vpop.f32.mrf.mxu0 }
 0x1cf   :  { %8985 = vst [vmem:[#allocation46_spill] sm:$0xff] %v6951_v52  ;;  %v2808_v62 = vadd.f32 %v2807_v33, %v8986_v8  ;;  %3507 = vmatprep.mubr.bf16.mxu1 %v6343_v49 }
 0x1d0   :  { %v2809_v3 = vpop.f32.mrf.mxu1  ;;  %v3002_v59 = vpop.f32.mrf.mxu0 }
 0x1d1   :  { %v2810_v39 = vadd.f32 %v2809_v3, %v8987_v23  ;;  %v6955_v53 = vadd.f32 %v3000_v17, %v2808_v62  ;;  %v8993_v23 = vld [vmem:[#allocation25_spill] sm:$0xff] }
 0x1d2   :  { %v2811_v46 = vpop.f32.mrf.mxu1  ;;  %v3004_v24 = vpop.f32.mrf.mxu0 }
 0x1d3   :  { %8988 = vst [vmem:[#allocation21_spill] sm:$0xff] %v6955_v53  ;;  %v2812_v30 = vadd.f32 %v2811_v46, %v8989_v36  ;;  %v6958_v11 = vadd.f32 %v3002_v59, %v2810_v39  ;;  %v8994_v53 = vld [vmem:[#allocation26_spill] sm:$0xff] }
 0x1d4   :  { %v6960_v2 = vpop.f32.mrf.mxu1  ;;  %v6962_v27 = vpop.f32.mrf.mxu0  ;;  %v6344_v46 = vld [vmem:[#allocation2 + $0x328] ss:$48 sps:$4 sm:$0xff]  }
 0x1d5   :  { %8990 = vst [vmem:[#allocation22_spill] sm:$0xff] %v6958_v11  ;;  %8991 = vst [vmem:[#allocation23_spill] sm:$0xff] %v6960_v2  ;;  %v6964_v33 = vadd.f32 %v3004_v24, %v2812_v30  ;;  %v8995_v2 = vld [vmem:[#allocation27_spill] sm:$0xff]  ;;  %v6349_v30 = vld [vmem:[#allocation2 + $0x38c] ss:$48 sps:$4 sm:$0xff]  }
 0x1d6   :  { %8992 = vst [vmem:[#allocation47_spill] sm:$0xff] %v6962_v27  ;;  %v2817_v49 = vpop.f32.mrf.mxu1  ;;  %3508 = vmatmul.mubr.bf16.gmra.mxu1 %v6341_v43  ;;  %v3010_v8 = vpop.f32.mrf.mxu0 }
 0x1d7   :  { %v2818_v17 = vadd.f32 %v2817_v49, %v8993_v23  ;;  %3517 = vmatprep.mubr.bf16.mxu1 %v6346_v20 }
 0x1d8   :  { %v2819_v62 = vpop.f32.mrf.mxu1  ;;  %v3012_v3 = vpop.f32.mrf.mxu0 }
 0x1d9   :  { %v2820_v52 = vadd.f32 %v2819_v62, %v8994_v53  ;;  %v6968_v36 = vadd.f32 %v3010_v8, %v2818_v17 }
 0x1da   :  { %v2821_v39 = vpop.f32.mrf.mxu1  ;;  %v3014_v59 = vpop.f32.mrf.mxu0 }
 0x1db   :  { %v2822_v11 = vadd.f32 %v2821_v39, %v8995_v2  ;;  %v6971_v27 = vadd.f32 %v3012_v3, %v2820_v52  ;;  %v6347_v39 = vld [vmem:[#allocation2 + $0x388] ss:$48 sps:$4 sm:$0xff]  }
 0x1dc   :  { %v6973_v24 = vpop.f32.mrf.mxu1  ;;  %v6975_v43 = vpop.f32.mrf.mxu0 }
 0x1dd   :  { %8996 = vst [vmem:[#allocation25_spill] sm:$0xff] %v6973_v24  ;;  %8997 = vst [vmem:[#allocation26_spill] sm:$0xff] %v6975_v43  ;;  %v6977_v49 = vadd.f32 %v3014_v59, %v2822_v11  ;;  %v6352_v11 = vld [vmem:[#allocation2 + $0x3ec] ss:$48 sps:$4 sm:$0xff]  }
 0x1de   :  { %v3053_v20 = vpop.f32.mrf.mxu1  ;;  %3518 = vmatmul.mubr.bf16.gmra.mxu1 %v6344_v46  ;;  %v3246_v23 = vpop.f32.mrf.mxu0 }
 0x1df   :  { %v3054_v53 = vadd.f32 %v3053_v20, %v6773_v29  ;;  %3527 = vmatprep.mubr.bf16.mxu1 %v6349_v30 }
 0x1e0   :  { %v3055_v8 = vpop.f32.mrf.mxu1  ;;  %v3248_v17 = vpop.f32.mrf.mxu0 }
 0x1e1   :  { %v3056_v62 = vadd.f32 %v3055_v8, %v6776_v45  ;;  %v6981_v2 = vadd.f32 %v3246_v23, %v3054_v53 }
 0x1e2   :  { %v3057_v52 = vpop.f32.mrf.mxu1  ;;  %v3250_v3 = vpop.f32.mrf.mxu0 }
 0x1e3   :  { %v3058_v24 = vadd.f32 %v3057_v52, %v6779_v51  ;;  %v6984_v43 = vadd.f32 %v3248_v17, %v3056_v62 }
 0x1e4   :  { %v3059_v59 = vpop.f32.mrf.mxu1  ;;  %v6986_v46 = vpop.f32.mrf.mxu0 }
 0x1e5   :  { %8998 = vst [vmem:[#allocation27_spill] sm:$0xff] %v6986_v46  ;;  %v6989_v29 = vadd.f32 %v3059_v59, %v6782_v1  ;;  %v6991_v30 = vadd.f32 %v3250_v3, %v3058_v24  ;;  %v6350_v46 = vld [vmem:[#allocation2 + $0x3e8] ss:$48 sps:$4 sm:$0xff]   ;;  %v6355_v24 = vld [vmem:[#allocation2 + $0x44c] ss:$48 sps:$4 sm:$0xff]  }
 0x1e6   :  { %v3063_v20 = vpop.f32.mrf.mxu1  ;;  %3528 = vmatmul.mubr.bf16.gmra.mxu1 %v6347_v39  ;;  %v3256_v45 = vpop.f32.mrf.mxu0 }
 0x1e7   :  { %8999 = vst [vmem:[#allocation48_spill] sm:$0xff] %v6989_v29  ;;  %v3064_v23 = vadd.f32 %v3063_v20, %v6785_v19  ;;  %3537 = vmatprep.mubr.bf16.mxu1 %v6352_v11 }
 0x1e8   :  { %v3065_v53 = vpop.f32.mrf.mxu1  ;;  %v3258_v8 = vpop.f32.mrf.mxu0 }
 0x1e9   :  { %v3066_v51 = vadd.f32 %v3065_v53, %v6788_v35  ;;  %v6995_v17 = vadd.f32 %v3256_v45, %v3064_v23 }
 0x1ea   :  { %v3067_v62 = vpop.f32.mrf.mxu1  ;;  %v3260_v52 = vpop.f32.mrf.mxu0 }
 0x1eb   :  { %v3068_v1 = vadd.f32 %v3067_v62, %v6791_v21  ;;  %v6998_v59 = vadd.f32 %v3258_v8, %v3066_v51 }
 0x1ec   :  { %v3069_v3 = vpop.f32.mrf.mxu1  ;;  %v7000_v39 = vpop.f32.mrf.mxu0 }
 0x1ed   :  { %9000 = vst [vmem:[#allocation49_spill] sm:$0xff] %v7000_v39  ;;  %v7003_v19 = vadd.f32 %v3069_v3, %v6794_v61  ;;  %v7005_v11 = vadd.f32 %v3260_v52, %v3068_v1  ;;  %v6353_v39 = vld [vmem:[#allocation2 + $0x448] ss:$48 sps:$4 sm:$0xff]   ;;  %v6358_v52 = vld [vmem:[#allocation2 + $0x4ac] ss:$48 sps:$4 sm:$0xff]  }
 0x1ee   :  { %v3073_v20 = vpop.f32.mrf.mxu1  ;;  %3538 = vmatmul.mubr.bf16.gmra.mxu1 %v6350_v46  ;;  %v3266_v35 = vpop.f32.mrf.mxu0 }
 0x1ef   :  { %9001 = vst [vmem:[#allocation50_spill] sm:$0xff] %v7003_v19  ;;  %v3074_v45 = vadd.f32 %v3073_v20, %v6797_v5  ;;  %3547 = vmatprep.mubr.bf16.mxu1 %v6355_v24 }
 0x1f0   :  { %v3075_v23 = vpop.f32.mrf.mxu1  ;;  %v3268_v53 = vpop.f32.mrf.mxu0 }
 0x1f1   :  { %v3076_v21 = vadd.f32 %v3075_v23, %v6800_v10  ;;  %v7009_v8 = vadd.f32 %v3266_v35, %v3074_v45 }
 0x1f2   :  { %v3077_v51 = vpop.f32.mrf.mxu1  ;;  %v3270_v62 = vpop.f32.mrf.mxu0 }
 0x1f3   :  { %v3078_v61 = vadd.f32 %v3077_v51, %v6803_v26  ;;  %v7012_v3 = vadd.f32 %v3268_v53, %v3076_v21 }
 0x1f4   :  { %v3079_v1 = vpop.f32.mrf.mxu1  ;;  %v7014_v46 = vpop.f32.mrf.mxu0 }
 0x1f5   :  { %9002 = vst [vmem:[#allocation51_spill] sm:$0xff] %v7014_v46  ;;  %v7017_v5 = vadd.f32 %v3079_v1, %v6806_v12  ;;  %v7019_v24 = vadd.f32 %v3270_v62, %v3078_v61  ;;  %v6356_v46 = vld [vmem:[#allocation2 + $0x4a8] ss:$48 sps:$4 sm:$0xff]   ;;  %v6361_v62 = vld [vmem:[#allocation2 + $0x50c] ss:$48 sps:$4 sm:$0xff]  }
 0x1f6   :  { %v3083_v20 = vpop.f32.mrf.mxu1  ;;  %3548 = vmatmul.mubr.bf16.gmra.mxu1 %v6353_v39  ;;  %v3276_v10 = vpop.f32.mrf.mxu0 }
 0x1f7   :  { %9003 = vst [vmem:[#allocation52_spill] sm:$0xff] %v7017_v5  ;;  %v3084_v35 = vadd.f32 %v3083_v20, %v6809_v37  ;;  %3557 = vmatprep.mubr.bf16.mxu1 %v6358_v52 }
 0x1f8   :  { %v3085_v45 = vpop.f32.mrf.mxu1  ;;  %v3278_v23 = vpop.f32.mrf.mxu0 }
 0x1f9   :  { %v3086_v26 = vadd.f32 %v3085_v45, %v6812_v7  ;;  %v7023_v53 = vadd.f32 %v3276_v10, %v3084_v35 }
 0x1fa   :  { %v3087_v21 = vpop.f32.mrf.mxu1  ;;  %v3280_v51 = vpop.f32.mrf.mxu0 }
 0x1fb   :  { %v3088_v12 = vadd.f32 %v3087_v21, %v6815_v42  ;;  %v7026_v1 = vadd.f32 %v3278_v23, %v3086_v26 }
 0x1fc   :  { %v3089_v61 = vpop.f32.mrf.mxu1  ;;  %v7028_v39 = vpop.f32.mrf.mxu0 }
 0x1fd   :  { %9004 = vst [vmem:[#allocation53_spill] sm:$0xff] %v7028_v39  ;;  %v7031_v37 = vadd.f32 %v3089_v61, %v6818_v28  ;;  %v7033_v52 = vadd.f32 %v3280_v51, %v3088_v12  ;;  %v6359_v39 = vld [vmem:[#allocation2 + $0x508] ss:$48 sps:$4 sm:$0xff]   ;;  %v6364_v51 = vld [vmem:[#allocation2 + $0x56c] ss:$48 sps:$4 sm:$0xff]  }
 0x1fe   :  { %v3093_v20 = vpop.f32.mrf.mxu1  ;;  %3558 = vmatmul.mubr.bf16.gmra.mxu1 %v6356_v46  ;;  %v3286_v7 = vpop.f32.mrf.mxu0 }
 0x1ff   :  { %9005 = vst [vmem:[#allocation54_spill] sm:$0xff] %v7031_v37  ;;  %v3094_v10 = vadd.f32 %v3093_v20, %v6821_v16  ;;  %3567 = vmatprep.mubr.bf16.mxu1 %v6361_v62 }
 0x200   :  { %v3095_v35 = vpop.f32.mrf.mxu1  ;;  %v3288_v45 = vpop.f32.mrf.mxu0 }
 0x201   :  { %v3096_v42 = vadd.f32 %v3095_v35, %v6824_v34  ;;  %v7037_v23 = vadd.f32 %v3286_v7, %v3094_v10 }
 0x202   :  { %v3097_v26 = vpop.f32.mrf.mxu1  ;;  %v3290_v21 = vpop.f32.mrf.mxu0 }
 0x203   :  { %v3098_v28 = vadd.f32 %v3097_v26, %v6831_v58  ;;  %v7040_v61 = vadd.f32 %v3288_v45, %v3096_v42  ;;  %v6362_v26 = vld [vmem:[#allocation2 + $0x568] ss:$48 sps:$4 sm:$0xff]  }
 0x204   :  { %v7042_v12 = vpop.f32.mrf.mxu1  ;;  %v7044_v46 = vpop.f32.mrf.mxu0 }
 0x205   :  { %v7046_v16 = vadd.f32 %v3290_v21, %v3098_v28  ;;  %v6367_v21 = vld [vmem:[#allocation2 + $0x5cc] ss:$48 sps:$4 sm:$0xff]  }
 0x206   :  { %v3103_v62 = vpop.f32.mrf.mxu1  ;;  %3568 = vmatmul.mubr.bf16.gmra.mxu1 %v6359_v39  ;;  %v3296_v20 = vpop.f32.mrf.mxu0 }
 0x207   :  { %v3104_v34 = vadd.f32 %v3103_v62, %v6835_v48  ;;  %3577 = vmatprep.mubr.bf16.mxu1 %v6364_v51 }
 0x208   :  { %v3105_v7 = vpop.f32.mrf.mxu1  ;;  %v3298_v10 = vpop.f32.mrf.mxu0 }
 0x209   :  { %v3106_v35 = vadd.f32 %v3105_v7, %v6838_v38  ;;  %v7050_v58 = vadd.f32 %v3296_v20, %v3104_v34 }
 0x20a   :  { %v3107_v45 = vpop.f32.mrf.mxu1  ;;  %v3300_v42 = vpop.f32.mrf.mxu0 }
 0x20b   :  { %v3108_v37 = vadd.f32 %v3107_v45, %v6845_v14  ;;  %v7053_v5 = vadd.f32 %v3298_v10, %v3106_v35  ;;  %v6365_v45 = vld [vmem:[#allocation2 + $0x5c8] ss:$48 sps:$4 sm:$0xff]  }
 0x20c   :  { %v7055_v28 = vpop.f32.mrf.mxu1  ;;  %v7057_v39 = vpop.f32.mrf.mxu0 }
 0x20d   :  { %v7059_v48 = vadd.f32 %v3300_v42, %v3108_v37 }
 0x20e   :  { %v3113_v51 = vpop.f32.mrf.mxu1  ;;  %3578 = vmatmul.mubr.bf16.gmra.mxu1 %v6362_v26  ;;  %v3306_v62 = vpop.f32.mrf.mxu0 }
 0x20f   :  { %v3114_v38 = vadd.f32 %v3113_v51, %v6849_v44  ;;  %3587 = vmatprep.mubr.bf16.mxu1 %v6367_v21 }
 0x210   :  { %v3115_v20 = vpop.f32.mrf.mxu1  ;;  %v3308_v34 = vpop.f32.mrf.mxu0 }
 0x211   :  { %v3116_v7 = vadd.f32 %v3115_v20, %v6852_v6  ;;  %v7063_v14 = vadd.f32 %v3306_v62, %v3114_v38 }
 0x212   :  { %v3117_v10 = vpop.f32.mrf.mxu1  ;;  %v3310_v35 = vpop.f32.mrf.mxu0 }
 0x213   :  { %v3118_v19 = vadd.f32 %v3117_v10, %v6859_v54  ;;  %v7066_v29 = vadd.f32 %v3308_v34, %v3116_v7 }
 0x214   :  { %v7068_v37 = vpop.f32.mrf.mxu1  ;;  %v7070_v42 = vpop.f32.mrf.mxu0 }
 0x215   :  { %9006 = vst [vmem:[#allocation55_spill] sm:$0xff] %v7070_v42  ;;  %v7072_v26 = vadd.f32 %v3310_v35, %v3118_v19 }
 0x216   :  { %v3123_v44 = vpop.f32.mrf.mxu1  ;;  %3588 = vmatmul.mubr.bf16.gmra.mxu1 %v6365_v45  ;;  %v3316_v21 = vpop.f32.mrf.mxu0 }
 0x217   :  { %9007 = vst [vmem:[#allocation56_spill] sm:$0xff] %v7072_v26  ;;  %v3124_v6 = vadd.f32 %v3123_v44, %v6863_v56 }
 0x218   :  { %v3125_v51 = vpop.f32.mrf.mxu1  ;;  %v3318_v62 = vpop.f32.mrf.mxu0 }
 0x219   :  { %v3126_v38 = vadd.f32 %v3125_v51, %v6866_v32  ;;  %v7076_v20 = vadd.f32 %v3316_v21, %v3124_v6 }
 0x21a   :  { %v3127_v54 = vpop.f32.mrf.mxu1  ;;  %v3320_v34 = vpop.f32.mrf.mxu0 }
 0x21b   :  { %v3128_v7 = vadd.f32 %v3127_v54, %v6873_v55  ;;  %v7079_v10 = vadd.f32 %v3318_v62, %v3126_v38 }
 0x21c   :  { %v7081_v42 = vpop.f32.mrf.mxu1  ;;  %v7083_v19 = vpop.f32.mrf.mxu0 }
 0x21d   :  { %9008 = vst [vmem:[#allocation57_spill] sm:$0xff] %v7083_v19  ;;  %v7085_v35 = vadd.f32 %v3320_v34, %v3128_v7 }
 0x21e   :  { %v3133_v45 = vpop.f32.mrf.mxu1  ;;  %v3326_v56 = vpop.f32.mrf.mxu0 }
 0x21f   :  { %9009 = vst [vmem:[#allocation58_spill] sm:$0xff] %v7085_v35  ;;  %v3134_v44 = vadd.f32 %v3133_v45, %v6877_v18 }
 0x220   :  { %v3135_v26 = vpop.f32.mrf.mxu1  ;;  %v3328_v32 = vpop.f32.mrf.mxu0 }
 0x221   :  { %v3136_v21 = vadd.f32 %v3135_v26, %v6880_v4  ;;  %v7089_v6 = vadd.f32 %v3326_v56, %v3134_v44 }
 0x222   :  { %v3137_v51 = vpop.f32.mrf.mxu1  ;;  %v3330_v55 = vpop.f32.mrf.mxu0 }
 0x223   :  { %v3138_v62 = vadd.f32 %v3137_v51, %v6886_v9  ;;  %v7092_v38 = vadd.f32 %v3328_v32, %v3136_v21 }
 0x224   :  { %v7094_v54 = vpop.f32.mrf.mxu1  ;;  %v7096_v34 = vpop.f32.mrf.mxu0 }
 0x225   :  { %v7098_v7 = vadd.f32 %v3330_v55, %v3138_v62 }
 0x226   :  { %v3143_v35 = vpop.f32.mrf.mxu1  ;;  %v3336_v18 = vpop.f32.mrf.mxu0 }
 0x227   :  { %9010 = vst [vmem:[#allocation59_spill] sm:$0xff] %v7098_v7  ;;  %v3144_v45 = vadd.f32 %v3143_v35, %v6890_v15 }
 0x228   :  { %v3145_v19 = vpop.f32.mrf.mxu1  ;;  %v3338_v4 = vpop.f32.mrf.mxu0 }
 0x229   :  { %v3146_v26 = vadd.f32 %v3145_v19, %v6893_v0  ;;  %v7102_v56 = vadd.f32 %v3336_v18, %v3144_v45 }
 0x22a   :  { %v3147_v44 = vpop.f32.mrf.mxu1  ;;  %v3340_v9 = vpop.f32.mrf.mxu0 }
 0x22b   :  { %v3148_v32 = vadd.f32 %v3147_v44, %v6899_v25  ;;  %v7105_v21 = vadd.f32 %v3338_v4, %v3146_v26 }
 0x22c   :  { %v7107_v51 = vpop.f32.mrf.mxu1  ;;  %v7109_v55 = vpop.f32.mrf.mxu0 }
 0x22d   :  { %v7111_v62 = vadd.f32 %v3340_v9, %v3148_v32 }
 0x22e   :  { %v3153_v7 = vpop.f32.mrf.mxu1  ;;  %v7113_v15 = vpop.f32.mrf.mxu0 }
 0x22f   :  { %9011 = vst [vmem:[#allocation60_spill] sm:$0xff] %v7113_v15  ;;  %v7116_v35 = vadd.f32 %v3153_v7, %v6903_v31 }
 0x230   :  { %v3155_v0 = vpop.f32.mrf.mxu1  ;;  %v3348_v19 = vpop.f32.mrf.mxu0 }
 0x231   :  { %9012 = vst [vmem:[#allocation61_spill] sm:$0xff] %v7116_v35  ;;  %v3156_v18 = vadd.f32 %v3155_v0, %v6906_v60 }
 0x232   :  { %v3157_v45 = vpop.f32.mrf.mxu1  ;;  %v7119_v25 = vpop.f32.mrf.mxu0 }
 0x233   :  { %9013 = vst [vmem:[#allocation62_spill] sm:$0xff] %v7119_v25  ;;  %v7122_v4 = vadd.f32 %v3157_v45, %v6912_v41  ;;  %v7124_v26 = vadd.f32 %v3348_v19, %v3156_v18 }
 0x234   :  { %v7126_v44 = vpop.f32.mrf.mxu1  ;;  %v7128_v9 = vpop.f32.mrf.mxu0 }
 0x235   :  { %9014 = vst [vmem:[#allocation63_spill] sm:$0xff] %v7128_v9 }
 0x236   :  { %v3163_v32 = vpop.f32.mrf.mxu1  ;;  %v7130_v15 = vpop.f32.mrf.mxu0 }
 0x237   :  { %9015 = vst [vmem:[#allocation64_spill] sm:$0xff] %v7130_v15  ;;  %v7133_v31 = vadd.f32 %v3163_v32, %v6916_v47 }
 0x238   :  { %v3165_v7 = vpop.f32.mrf.mxu1  ;;  %v3358_v60 = vpop.f32.mrf.mxu0 }
 0x239   :  { %9016 = vst [vmem:[#allocation65_spill] sm:$0xff] %v7133_v31  ;;  %v3166_v0 = vadd.f32 %v3165_v7, %v6919_v40 }
 0x23a   :  { %v3167_v25 = vpop.f32.mrf.mxu1  ;;  %v7136_v35 = vpop.f32.mrf.mxu0 }
 0x23b   :  { %9017 = vst [vmem:[#allocation66_spill] sm:$0xff] %v7136_v35  ;;  %v7139_v41 = vadd.f32 %v3167_v25, %v6925_v57  ;;  %v7141_v19 = vadd.f32 %v3358_v60, %v3166_v0 }
 0x23c   :  { %v7143_v18 = vpop.f32.mrf.mxu1  ;;  %v7145_v45 = vpop.f32.mrf.mxu0 }
 0x23d   :  { %9018 = vst [vmem:[#allocation67_spill] sm:$0xff] %v7141_v19  ;;  %9019 = vst [vmem:[#allocation68_spill] sm:$0xff] %v7145_v45 }
 0x23e   :  { %v3173_v15 = vpop.f32.mrf.mxu1  ;;  %v7147_v9 = vpop.f32.mrf.mxu0 }
 0x23f   :  { %9020 = vst [vmem:[#allocation69_spill] sm:$0xff] %v7147_v9  ;;  %v7150_v47 = vadd.f32 %v3173_v15, %v6929_v63 }
 0x240   :  { %v3175_v32 = vpop.f32.mrf.mxu1  ;;  %v3368_v40 = vpop.f32.mrf.mxu0 }
 0x241   :  { %9021 = vst [vmem:[#allocation70_spill] sm:$0xff] %v7150_v47  ;;  %v3176_v7 = vadd.f32 %v3175_v32, %v6932_v50  ;;  %v9029_v32 = vld [vmem:[#allocation17_spill] sm:$0xff] }
 0x242   :  { %v3177_v35 = vpop.f32.mrf.mxu1  ;;  %v7153_v31 = vpop.f32.mrf.mxu0 }
 0x243   :  { %9022 = vst [vmem:[#allocation71_spill] sm:$0xff] %v7153_v31  ;;  %v7156_v57 = vadd.f32 %v3177_v35, %v6938_v13  ;;  %v7158_v25 = vadd.f32 %v3368_v40, %v3176_v7  ;;  %v9031_v13 = vld [vmem:[#allocation46_spill] sm:$0xff] }
 0x244   :  { %v7160_v60 = vpop.f32.mrf.mxu1  ;;  %v7162_v0 = vpop.f32.mrf.mxu0 }
 0x245   :  { %9023 = vst [vmem:[#allocation72_spill] sm:$0xff] %v7156_v57  ;;  %9024 = vst [vmem:[#allocation73_spill] sm:$0xff] %v7158_v25 }
 0x246   :  { %9025 = vst [vmem:[#allocation74_spill] sm:$0xff] %v7160_v60  ;;  %9026 = vst [vmem:[#allocation75_spill] sm:$0xff] %v7162_v0  ;;  %v3183_v9 = vpop.f32.mrf.mxu1  ;;  %v7164_v45 = vpop.f32.mrf.mxu0 }
 0x247   :  { %9027 = vst [vmem:[#allocation76_spill] sm:$0xff] %v7164_v45  ;;  %v7167_v63 = vadd.f32 %v3183_v9, %v6942_v22  ;;  %v9034_v22 = vld [vmem:[#allocation21_spill] sm:$0xff] }
 0x248   :  { %v3185_v15 = vpop.f32.mrf.mxu1  ;;  %v3378_v50 = vpop.f32.mrf.mxu0 }
 0x249   :  { %9028 = vst [vmem:[#allocation77_spill] sm:$0xff] %v7167_v63  ;;  %v3186_v47 = vadd.f32 %v3185_v15, %v9029_v32  ;;  %v9035_v32 = vld [vmem:[#allocation22_spill] sm:$0xff] }
 0x24a   :  { %v3187_v31 = vpop.f32.mrf.mxu1  ;;  %v7170_v19 = vpop.f32.mrf.mxu0 }
 0x24b   :  { %9030 = vst [vmem:[#allocation17_spill] sm:$0xff] %v7170_v19  ;;  %v7173_v35 = vadd.f32 %v3187_v31, %v9031_v13  ;;  %v7175_v40 = vadd.f32 %v3378_v50, %v3186_v47 }
 0x24c   :  { %v7177_v7 = vpop.f32.mrf.mxu1  ;;  %v7179_v0 = vpop.f32.mrf.mxu0 }
 0x24d   :  { %9032 = vst [vmem:[#allocation46_spill] sm:$0xff] %v7179_v0 }
 0x24e   :  { %v3193_v45 = vpop.f32.mrf.mxu1  ;;  %v7181_v25 = vpop.f32.mrf.mxu0 }
 0x24f   :  { %9033 = vst [vmem:[#allocation78_spill] sm:$0xff] %v7181_v25  ;;  %v7184_v9 = vadd.f32 %v3193_v45, %v9034_v22 }
 0x250   :  { %v3195_v63 = vpop.f32.mrf.mxu1  ;;  %v3388_v15 = vpop.f32.mrf.mxu0 }
 0x251   :  { %v3196_v57 = vadd.f32 %v3195_v63, %v9035_v32 }
 0x252   :  { %v3197_v19 = vpop.f32.mrf.mxu1  ;;  %v7187_v60 = vpop.f32.mrf.mxu0 }
 0x253   :  { %9036 = vst [vmem:[#allocation21_spill] sm:$0xff] %v7187_v60  ;;  %v7190_v31 = vadd.f32 %v3197_v19, %v6964_v33  ;;  %v7192_v47 = vadd.f32 %v3388_v15, %v3196_v57 }
 0x254   :  { %v7194_v50 = vpop.f32.mrf.mxu1  ;;  %v7196_v13 = vpop.f32.mrf.mxu0 }
 0x255   :  { %9037 = vst [vmem:[#allocation22_spill] sm:$0xff] %v7196_v13 }
 0x256   :  { %v3203_v25 = vpop.f32.mrf.mxu1  ;;  %v7198_v0 = vpop.f32.mrf.mxu0 }
 0x257   :  { %9038 = vst [vmem:[#allocation79_spill] sm:$0xff] %v7198_v0  ;;  %v7201_v45 = vadd.f32 %v3203_v25, %v6968_v36 }
 0x258   :  { %v3205_v22 = vpop.f32.mrf.mxu1  ;;  %v3398_v63 = vpop.f32.mrf.mxu0 }
 0x259   :  { %9039 = vst [vmem:[#allocation80_spill] sm:$0xff] %v7201_v45  ;;  %v3206_v32 = vadd.f32 %v3205_v22, %v6971_v27 }
 0x25a   :  { %v3207_v60 = vpop.f32.mrf.mxu1 }
 0x25b   :  { %v7205_v33 = vadd.f32 %v3207_v60, %v6977_v49  ;;  %v7207_v19 = vadd.f32 %v3398_v63, %v3206_v32 }
 0x25c   :  { %v7209_v57 = vpop.f32.mrf.mxu1 }
 0x25d   :  { %9040 = vst [vmem:[#allocation81_spill] sm:$0xff] %v7209_v57 }
 0x25e   :  { %v3439_v15 = vpop.f32.mrf.mxu1 }
 0x25f   :  { %v7212_v13 = vadd.f32 %v3439_v15, %v6981_v2 }
 0x260   :  { %v3441_v0 = vpop.f32.mrf.mxu1 }
 0x261   :  { %v7215_v36 = vadd.f32 %v3441_v0, %v6984_v43 }
 0x262   :  { %v3443_v25 = vpop.f32.mrf.mxu1 }
 0x263   :  { %v7218_v45 = vadd.f32 %v3443_v25, %v6991_v30 }
 0x264   :  { %v7220_v27 = vpop.f32.mrf.mxu1 }
 0x266   :  { %v3449_v60 = vpop.f32.mrf.mxu1 }
 0x267   :  { %v7225_v22 = vadd.f32 %v3449_v60, %v6995_v17 }
 0x268   :  { %v3451_v63 = vpop.f32.mrf.mxu1 }
 0x269   :  { %v7228_v2 = vadd.f32 %v3451_v63, %v6998_v59 }
 0x26a   :  { %v3453_v32 = vpop.f32.mrf.mxu1 }
 0x26b   :  { %9041 = vst [vmem:[#allocation82_spill] sm:$0xff] %v7228_v2  ;;  %v7231_v43 = vadd.f32 %v3453_v32, %v7005_v11  ;;  %v9047_v11 = vld [vmem:[#allocation30_spill] sm:$0xff]  ;;  %v9050_v2 = vld [vmem:[#allocation31_spill] sm:$0xff] }
 0x26c   :  { %v7233_v0 = vpop.f32.mrf.mxu1 }
 0x26d   :  { %9042 = vst [vmem:[#allocation83_spill] sm:$0xff] %v7233_v0 }
 0x26e   :  { %v3459_v15 = vpop.f32.mrf.mxu1 }
 0x26f   :  { %v7238_v25 = vadd.f32 %v3459_v15, %v7009_v8 }
 0x270   :  { %v3461_v49 = vpop.f32.mrf.mxu1 }
 0x271   :  { %v7241_v17 = vadd.f32 %v3461_v49, %v7012_v3 }
 0x272   :  { %v3463_v60 = vpop.f32.mrf.mxu1 }
 0x273   :  { %9043 = vst [vmem:[#allocation84_spill] sm:$0xff] %v7241_v17  ;;  %v7244_v59 = vadd.f32 %v3463_v60, %v7019_v24  ;;  %v7262_v24 = vld [vmem:[%s8830_s1 + $0x8] sm:$0xff] }
 0x274   :  { %v7246_v63 = vpop.f32.mrf.mxu1  ;;  %v8839_v60 = vunpack.c.l.s8.bf16 %v7262_v24 }
 0x275   :  { %9044 = vst [vmem:[#allocation85_spill] sm:$0xff] %v7246_v63 }
 0x276   :  { %v3469_v32 = vpop.f32.mrf.mxu1  ;;  %3685 = vmatprep.mubr.bf16.mxu0 %v8839_v60 }
 0x277   :  { %v7251_v30 = vadd.f32 %v3469_v32, %v7023_v53  ;;  %v9048_v53 = vld [vmem:[#allocation29_spill] sm:$0xff] }
 0x278   :  { %v3471_v57 = vpop.f32.mrf.mxu1  ;;  %v2907_v32 = vadd.f32 %v9048_v53, %v9047_v11 }
 0x279   :  { %v7254_v8 = vadd.f32 %v3471_v57, %v7026_v1  ;;  %v9049_v1 = vld [vmem:[#allocation32_spill] sm:$0xff] }
 0x27a   :  { %v3473_v15 = vpop.f32.mrf.mxu1  ;;  %v2917_v0 = vadd.f32 %v9050_v2, %v9049_v1  ;;  %v9052_v1 = vld [vmem:[#allocation33_spill] sm:$0xff] }
 0x27b   :  { %9045 = vst [vmem:[#allocation86_spill] sm:$0xff] %v7254_v8  ;;  %v7257_v3 = vadd.f32 %v3473_v15, %v7033_v52  ;;  %v3100_v52 = vadd.f32 %v7042_v12, %v2907_v32 }
 0x27c   :  { %v7264_v49 = vpop.f32.mrf.mxu1 }
 0x27d   :  { %9046 = vst [vmem:[#allocation87_spill] sm:$0xff] %v7264_v49  ;;  %v3293_v63 = vadd.f32 %v7044_v46, %v3100_v52  ;;  %v296_v46 = vld [vmem:[%s8831_s2] sm:$0xff] }
 0x27e   :  { %v3479_v57 = vpop.f32.mrf.mxu1 }
 0x27f   :  { %v7275_v15 = vadd.f32 %v3479_v57, %v7037_v23  ;;  %v3110_v57 = vadd.f32 %v7055_v28, %v2917_v0 }
 0x280   :  { %v3481_v8 = vpop.f32.mrf.mxu1 }
 0x281   :  { %v7278_v49 = vadd.f32 %v3481_v8, %v7040_v61  ;;  %v9051_v8 = vld [vmem:[#allocation34_spill] sm:$0xff] }
 0x282   :  { %v3483_v17 = vpop.f32.mrf.mxu1  ;;  %v2927_v52 = vadd.f32 %v9052_v1, %v9051_v8  ;;  %v9054_v8 = vld [vmem:[#allocation56_spill] sm:$0xff] }
 0x283   :  { %v7282_v11 = vadd.f32 %v3483_v17, %v7046_v16  ;;  %v8837_v17 = vmov 0  }
 0x284   :  { %v3485_v53 = vpop.f32.mrf.mxu1  ;;  %5790 = vset.pattern.permute.xlu0 %v8837_v17  ;;  %5791 = vset.pattern.permute.xlu1 %v8837_v17 }
 0x285   :  { %v7288_v32 = vadd.f32 %v3485_v53, %v3293_v63  ;;  %3816 = vperm.xlu0 %5790, %v296_v46   ;;  %4214 = vmatprep.mubr.bf16.mxu1 %v8837_v17  ;;  %v3120_v46 = vadd.f32 %v7068_v37, %v2927_v52  ;;  %v300_v37 = vld [vmem:[%s8831_s2 + $0x20] sm:$0xff] }
 0x286   :  { %v3489_v23 = vpop.f32.mrf.mxu1  ;;  %v9056_v17 = vld [vmem:[#allocation35_spill] sm:$0xff] }
 0x287   :  { %v7292_v61 = vadd.f32 %v3489_v23, %v7050_v58  ;;  %v3303_v58 = vadd.f32 %v7057_v39, %v3110_v57  ;;  %v297_v39 = vld [vmem:[%s8831_s2 + $0x8] sm:$0xff] }
 0x288   :  { %v3491_v16 = vpop.f32.mrf.mxu1 }
 0x289   :  { %v7300_v2 = vadd.f32 %v3491_v16, %v7053_v5  ;;  %3821 = vperm.xlu0 %5790, %v297_v39  }
 0x28a   :  { %v3493_v28 = vpop.f32.mrf.mxu1 }
 0x28b   :  { %v7305_v0 = vadd.f32 %v3493_v28, %v7059_v48  ;;  %v298_v48 = vld [vmem:[%s8831_s2 + $0x10] sm:$0xff] }
 0x28c   :  { %v3495_v63 = vpop.f32.mrf.mxu1  ;;  %3826 = vperm.xlu1 %5791, %v298_v48  }
 0x28d   :  { %v7311_v23 = vadd.f32 %v3495_v63, %v3303_v58  ;;  %v9053_v58 = vld [vmem:[#allocation55_spill] sm:$0xff]  ;;  %3836 = vperm.xlu0 %5790, %v300_v37   ;;  %v302_v37 = vld [vmem:[%s8831_s2 + $0x30] sm:$0xff] }
 0x28e   :  { %v3499_v5 = vpop.f32.mrf.mxu1  ;;  %v3313_v63 = vadd.f32 %v9053_v58, %v3120_v46  ;;  %v299_v46 = vld [vmem:[%s8831_s2 + $0x18] sm:$0xff]  ;;  %v9058_v58 = vld [vmem:[#allocation37_spill] sm:$0xff] }
 0x28f   :  { %v7315_v16 = vadd.f32 %v3499_v5, %v7063_v14  ;;  %v9055_v5 = vld [vmem:[#allocation36_spill] sm:$0xff] }
 0x290   :  { %v3501_v57 = vpop.f32.mrf.mxu1  ;;  %v2937_v60 = vadd.f32 %v9056_v17, %v9055_v5  ;;  %3831 = vperm.xlu1 %5791, %v299_v46  }
 0x291   :  { %v7324_v28 = vadd.f32 %v3501_v57, %v7066_v29  ;;  %3846 = vperm.xlu0 %5790, %v302_v37  }
 0x292   :  { %v3503_v14 = vpop.f32.mrf.mxu1  ;;  %v3130_v57 = vadd.f32 %v7081_v42, %v2937_v60  ;;  %v301_v42 = vld [vmem:[%s8831_s2 + $0x28] sm:$0xff] }
 0x293   :  { %v7331_v1 = vadd.f32 %v3503_v14, %v9054_v8  ;;  %v9057_v14 = vld [vmem:[#allocation11_spill] sm:$0xff] }
 0x294   :  { %v3505_v52 = vpop.f32.mrf.mxu1  ;;  %3841 = vperm.xlu1 %5791, %v301_v42   ;;  %v306_v42 = vld [vmem:[%s8831_s2 + $0x50] sm:$0xff] }
 0x295   :  { %v7337_v29 = vadd.f32 %v3505_v52, %v3313_v63  ;;  %v2754_v63 = vadd.f32 %v9058_v58, %v9057_v14  ;;  %v9060_v52 = vld [vmem:[#allocation57_spill] sm:$0xff]  ;;  %v9062_v14 = vld [vmem:[#allocation38_spill] sm:$0xff] }
 0x296   :  { %v3509_v48 = vpop.f32.mrf.mxu1  ;;  %v3323_v5 = vadd.f32 %v9060_v52, %v3130_v57  ;;  %v303_v57 = vld [vmem:[%s8831_s2 + $0x38] sm:$0xff] }
 0x297   :  { %v7341_v12 = vadd.f32 %v3509_v48, %v7076_v20  ;;  %v304_v20 = vld [vmem:[%s8831_s2 + $0x40] sm:$0xff]  ;;  %v9061_v48 = vld [vmem:[#allocation58_spill] sm:$0xff] }
 0x298   :  { %v3511_v17 = vpop.f32.mrf.mxu1  ;;  %3856 = vperm.xlu0 %5790, %v304_v20   ;;  %3851 = vperm.xlu1 %5791, %v303_v57   ;;  %v9063_v20 = vld [vmem:[#allocation12_spill] sm:$0xff] }
 0x299   :  { %v7352_v8 = vadd.f32 %v3511_v17, %v7079_v10  ;;  %v2947_v10 = vadd.f32 %v9062_v14, %v2754_v63  ;;  %v9066_v57 = vld [vmem:[#allocation40_spill] sm:$0xff] }
 0x29a   :  { %v3513_v60 = vpop.f32.mrf.mxu1 }
 0x29b   :  { %9059 = vst [vmem:[#allocation30_spill] sm:$0xff] %v7352_v8  ;;  %v7362_v46 = vadd.f32 %v3513_v60, %v9061_v48  ;;  %v3140_v39 = vadd.f32 %v7094_v54, %v2947_v10  ;;  %v9064_v60 = vld [vmem:[#allocation39_spill] sm:$0xff] }
 0x29c   :  { %v3515_v37 = vpop.f32.mrf.mxu1  ;;  %3866 = vperm.xlu0 %5790, %v306_v42   ;;  %v2764_v52 = vadd.f32 %v9064_v60, %v9063_v20  ;;  %v308_v54 = vld [vmem:[%s8831_s2 + $0x60] sm:$0xff] }
 0x29d   :  { %v7367_v58 = vadd.f32 %v3515_v37, %v3323_v5  ;;  %v3333_v48 = vadd.f32 %v7096_v34, %v3140_v39  ;;  %v9065_v37 = vld [vmem:[#allocation59_spill] sm:$0xff]  ;;  %v307_v34 = vld [vmem:[%s8831_s2 + $0x58] sm:$0xff]  ;;  %v310_v39 = vld [vmem:[%s8831_s2 + $0x70] sm:$0xff] }
 0x29e   :  { %v3519_v53 = vpop.f32.mrf.mxu1  ;;  %v9079_v42 = vld [vmem:[#allocation63_spill] sm:$0xff] }
 0x29f   :  { %v7371_v8 = vadd.f32 %v3519_v53, %v7089_v6  ;;  %v305_v6 = vld [vmem:[%s8831_s2 + $0x48] sm:$0xff] }
 0x2a0   :  { %v3521_v63 = vpop.f32.mrf.mxu1  ;;  %3861 = vperm.xlu1 %5791, %v305_v6   ;;  %3876 = vperm.xlu0 %5790, %v308_v54   ;;  %v9068_v6 = vld [vmem:[#allocation13_spill] sm:$0xff] }
 0x2a1   :  { %v7382_v5 = vadd.f32 %v3521_v63, %v7092_v38  ;;  %v2957_v38 = vadd.f32 %v9066_v57, %v2764_v52  ;;  %v9069_v54 = vld [vmem:[#allocation41_spill] sm:$0xff] }
 0x2a2   :  { %v3523_v53 = vpop.f32.mrf.mxu1 }
 0x2a3   :  { %v7392_v14 = vadd.f32 %v3523_v53, %v9065_v37  ;;  %v3150_v60 = vadd.f32 %v7107_v51, %v2957_v38  ;;  %v2774_v53 = vadd.f32 %v9069_v54, %v9068_v6  ;;  %v312_v51 = vld [vmem:[%s8831_s2 + $0x80] sm:$0xff]  ;;  %v9073_v54 = vld [vmem:[#allocation14_spill] sm:$0xff] }
 0x2a4   :  { %v3525_v10 = vpop.f32.mrf.mxu1  ;;  %3871 = vperm.xlu1 %5791, %v307_v34   ;;  %3886 = vperm.xlu0 %5790, %v310_v39  }
 0x2a5   :  { %v7397_v63 = vadd.f32 %v3525_v10, %v3333_v48  ;;  %v3343_v10 = vadd.f32 %v7109_v55, %v3150_v60  ;;  %v311_v55 = vld [vmem:[%s8831_s2 + $0x78] sm:$0xff] }
 0x2a6   :  { %v3529_v20 = vpop.f32.mrf.mxu1 }
 0x2a7   :  { %9067 = vst [vmem:[#allocation29_spill] sm:$0xff] %v7397_v63  ;;  %v7401_v17 = vadd.f32 %v3529_v20, %v7102_v56  ;;  %v309_v56 = vld [vmem:[%s8831_s2 + $0x68] sm:$0xff]  ;;  %v9071_v20 = vld [vmem:[#allocation42_spill] sm:$0xff] }
 0x2a8   :  { %v3531_v52 = vpop.f32.mrf.mxu1  ;;  %3881 = vperm.xlu1 %5791, %v309_v56   ;;  %3896 = vperm.xlu0 %5790, %v312_v51   ;;  %v9075_v51 = vld [vmem:[#allocation61_spill] sm:$0xff]  ;;  %v323_v63 = vld [vmem:[%s8831_s2 + $0xd8] sm:$0xff] }
 0x2a9   :  { %v7412_v48 = vadd.f32 %v3531_v52, %v7105_v21  ;;  %v2967_v21 = vadd.f32 %v9071_v20, %v2774_v53  ;;  %v9074_v53 = vld [vmem:[#allocation43_spill] sm:$0xff] }
 0x2aa   :  { %v3533_v37 = vpop.f32.mrf.mxu1  ;;  %v2784_v56 = vadd.f32 %v9074_v53, %v9073_v54 }
 0x2ab   :  { %9070 = vst [vmem:[#allocation32_spill] sm:$0xff] %v7412_v48  ;;  %v7422_v57 = vadd.f32 %v3533_v37, %v7111_v62  ;;  %v3160_v6 = vadd.f32 %v7126_v44, %v2967_v21  ;;  %v314_v62 = vld [vmem:[%s8831_s2 + $0x90] sm:$0xff]  ;;  %v9076_v37 = vld [vmem:[#allocation60_spill] sm:$0xff] }
 0x2ac   :  { %v3535_v38 = vpop.f32.mrf.mxu1  ;;  %3891 = vperm.xlu1 %5791, %v311_v55   ;;  %3906 = vperm.xlu0 %5790, %v314_v62   ;;  %v313_v21 = vld [vmem:[%s8831_s2 + $0x88] sm:$0xff]  ;;  %v316_v55 = vld [vmem:[%s8831_s2 + $0xa0] sm:$0xff] }
 0x2ad   :  { %v7427_v39 = vadd.f32 %v3535_v38, %v3343_v10  ;;  %v3347_v10 = vadd.f32 %v9076_v37, %v9075_v51  ;;  %v9077_v38 = vld [vmem:[#allocation62_spill] sm:$0xff]  ;;  %v3353_v54 = vadd.f32 %v9079_v42, %v3160_v6 }
 0x2ae   :  { %v3539_v52 = vpop.f32.mrf.mxu1  ;;  %v3351_v44 = vadd.f32 %v9077_v38, %v7122_v4  ;;  %v9080_v4 = vld [vmem:[#allocation44_spill] sm:$0xff]  ;;  %v315_v42 = vld [vmem:[%s8831_s2 + $0x98] sm:$0xff] }
 0x2af   :  { %9072 = vst [vmem:[#allocation31_spill] sm:$0xff] %v7427_v39  ;;  %v7452_v53 = vadd.f32 %v3539_v52, %v3347_v10  ;;  %v318_v52 = vld [vmem:[%s8831_s2 + $0xb0] sm:$0xff]  ;;  %v9083_v10 = vld [vmem:[#allocation15_spill] sm:$0xff] }
 0x2b0   :  { %v3541_v60 = vpop.f32.mrf.mxu1  ;;  %3901 = vperm.xlu1 %5791, %v313_v21   ;;  %3916 = vperm.xlu0 %5790, %v316_v55   ;;  %v9084_v21 = vld [vmem:[#allocation65_spill] sm:$0xff]  ;;  %v9085_v55 = vld [vmem:[#allocation64_spill] sm:$0xff] }
 0x2b1   :  { %v7443_v20 = vadd.f32 %v3541_v60, %v7124_v26  ;;  %v2977_v26 = vadd.f32 %v9080_v4, %v2784_v56  ;;  %v9082_v56 = vld [vmem:[#allocation16_spill] sm:$0xff] }
 0x2b2   :  { %v3543_v62 = vpop.f32.mrf.mxu1  ;;  %v9089_v60 = vld [vmem:[#allocation68_spill] sm:$0xff] }
 0x2b3   :  { %9078 = vst [vmem:[#allocation34_spill] sm:$0xff] %v7443_v20  ;;  %v7454_v51 = vadd.f32 %v3543_v62, %v3351_v44  ;;  %v3170_v20 = vadd.f32 %v7143_v18, %v2977_v26  ;;  %v2794_v44 = vadd.f32 %v9083_v10, %v9082_v56  ;;  %v3357_v62 = vadd.f32 %v9085_v55, %v9084_v21  ;;  %v317_v26 = vld [vmem:[%s8831_s2 + $0xa8] sm:$0xff] }
 0x2b4   :  { %v3545_v37 = vpop.f32.mrf.mxu1  ;;  %3911 = vperm.xlu1 %5791, %v315_v42   ;;  %3926 = vperm.xlu0 %5790, %v318_v52   ;;  %v320_v42 = vld [vmem:[%s8831_s2 + $0xc0] sm:$0xff] }
 0x2b5   :  { %v7459_v38 = vadd.f32 %v3545_v37, %v3353_v54  ;;  %v9086_v54 = vld [vmem:[#allocation66_spill] sm:$0xff]  ;;  %v9087_v37 = vld [vmem:[#allocation67_spill] sm:$0xff]  ;;  %v3363_v56 = vadd.f32 %v9089_v60, %v3170_v20  ;;  %v322_v20 = vld [vmem:[%s8831_s2 + $0xd0] sm:$0xff] }
 0x2b6   :  { %v3549_v34 = vpop.f32.mrf.mxu1  ;;  %v3361_v18 = vadd.f32 %v9086_v54, %v7139_v41  ;;  %v9090_v41 = vld [vmem:[#allocation45_spill] sm:$0xff]  ;;  %v321_v54 = vld [vmem:[%s8831_s2 + $0xc8] sm:$0xff] }
 0x2b7   :  { %9081 = vst [vmem:[#allocation33_spill] sm:$0xff] %v7459_v38  ;;  %v7484_v10 = vadd.f32 %v3549_v34, %v3357_v62  ;;  %v9092_v38 = vld [vmem:[#allocation74_spill] sm:$0xff] }
 0x2b8   :  { %v3551_v6 = vpop.f32.mrf.mxu1  ;;  %3921 = vperm.xlu1 %5791, %v317_v26   ;;  %3936 = vperm.xlu0 %5790, %v320_v42   ;;  %v319_v34 = vld [vmem:[%s8831_s2 + $0xb8] sm:$0xff]  ;;  %v9096_v42 = vld [vmem:[#allocation69_spill] sm:$0xff] }
 0x2b9   :  { %v7475_v4 = vadd.f32 %v3551_v6, %v9087_v37  ;;  %v2987_v6 = vadd.f32 %v9090_v41, %v2794_v44  ;;  %v9093_v44 = vld [vmem:[#allocation20_spill] sm:$0xff]  ;;  %v9094_v62 = vld [vmem:[#allocation18_spill] sm:$0xff]  ;;  %v9099_v41 = vld [vmem:[#allocation73_spill] sm:$0xff] }
 0x2ba   :  { %v3553_v52 = vpop.f32.mrf.mxu1  ;;  %v9095_v26 = vld [vmem:[#allocation70_spill] sm:$0xff] }
 0x2bb   :  { %9088 = vst [vmem:[#allocation55_spill] sm:$0xff] %v7475_v4  ;;  %v7486_v21 = vadd.f32 %v3553_v52, %v3361_v18  ;;  %v3180_v39 = vadd.f32 %v9092_v38, %v2987_v6  ;;  %v2804_v18 = vadd.f32 %v9094_v62, %v9093_v44  ;;  %v3367_v52 = vadd.f32 %v9096_v42, %v9095_v26  ;;  %v9102_v42 = vld [vmem:[#allocation19_spill] sm:$0xff] }
 0x2bc   :  { %v3555_v55 = vpop.f32.mrf.mxu1  ;;  %3931 = vperm.xlu1 %5791, %v319_v34   ;;  %3946 = vperm.xlu0 %5790, %v322_v20   ;;  %v324_v34 = vld [vmem:[%s8831_s2 + $0xe0] sm:$0xff] }
 0x2bd   :  { %v7491_v37 = vadd.f32 %v3555_v55, %v3363_v56  ;;  %v9097_v56 = vld [vmem:[#allocation72_spill] sm:$0xff]  ;;  %v9098_v55 = vld [vmem:[#allocation71_spill] sm:$0xff] }
 0x2be   :  { %v3559_v4 = vpop.f32.mrf.mxu1  ;;  %v3371_v38 = vadd.f32 %v9098_v55, %v9097_v56  ;;  %v2997_v56 = vadd.f32 %v9102_v42, %v2804_v18 }
 0x2bf   :  { %9091 = vst [vmem:[#allocation56_spill] sm:$0xff] %v7491_v37  ;;  %v9101_v37 = vld [vmem:[#allocation75_spill] sm:$0xff]  ;;  %v3560_v62 = vadd.f32 %v3559_v4, %v3367_v52  ;;  %v9106_v52 = vld [vmem:[#allocation76_spill] sm:$0xff] }
 0x2c0   :  { %v3561_v60 = vpop.f32.mrf.mxu1  ;;  %v3373_v44 = vadd.f32 %v9101_v37, %v3180_v39  ;;  %3941 = vperm.xlu1 %5791, %v321_v54   ;;  %3956 = vperm.xlu0 %5790, %v324_v34   ;;  %v326_v39 = vld [vmem:[%s8831_s2 + $0xf0] sm:$0xff]  ;;  %v9103_v54 = vld [vmem:[#allocation24_spill] sm:$0xff]  ;;  %v9104_v37 = vld [vmem:[#allocation23_spill] sm:$0xff] }
 0x2c1   :  { %v7507_v6 = vadd.f32 %v3561_v60, %v9099_v41  ;;  %v2814_v18 = vadd.f32 %v9104_v37, %v9103_v54  ;;  %v9107_v34 = vld [vmem:[#allocation17_spill] sm:$0xff]  ;;  %v9109_v54 = vld [vmem:[#allocation47_spill] sm:$0xff] }
 0x2c2   :  { %v3563_v20 = vpop.f32.mrf.mxu1 }
 0x2c3   :  { %9100 = vst [vmem:[#allocation36_spill] sm:$0xff] %v7507_v6  ;;  %v3564_v48 = vadd.f32 %v3563_v20, %v3371_v38  ;;  %v3190_v6 = vadd.f32 %v7177_v7, %v2997_v56  ;;  %v3381_v7 = vadd.f32 %v9107_v34, %v7173_v35  ;;  %v3007_v37 = vadd.f32 %v9109_v54, %v2814_v18  ;;  %v3400_v54 = vpop.f32.mrf.mxu0 }
 0x2c4   :  { %v3565_v26 = vpop.f32.mrf.mxu1  ;;  %3951 = vperm.xlu1 %5791, %v323_v63   ;;  %3966 = vperm.xlu0 %5790, %v326_v39  }
 0x2c5   :  { %v3610_v60 = vpack.c.bf16 %v3564_v48, %v3560_v62  ;;  %v7517_v55 = vadd.f32 %v3565_v26, %v3373_v44  ;;  %v9105_v48 = vld [vmem:[#allocation77_spill] sm:$0xff]  ;;  %v325_v44 = vld [vmem:[%s8831_s2 + $0xe8] sm:$0xff]  ;;  %v9108_v26 = vld [vmem:[#allocation46_spill] sm:$0xff] }
 0x2c6   :  { %v3569_v41 = vpop.f32.mrf.mxu1  ;;  %v3377_v38 = vadd.f32 %v9106_v52, %v9105_v48  ;;  %v3383_v63 = vadd.f32 %v9108_v26, %v3190_v6  ;;  %v9111_v6 = vld [vmem:[#allocation78_spill] sm:$0xff] }
 0x2c8   :  { %v3571_v4 = vpop.f32.mrf.mxu1  ;;  %v3570_v42 = vadd.f32 %v3569_v41, %v3377_v38  ;;  %3961 = vperm.xlu1 %5791, %v325_v44   ;;  %v3387_v41 = vadd.f32 %v9111_v6, %v7184_v9  ;;  %v9112_v38 = vld [vmem:[#allocation21_spill] sm:$0xff]  ;;  %v9115_v9 = vld [vmem:[#allocation79_spill] sm:$0xff] }
 0x2c9   :  { %v7533_v20 = vadd.f32 %v3571_v4, %v7175_v40  ;;  %v3200_v40 = vadd.f32 %v7194_v50, %v3007_v37  ;;  %v327_v4 = vld [vmem:[%s8831_s2 + $0xf8] sm:$0xff] }
 0x2ca   :  { %v3573_v62 = vpop.f32.mrf.mxu1 }
 0x2cb   :  { %v3574_v56 = vadd.f32 %v3573_v62, %v3381_v7  ;;  %v3391_v7 = vadd.f32 %v9112_v38, %v7190_v31  ;;  %v9113_v62 = vld [vmem:[#allocation22_spill] sm:$0xff]  ;;  %v3401_v31 = vadd.f32 %v3400_v54, %v7205_v33  ;;  %v9118_v33 = vpack.c.bf16 %v7305_v0, %v7292_v61  ;;  %v7691_v54 = vld [vmem:[%s8830_s1 + $0x30] sm:$0xff] }
 0x2cc   :  { %v3575_v39 = vpop.f32.mrf.mxu1  ;;  %3971 = vperm.xlu1 %5791, %v327_v4   ;;  %v3393_v26 = vadd.f32 %v9113_v62, %v3200_v40  ;;  %v9123_v61 = vpack.c.bf16 %v7244_v59, %v7238_v25  ;;  %v7601_v25 = vld [vmem:[%s8830_s1] sm:$0xff]  ;;  %v9126_v0 = vpack.c.bf16 %v7392_v14, %v7371_v8  ;;  %v8869_v8 = vunpack.c.h.s8.bf16 %v7262_v24 }
 0x2cd   :  { %v3611_v48 = vpack.c.bf16 %v3574_v56, %v3570_v42  ;;  %v7540_v52 = vadd.f32 %v3575_v39, %v3383_v63  ;;  %v6373_v59 = vld [vmem:[%s8834_s5 + $0x64] ss:$8 sps:$4 sm:$0xff]  }
 0x2ce   :  { %v3579_v35 = vpop.f32.mrf.mxu1  ;;  %v6379_v14 = vld [vmem:[%s8834_s5 + $0x44] ss:$8 sps:$4 sm:$0xff]  }
 0x2cf   :  { %9110 = vst [vmem:[#allocation35_spill] sm:$0xff] %v7540_v52  ;;  %v3580_v63 = vadd.f32 %v3579_v35, %v3387_v41  ;;  %v9114_v52 = vld [vmem:[#allocation80_spill] sm:$0xff]  ;;  %v9116_v41 = vpack.c.bf16 %v7362_v46, %v7341_v12  ;;  %v9121_v12 = vpack.c.bf16 %v7257_v3, %v7251_v30  ;;  %v6370_v30 = vld [vmem:[%s8834_s5 + $0x74] ss:$8 sps:$4 sm:$0xff]   ;;  %v9125_v3 = vpack.c.bf16 %v7231_v43, %v7225_v22  ;;  %v7669_v62 = vld [vmem:[%s8830_s1 + $0x20] sm:$0xff] }
 0x2d0   :  { %v3581_v34 = vpop.f32.mrf.mxu1  ;;  %v3397_v6 = vadd.f32 %v9115_v9, %v9114_v52  ;;  %v9120_v52 = vpack.c.bf16 %v7486_v21, %v7484_v10  ;;  %4182 = vmatprep.subr.bf16.mxu1 %v6370_v30  ;;  %v6371_v22 = vld [vmem:[%s8834_s5 + $0x60] ss:$8 sps:$4 sm:$0xff]   ;;  %v8870_v43 = vunpack.c.l.s8.bf16 %v7601_v25  ;;  %v9127_v46 = vpack.c.bf16 %v7218_v45, %v7212_v13  ;;  %v7633_v13 = vld [vmem:[%s8830_s1 + $0x18] sm:$0xff] }
 0x2d1   :  { %v7551_v18 = vadd.f32 %v3581_v34, %v7192_v47  ;;  %v6377_v45 = vld [vmem:[%s8834_s5 + $0x40] ss:$8 sps:$4 sm:$0xff]   ;;  %v8865_v21 = vunpack.c.h.s8.bf16 %v7633_v13 }
 0x2d2   :  { %v3583_v44 = vpop.f32.mrf.mxu1  ;;  %v7702_v9 = vld [vmem:[%s8830_s1 + $0x48] sm:$0xff] }
 0x2d3   :  { %v3584_v50 = vadd.f32 %v3583_v44, %v3391_v7  ;;  %v9117_v7 = vpack.c.bf16 %v7331_v1, %v7315_v16  ;;  %v9122_v16 = vpack.c.bf16 %v7454_v51, %v7452_v53  ;;  %v6376_v1 = vld [vmem:[%s8834_s5 + $0x54] ss:$8 sps:$4 sm:$0xff]   ;;  %v8867_v53 = vunpack.c.l.s8.bf16 %v7633_v13 }
 0x2d4   :  { %v3585_v42 = vpop.f32.mrf.mxu1  ;;  %v7647_v51 = vld [vmem:[%s8830_s1 + $0x10] sm:$0xff] }
 0x2d5   :  { %v3612_v56 = vpack.c.bf16 %v3584_v50, %v3580_v63  ;;  %v7554_v39 = vadd.f32 %v3585_v42, %v3393_v26  ;;  %v8866_v10 = vunpack.c.l.s8.bf16 %v7647_v51  ;;  %v8862_v26 = vunpack.c.l.s8.bf16 %v7669_v62  ;;  %v7680_v50 = vld [vmem:[%s8830_s1 + $0x38] sm:$0xff] }
 0x2d6   :  { %v3589_v37 = vpop.f32.mrf.mxu1  ;;  %v8860_v42 = vunpack.c.h.s8.bf16 %v7669_v62 }
 0x2d7   :  { %v3590_v38 = vadd.f32 %v3589_v37, %v3397_v6  ;;  %v8858_v37 = vunpack.c.l.s8.bf16 %v7691_v54  ;;  %v8856_v6 = vunpack.c.h.s8.bf16 %v7691_v54 }
 0x2d8   :  { %v3591_v4 = vpop.f32.mrf.mxu1 }
 0x2d9   :  { %v7560_v47 = vadd.f32 %v3591_v4, %v7207_v19  ;;  %v9119_v19 = vpack.c.bf16 %v7282_v11, %v7275_v15  ;;  %v9124_v15 = vpack.c.bf16 %v7422_v57, %v7401_v17  ;;  %v6368_v11 = vld [vmem:[%s8834_s5 + $0x70] ss:$8 sps:$4 sm:$0xff]   ;;  %v8868_v57 = vunpack.c.h.s8.bf16 %v7601_v25 }
 0x2da   :  { %v3593_v34 = vpop.f32.mrf.mxu1  ;;  %4183 = vmatpush1.bf16.msra.mxu1 %v6368_v11  ;;  %v6374_v17 = vld [vmem:[%s8834_s5 + $0x50] ss:$8 sps:$4 sm:$0xff]   ;;  %v8857_v4 = vunpack.c.h.s8.bf16 %v7680_v50  ;;  %v6391_v11 = vld [vmem:[%s8834_s5 + $0x4] ss:$8 sps:$4 sm:$0xff]  }
 0x2db   :  { %v3594_v40 = vadd.f32 %v3593_v34, %v3401_v31  ;;  %4184 = vmatprep.subr.bf16.mxu1 %v6373_v59  ;;  %v8855_v31 = vunpack.c.l.s8.bf16 %v7702_v9  ;;  %v7713_v34 = vld [vmem:[%s8830_s1 + $0x40] sm:$0xff] }
 0x2dd   :  { %v3613_v35 = vpack.c.bf16 %v3594_v40, %v3590_v38  ;;  %v8854_v38 = vunpack.c.l.s8.bf16 %v7713_v34  ;;  %v8853_v40 = vunpack.c.h.s8.bf16 %v7702_v9 }
 0x2de   :  { %4185 = vmatpush1.bf16.msra.mxu1 %v6371_v22 }
 0x2df   :  { %5526 = vmatprep.subr.bf16.mxu0 %v3613_v35  ;;  %4186 = vmatprep.subr.bf16.mxu1 %v6376_v1  ;;  %v6382_v35 = vld [vmem:[%s8834_s5 + $0x34] ss:$8 sps:$4 sm:$0xff]  }
 0x2e0   :  { %5527 = vmatpush3.bf16.msra.mxu0 %v9116_v41  ;;  %v6380_v41 = vld [vmem:[%s8834_s5 + $0x30] ss:$8 sps:$4 sm:$0xff]  }
 0x2e1   :  { %5528 = vmatprep.subr.bf16.mxu0 %v3612_v56  ;;  %v8859_v56 = vunpack.c.l.s8.bf16 %v7680_v50 }
 0x2e2   :  { %4187 = vmatpush1.bf16.msra.mxu1 %v6374_v17 }
 0x2e3   :  { %4188 = vmatprep.subr.bf16.mxu1 %v6379_v14 }
 0x2e4   :  { %5529 = vmatpush3.bf16.msra.mxu0 %v9117_v7  ;;  %v7730_v7 = vld [vmem:[%s8830_s1 + $0x58] sm:$0xff] }
 0x2e5   :  { %5530 = vmatprep.subr.bf16.mxu0 %v3611_v48  ;;  %v8864_v48 = vunpack.c.h.s8.bf16 %v7647_v51  ;;  %v8848_v59 = vunpack.c.h.s8.bf16 %v7730_v7 }
 0x2e6   :  { %4189 = vmatpush1.bf16.msra.mxu1 %v6377_v45  ;;  %v7792_v45 = vld [vmem:[%s8830_s1 + $0x78] sm:$0xff] }
 0x2e7   :  { %4190 = vmatprep.subr.bf16.mxu1 %v6382_v35 }
 0x2e8   :  { %5531 = vmatpush3.bf16.msra.mxu0 %v9118_v33  ;;  %v6385_v33 = vld [vmem:[%s8834_s5 + $0x24] ss:$8 sps:$4 sm:$0xff]  }
 0x2e9   :  { %5532 = vmatprep.subr.bf16.mxu0 %v3610_v60  ;;  %v7658_v60 = vld [vmem:[%s8830_s1 + $0x28] sm:$0xff] }
 0x2ea   :  { %v8863_v44 = vunpack.c.l.s8.bf16 %v7658_v60  ;;  %v8861_v63 = vunpack.c.h.s8.bf16 %v7658_v60  ;;  %4191 = vmatpush1.bf16.msra.mxu1 %v6380_v41  ;;  %v8840_v41 = vunpack.c.l.s8.bf16 %v7792_v45 }
 0x2eb   :  { %4192 = vmatprep.subr.bf16.mxu1 %v6385_v33  ;;  %v7803_v33 = vld [vmem:[%s8830_s1 + $0x70] sm:$0xff] }
 0x2ec   :  { %5533 = vmatpush3.bf16.msra.mxu0 %v9119_v19  ;;  %v8852_v19 = vunpack.c.h.s8.bf16 %v7713_v34 }
 0x2ed   :  { %5534 = vmatprep.subr.bf16.mxu0 %v9120_v52  ;;  %v6383_v52 = vld [vmem:[%s8834_s5 + $0x20] ss:$8 sps:$4 sm:$0xff]  }
 0x2ee   :  { %4193 = vmatpush1.bf16.msra.mxu1 %v6383_v52  ;;  %v8845_v52 = vunpack.c.l.s8.bf16 %v7803_v33 }
 0x2f0   :  { %5535 = vmatpush3.bf16.msra.mxu0 %v9121_v12  ;;  %v8851_v12 = vunpack.c.l.s8.bf16 %v7730_v7 }
 0x2f1   :  { %5536 = vmatprep.subr.bf16.mxu0 %v9122_v16  ;;  %v6388_v16 = vld [vmem:[%s8834_s5 + $0x14] ss:$8 sps:$4 sm:$0xff]  }
 0x2f2   :  { %4194 = vmatprep.subr.bf16.mxu1 %v6388_v16  ;;  %v8847_v16 = vunpack.c.h.s8.bf16 %v7792_v45 }
 0x2f4   :  { %5537 = vmatpush3.bf16.msra.mxu0 %v9123_v61  ;;  %v6386_v61 = vld [vmem:[%s8834_s5 + $0x10] ss:$8 sps:$4 sm:$0xff]  }
 0x2f5   :  { %5538 = vmatprep.subr.bf16.mxu0 %v9124_v15  ;;  %v7753_v15 = vld [vmem:[%s8830_s1 + $0x50] sm:$0xff]  ;;  %4195 = vmatpush1.bf16.msra.mxu1 %v6386_v61  ;;  %v8849_v61 = vunpack.c.h.s8.bf16 %v7803_v33 }
 0x2f6   :  { %v8850_v30 = vunpack.c.l.s8.bf16 %v7753_v15  ;;  %4196 = vmatprep.subr.bf16.mxu1 %v6391_v11  ;;  %v8846_v22 = vunpack.c.h.s8.bf16 %v7753_v15  ;;  %v9128_v11 = vunpack.c.l.s8.bf16 %v7262_v24 }
 0x2f8   :  { %5539 = vmatpush3.bf16.msra.mxu0 %v9125_v3  ;;  %v6389_v3 = vld [vmem:[%s8834_s5] ss:$8 sps:$4 sm:$0xff]  }
 0x2f9   :  { %5540 = vmatprep.subr.bf16.mxu0 %v9126_v0  ;;  %4197 = vmatpush1.bf16.msra.mxu1 %v6389_v3  ;;  %v7770_v0 = vld [vmem:[%s8830_s1 + $0x68] sm:$0xff]  ;;  %v7816_v3 = vpop.f32.mrf.mxu0 }
 0x2fa   :  { %v8844_v1 = vunpack.c.l.s8.bf16 %v7770_v0  ;;  %v8842_v14 = vunpack.c.h.s8.bf16 %v7770_v0 }
 0x2fc   :  { %5541 = vmatpush3.bf16.msra.mxu0 %v9127_v46  ;;  %v7781_v46 = vld [vmem:[%s8830_s1 + $0x60] sm:$0xff] }
 0x2fd   :  { %v8843_v17 = vunpack.c.l.s8.bf16 %v7781_v46  ;;  %v8841_v35 = vunpack.c.h.s8.bf16 %v7781_v46 }
 0x2ff   :  { %3686 = vmatmul.mubr.bf16.vlgmr.msra.gmra.mxu0 %v8870_v43  ;;  %v9164_v43 = vld [vmem:[#allocation33_spill] sm:$0xff] }
 0x300   :  { %3693 = vmatprep.mubr.bf16.mxu0 %v8869_v8  ;;  %v9162_v8 = vld [vmem:[#allocation34_spill] sm:$0xff] }
 0x307   :  { %3694 = vmatmul.mubr.bf16.gmra.mxu0 %v8868_v57  ;;  %v9160_v57 = vld [vmem:[#allocation31_spill] sm:$0xff] }
 0x308   :  { %3701 = vmatprep.mubr.bf16.mxu0 %v8867_v53 }
 0x30f   :  { %3702 = vmatmul.mubr.bf16.gmra.mxu0 %v8866_v10 }
 0x310   :  { %3709 = vmatprep.mubr.bf16.mxu0 %v8865_v21 }
 0x317   :  { %3710 = vmatmul.mubr.bf16.gmra.mxu0 %v8864_v48 }
 0x318   :  { %3717 = vmatprep.mubr.bf16.mxu0 %v8863_v44 }
 0x31f   :  { %3718 = vmatmul.mubr.bf16.gmra.mxu0 %v8862_v26 }
 0x320   :  { %3725 = vmatprep.mubr.bf16.mxu0 %v8861_v63 }
 0x327   :  { %3726 = vmatmul.mubr.bf16.gmra.mxu0 %v8860_v42 }
 0x328   :  { %3733 = vmatprep.mubr.bf16.mxu0 %v8859_v56  ;;  %v9133_v56 = vld [vmem:[#allocation83_spill] sm:$0xff] }
 0x32f   :  { %3734 = vmatmul.mubr.bf16.gmra.mxu0 %v8858_v37 }
 0x330   :  { %3741 = vmatprep.mubr.bf16.mxu0 %v8857_v4 }
 0x337   :  { %3742 = vmatmul.mubr.bf16.gmra.mxu0 %v8856_v6  ;;  %v9131_v6 = vld [vmem:[#allocation50_spill] sm:$0xff] }
 0x338   :  { %3749 = vmatprep.mubr.bf16.mxu0 %v8855_v31 }
 0x33f   :  { %3750 = vmatmul.mubr.bf16.gmra.mxu0 %v8854_v38 }
 0x340   :  { %3757 = vmatprep.mubr.bf16.mxu0 %v8853_v40 }
 0x347   :  { %3758 = vmatmul.mubr.bf16.gmra.mxu0 %v8852_v19 }
 0x348   :  { %3765 = vmatprep.mubr.bf16.mxu0 %v8851_v12 }
 0x34f   :  { %3766 = vmatmul.mubr.bf16.gmra.mxu0 %v8850_v30 }
 0x350   :  { %3773 = vmatprep.mubr.bf16.mxu0 %v8848_v59 }
 0x357   :  { %3774 = vmatmul.mubr.bf16.gmra.mxu0 %v8846_v22 }
 0x358   :  { %3781 = vmatprep.mubr.bf16.mxu0 %v8844_v1  ;;  %v9130_v1 = vld [vmem:[#allocation27_spill] sm:$0xff] }
 0x35f   :  { %3782 = vmatmul.mubr.bf16.gmra.mxu0 %v8843_v17  ;;  %v9129_v17 = vld [vmem:[#allocation48_spill] sm:$0xff] }
 0x360   :  { %3789 = vmatprep.mubr.bf16.mxu0 %v8842_v14 }
 0x367   :  { %3790 = vmatmul.mubr.bf16.gmra.mxu0 %v8841_v35  ;;  %v7818_v35 = vpop.permute.xlu0 %3816 }
 0x368   :  { %3797 = vmatprep.mubr.bf16.mxu0 %v8840_v41 }
 0x36b   :  { %v7831_v40 = vpop.permute.xlu0 %3821 }
 0x36f   :  { %3798 = vmatmul.mubr.bf16.gmra.mxu0 %v8845_v52  ;;  %v3253_v52 = vadd.f32 %v9130_v1, %v9129_v17 }
 0x370   :  { %3805 = vmatprep.mubr.bf16.mxu0 %v8847_v16  ;;  %v7825_v16 = vld [vmem:[%s8833_s4] ss:$0 sm:$0xff] }
 0x371   :  { %v3621_v12 = vadd.f32 %v7825_v16, %v7215_v36 }
 0x377   :  { %3806 = vmatmul.mubr.bf16.gmra.mxu0 %v8849_v61  ;;  %v3446_v61 = vadd.f32 %v7220_v27, %v3253_v52  ;;  %v9132_v27 = vld [vmem:[#allocation49_spill] sm:$0xff] }
 0x378   :  { %4462 = vmatprep.mubr.bf16.mxu0 %v9128_v11  ;;  %v3263_v52 = vadd.f32 %v9132_v27, %v9131_v6 }
 0x379   :  { %v3622_v1 = vadd.f32 %v7825_v16, %v3446_v61  ;;  %v9134_v61 = vld [vmem:[#allocation82_spill] sm:$0xff] }
 0x37a   :  { %v3456_v36 = vadd.f32 %v9133_v56, %v3263_v52 }
 0x37c   :  { %v3624_v6 = vadd.f32 %v7825_v16, %v3456_v36 }
 0x3bf   :  { %v5542_v41 = vpop.f32.mrf.mxu0 }
 0x3c1   :  { %v5543_v14 = vpop.f32.mrf.mxu0 }
 0x3c2   :  { %v5544_v22 = vadd.f32 %v5543_v14, %v5542_v41  ;;  %v7835_v41 = vpop.permute.xlu1 %3826 }
 0x3c3   :  { %v5545_v59 = vpop.f32.mrf.mxu0 }
 0x3c4   :  { %v3974_v11 = vmul.f32 %v5544_v22, %v7818_v35 }
 0x3c5   :  { %v5546_v30 = vpop.f32.mrf.mxu0 }
 0x3c6   :  { %v5547_v19 = vadd.f32 %v5546_v30, %v5545_v59  ;;  %v4006_v17 = vadd.f32 %v3974_v11, %v3621_v12  ;;  %v3623_v12 = vadd.f32 %v7825_v16, %v9134_v61  ;;  %v7843_v26 = vpop.permute.xlu1 %3831 }
 0x3c7   :  { %v5548_v38 = vpop.f32.mrf.mxu0 }
 0x3c8   :  { %v3975_v14 = vmul.f32 %v5547_v19, %v7831_v40  ;;  %v4038_v30 = vmax.f32 %v4006_v17, 0.0  ;;  %v9136_v17 = vld [vmem:[#allocation52_spill] sm:$0xff] }
 0x3c9   :  { %v5549_v31 = vpop.f32.mrf.mxu0 }
 0x3ca   :  { %v4007_v22 = vadd.f32 %v3975_v14, %v3622_v1  ;;  %v5550_v4 = vadd.f32 %v5549_v31, %v5548_v38  ;;  %v9135_v38 = vmov 0   ;;  %v7856_v21 = vpop.permute.xlu1 %3841 }
 0x3cb   :  { %v5551_v37 = vpop.f32.mrf.mxu0 }
 0x3cc   :  { %v4039_v59 = vmax.f32 %v4007_v22, 0.0  ;;  %v3976_v42 = vmul.f32 %v5550_v4, %v7835_v41  ;;  %v9137_v4 = vld [vmem:[#allocation51_spill] sm:$0xff]  ;;  %v7850_v22 = vpop.permute.xlu0 %3836 }
 0x3cd   :  { %v5552_v63 = vpop.f32.mrf.mxu0  ;;  %v3273_v14 = vadd.f32 %v9137_v4, %v9136_v17  ;;  %v9141_v4 = vld [vmem:[#allocation53_spill] sm:$0xff] }
 0x3ce   :  { %v4070_v19 = vpack.c.bf16 %v4039_v59, %v4038_v30  ;;  %v5553_v11 = vadd.f32 %v5552_v63, %v5551_v37  ;;  %v4008_v1 = vadd.f32 %v3976_v42, %v3623_v12  ;;  %v9138_v37 = vld [vmem:[#allocation85_spill] sm:$0xff]  ;;  %v9139_v12 = vld [vmem:[#allocation84_spill] sm:$0xff]  ;;  %v7869_v53 = vpop.permute.xlu1 %3851 }
 0x3cf   :  { %v5554_v44 = vpop.f32.mrf.mxu0  ;;  %v3466_v30 = vadd.f32 %v9138_v37, %v3273_v14  ;;  %9144 = vst [vmem:[#allocation11_spill] sm:$0xff] %v7869_v53 }
 0x3d0   :  { %v3977_v31 = vmul.f32 %v5553_v11, %v7843_v26  ;;  %4215 = vmatmul.mubr.bf16.vlgmr.msra.gmra.mxu1 %v4070_v19  ;;  %v4040_v59 = vmax.f32 %v4008_v1, 0.0  ;;  %v3625_v19 = vadd.f32 %v7825_v16, %v9139_v12  ;;  %v9140_v1 = vld [vmem:[#allocation54_spill] sm:$0xff]  ;;  %v7863_v37 = vpop.permute.xlu0 %3846 }
 0x3d1   :  { %v5555_v56 = vpop.f32.mrf.mxu0  ;;  %4224 = vmatprep.mubr.bf16.mxu1 %v9135_v38  ;;  %v3283_v14 = vadd.f32 %v9141_v4, %v9140_v1 }
 0x3d2   :  { %v4009_v27 = vadd.f32 %v3977_v31, %v3624_v6  ;;  %v5556_v52 = vadd.f32 %v5555_v56, %v5554_v44  ;;  %v3626_v44 = vadd.f32 %v7825_v16, %v3466_v30 }
 0x3d3   :  { %v5557_v63 = vpop.f32.mrf.mxu0 }
 0x3d4   :  { %v4041_v61 = vmax.f32 %v4009_v27, 0.0  ;;  %v3978_v42 = vmul.f32 %v5556_v52, %v7850_v22 }
 0x3d5   :  { %v5558_v36 = vpop.f32.mrf.mxu0 }
 0x3d6   :  { %v5559_v11 = vadd.f32 %v5558_v36, %v5557_v63  ;;  %v4071_v48 = vpack.c.bf16 %v4041_v61, %v4040_v59  ;;  %v4010_v6 = vadd.f32 %v3978_v42, %v3625_v19  ;;  %v9142_v59 = vld [vmem:[#allocation87_spill] sm:$0xff]  ;;  %v9143_v19 = vld [vmem:[#allocation86_spill] sm:$0xff] }
 0x3d7   :  { %v5560_v17 = vpop.f32.mrf.mxu0  ;;  %v3476_v61 = vadd.f32 %v9142_v59, %v3283_v14  ;;  %v7874_v14 = vpop.permute.xlu0 %3856 }
 0x3d8   :  { %v3979_v31 = vmul.f32 %v5559_v11, %v7856_v21  ;;  %4225 = vmatmul.mubr.bf16.gmra.mxu1 %v4071_v48  ;;  %v4042_v36 = vmax.f32 %v4010_v6, 0.0  ;;  %v3627_v48 = vadd.f32 %v7825_v16, %v9143_v19  ;;  %9145 = vst [vmem:[#allocation37_spill] sm:$0xff] %v7874_v14  ;;  %v3630_v19 = vadd.f32 %v7825_v16, %v7288_v32 }
 0x3d9   :  { %v5561_v56 = vpop.f32.mrf.mxu0  ;;  %4234 = vmatprep.mubr.bf16.mxu1 %v9135_v38  ;;  %v3631_v32 = vadd.f32 %v7825_v16, %v7300_v2 }
 0x3da   :  { %v4011_v27 = vadd.f32 %v3979_v31, %v3626_v44  ;;  %v5562_v52 = vadd.f32 %v5561_v56, %v5560_v17  ;;  %v3628_v17 = vadd.f32 %v7825_v16, %v3476_v61  ;;  %v3629_v61 = vadd.f32 %v7825_v16, %v7278_v49 }
 0x3db   :  { %v5563_v63 = vpop.f32.mrf.mxu0 }
 0x3dc   :  { %v4043_v12 = vmax.f32 %v4011_v27, 0.0  ;;  %v3980_v30 = vmul.f32 %v5562_v52, %v7863_v37 }
 0x3dd   :  { %v5564_v42 = vpop.f32.mrf.mxu0 }
 0x3de   :  { %v5565_v11 = vadd.f32 %v5564_v42, %v5563_v63  ;;  %v4072_v10 = vpack.c.bf16 %v4043_v12, %v4042_v36  ;;  %v4012_v44 = vadd.f32 %v3980_v30, %v3627_v48  ;;  %v7879_v42 = vpop.permute.xlu1 %3861 }
 0x3df   :  { %v5566_v1 = vpop.f32.mrf.mxu0  ;;  %9146 = vst [vmem:[#allocation57_spill] sm:$0xff] %v7879_v42 }
 0x3e0   :  { %v3981_v31 = vmul.f32 %v5565_v11, %v7869_v53  ;;  %4235 = vmatmul.mubr.bf16.gmra.mxu1 %v4072_v10  ;;  %v4044_v52 = vmax.f32 %v4012_v44, 0.0 }
 0x3e1   :  { %v5567_v56 = vpop.f32.mrf.mxu0  ;;  %4244 = vmatprep.mubr.bf16.mxu1 %v9135_v38 }
 0x3e2   :  { %v4013_v6 = vadd.f32 %v3981_v31, %v3628_v17  ;;  %v5568_v4 = vadd.f32 %v5567_v56, %v5566_v1  ;;  %v7885_v31 = vpop.permute.xlu0 %3866 }
 0x3e3   :  { %v5569_v27 = vpop.f32.mrf.mxu0  ;;  %9147 = vst [vmem:[#allocation58_spill] sm:$0xff] %v7885_v31 }
 0x3e4   :  { %v4045_v63 = vmax.f32 %v4013_v6, 0.0  ;;  %v3982_v59 = vmul.f32 %v5568_v4, %v7874_v14 }
 0x3e5   :  { %v5570_v36 = vpop.f32.mrf.mxu0 }
 0x3e6   :  { %v5571_v12 = vadd.f32 %v5570_v36, %v5569_v27  ;;  %v4073_v30 = vpack.c.bf16 %v4045_v63, %v4044_v52  ;;  %v4014_v48 = vadd.f32 %v3982_v59, %v3629_v61  ;;  %v7890_v59 = vpop.permute.xlu1 %3871  ;;  %v3632_v61 = vadd.f32 %v7825_v16, %v7311_v23 }
 0x3e7   :  { %v5572_v10 = vpop.f32.mrf.mxu0  ;;  %9148 = vst [vmem:[#allocation38_spill] sm:$0xff] %v7890_v59  ;;  %v3633_v23 = vadd.f32 %v7825_v16, %v7324_v28 }
 0x3e8   :  { %v3983_v11 = vmul.f32 %v5571_v12, %v7879_v42  ;;  %4245 = vmatmul.mubr.bf16.gmra.mxu1 %v4073_v30  ;;  %v4046_v56 = vmax.f32 %v4014_v48, 0.0 }
 0x3e9   :  { %v5573_v1 = vpop.f32.mrf.mxu0  ;;  %4254 = vmatprep.mubr.bf16.mxu1 %v9135_v38 }
 0x3ea   :  { %v4015_v17 = vadd.f32 %v3983_v11, %v3630_v19  ;;  %v5574_v44 = vadd.f32 %v5573_v1, %v5572_v10  ;;  %v7896_v11 = vpop.permute.xlu0 %3876 }
 0x3eb   :  { %v5575_v49 = vpop.f32.mrf.mxu0  ;;  %9149 = vst [vmem:[#allocation12_spill] sm:$0xff] %v7896_v11 }
 0x3ec   :  { %v4047_v6 = vmax.f32 %v4015_v17, 0.0  ;;  %v3984_v4 = vmul.f32 %v5574_v44, %v7885_v31 }
 0x3ed   :  { %v5576_v27 = vpop.f32.mrf.mxu0 }
 0x3ee   :  { %v4074_v52 = vpack.c.bf16 %v4047_v6, %v4046_v56  ;;  %v5577_v63 = vadd.f32 %v5576_v27, %v5575_v49  ;;  %v4016_v12 = vadd.f32 %v3984_v4, %v3631_v32  ;;  %v7901_v4 = vpop.permute.xlu1 %3881  ;;  %v3634_v32 = vadd.f32 %v7825_v16, %v7337_v29 }
 0x3ef   :  { %v5578_v36 = vpop.f32.mrf.mxu0  ;;  %9150 = vst [vmem:[#allocation39_spill] sm:$0xff] %v7901_v4 }
 0x3f0   :  { %v3985_v30 = vmul.f32 %v5577_v63, %v7890_v59  ;;  %4255 = vmatmul.mubr.bf16.gmra.mxu1 %v4074_v52  ;;  %v4048_v1 = vmax.f32 %v4016_v12, 0.0 }
 0x3f1   :  { %v5579_v10 = vpop.f32.mrf.mxu0  ;;  %4264 = vmatprep.mubr.bf16.mxu1 %v9135_v38 }
 0x3f2   :  { %v4017_v19 = vadd.f32 %v3985_v30, %v3632_v61  ;;  %v5580_v48 = vadd.f32 %v5579_v10, %v5578_v36  ;;  %v7907_v30 = vpop.permute.xlu0 %3886 }
 0x3f3   :  { %v5581_v2 = vpop.f32.mrf.mxu0  ;;  %9151 = vst [vmem:[#allocation59_spill] sm:$0xff] %v7907_v30 }
 0x3f4   :  { %v4049_v17 = vmax.f32 %v4017_v19, 0.0  ;;  %v3986_v44 = vmul.f32 %v5580_v48, %v7896_v11 }
 0x3f5   :  { %v5582_v49 = vpop.f32.mrf.mxu0 }
 0x3f6   :  { %v4075_v56 = vpack.c.bf16 %v4049_v17, %v4048_v1  ;;  %v5583_v6 = vadd.f32 %v5582_v49, %v5581_v2  ;;  %v4018_v52 = vadd.f32 %v3986_v44, %v3633_v23  ;;  %v9152_v1 = vld [vmem:[#allocation30_spill] sm:$0xff]  ;;  %v7912_v49 = vpop.permute.xlu1 %3891 }
 0x3f7   :  { %v5584_v27 = vpop.f32.mrf.mxu0  ;;  %v3635_v29 = vadd.f32 %v7825_v16, %v9152_v1  ;;  %9153 = vst [vmem:[#allocation40_spill] sm:$0xff] %v7912_v49 }
 0x3f8   :  { %v3987_v63 = vmul.f32 %v5583_v6, %v7901_v4  ;;  %4265 = vmatmul.mubr.bf16.gmra.mxu1 %v4075_v56  ;;  %v4050_v10 = vmax.f32 %v4018_v52, 0.0  ;;  %v3636_v56 = vadd.f32 %v7825_v16, %v7367_v58  ;;  %v3637_v58 = vadd.f32 %v7825_v16, %v7382_v5 }
 0x3f9   :  { %v5585_v36 = vpop.f32.mrf.mxu0  ;;  %4274 = vmatprep.mubr.bf16.mxu1 %v9135_v38 }
 0x3fa   :  { %v4019_v61 = vadd.f32 %v3987_v63, %v3634_v32  ;;  %v5586_v12 = vadd.f32 %v5585_v36, %v5584_v27  ;;  %v7918_v36 = vpop.permute.xlu0 %3896  ;;  %v7923_v1 = vpop.permute.xlu1 %3901 }
 0x3fb   :  { %v5587_v28 = vpop.f32.mrf.mxu0  ;;  %9154 = vst [vmem:[#allocation13_spill] sm:$0xff] %v7918_v36  ;;  %9155 = vst [vmem:[#allocation41_spill] sm:$0xff] %v7923_v1 }
 0x3fc   :  { %v4051_v19 = vmax.f32 %v4019_v61, 0.0  ;;  %v3988_v48 = vmul.f32 %v5586_v12, %v7907_v30 }
 0x3fd   :  { %v5588_v2 = vpop.f32.mrf.mxu0 }
 0x3fe   :  { %v4076_v17 = vpack.c.bf16 %v4051_v19, %v4050_v10  ;;  %v5589_v44 = vadd.f32 %v5588_v2, %v5587_v28  ;;  %v4020_v6 = vadd.f32 %v3988_v48, %v3635_v29 }
 0x3ff   :  { %v5590_v23 = vpop.f32.mrf.mxu0 }
 0x400   :  { %v3989_v27 = vmul.f32 %v5589_v44, %v7912_v49  ;;  %4275 = vmatmul.mubr.bf16.gmra.mxu1 %v4076_v17  ;;  %v4052_v12 = vmax.f32 %v4020_v6, 0.0  ;;  %v9156_v17 = vld [vmem:[#allocation29_spill] sm:$0xff] }
 0x401   :  { %v5591_v32 = vpop.f32.mrf.mxu0  ;;  %4284 = vmatprep.mubr.bf16.mxu1 %v9135_v38  ;;  %v3638_v44 = vadd.f32 %v7825_v16, %v9156_v17 }
 0x402   :  { %v4021_v52 = vadd.f32 %v3989_v27, %v3636_v56  ;;  %v5592_v63 = vadd.f32 %v5591_v32, %v5590_v23 }
 0x403   :  { %v5593_v61 = vpop.f32.mrf.mxu0 }
 0x404   :  { %v4053_v28 = vmax.f32 %v4021_v52, 0.0  ;;  %v3990_v10 = vmul.f32 %v5592_v63, %v7918_v36  ;;  %v7929_v52 = vpop.permute.xlu0 %3906 }
 0x405   :  { %v5594_v19 = vpop.f32.mrf.mxu0  ;;  %9157 = vst [vmem:[#allocation42_spill] sm:$0xff] %v7929_v52 }
 0x406   :  { %v4077_v48 = vpack.c.bf16 %v4053_v28, %v4052_v12  ;;  %v5595_v2 = vadd.f32 %v5594_v19, %v5593_v61  ;;  %v4022_v23 = vadd.f32 %v3990_v10, %v3637_v58  ;;  %v9158_v19 = vld [vmem:[#allocation32_spill] sm:$0xff] }
 0x407   :  { %v5596_v29 = vpop.f32.mrf.mxu0  ;;  %v3639_v17 = vadd.f32 %v7825_v16, %v9158_v19 }
 0x408   :  { %v3991_v56 = vmul.f32 %v5595_v2, %v7923_v1  ;;  %4285 = vmatmul.mubr.bf16.gmra.mxu1 %v4077_v48  ;;  %v4054_v63 = vmax.f32 %v4022_v23, 0.0  ;;  %v7934_v2 = vpop.permute.xlu1 %3911 }
 0x409   :  { %v5597_v6 = vpop.f32.mrf.mxu0  ;;  %4294 = vmatprep.mubr.bf16.mxu1 %v9135_v38  ;;  %9159 = vst [vmem:[#allocation14_spill] sm:$0xff] %v7934_v2 }
 0x40a   :  { %v4023_v27 = vadd.f32 %v3991_v56, %v3638_v44  ;;  %v5598_v32 = vadd.f32 %v5597_v6, %v5596_v29  ;;  %v3640_v44 = vadd.f32 %v7825_v16, %v9160_v57  ;;  %v3641_v57 = vadd.f32 %v7825_v16, %v9162_v8 }
 0x40b   :  { %v5599_v5 = vpop.f32.mrf.mxu0 }
 0x40c   :  { %v4055_v61 = vmax.f32 %v4023_v27, 0.0  ;;  %v3992_v12 = vmul.f32 %v5598_v32, %v7929_v52  ;;  %v7940_v32 = vpop.permute.xlu0 %3916 }
 0x40d   :  { %v5600_v28 = vpop.f32.mrf.mxu0  ;;  %9161 = vst [vmem:[#allocation43_spill] sm:$0xff] %v7940_v32 }
 0x40e   :  { %v4078_v10 = vpack.c.bf16 %v4055_v61, %v4054_v63  ;;  %v5601_v58 = vadd.f32 %v5600_v28, %v5599_v5  ;;  %v4024_v29 = vadd.f32 %v3992_v12, %v3639_v17 }
 0x40f   :  { %v5602_v48 = vpop.f32.mrf.mxu0 }
 0x410   :  { %v3993_v56 = vmul.f32 %v5601_v58, %v7934_v2  ;;  %4295 = vmatmul.mubr.bf16.gmra.mxu1 %v4078_v10  ;;  %v4056_v63 = vmax.f32 %v4024_v29, 0.0  ;;  %v7945_v58 = vpop.permute.xlu1 %3921 }
 0x411   :  { %v5603_v23 = vpop.f32.mrf.mxu0  ;;  %4304 = vmatprep.mubr.bf16.mxu1 %v9135_v38  ;;  %9163 = vst [vmem:[#allocation61_spill] sm:$0xff] %v7945_v58 }
 0x412   :  { %v4025_v6 = vadd.f32 %v3993_v56, %v3640_v44  ;;  %v5604_v27 = vadd.f32 %v5603_v23, %v5602_v48  ;;  %v3642_v44 = vadd.f32 %v7825_v16, %v9164_v43 }
 0x413   :  { %v5605_v19 = vpop.f32.mrf.mxu0 }
 0x414   :  { %v4057_v5 = vmax.f32 %v4025_v6, 0.0  ;;  %v3994_v61 = vmul.f32 %v5604_v27, %v7940_v32  ;;  %v7951_v27 = vpop.permute.xlu0 %3926  ;;  %v9166_v32 = vld [vmem:[#allocation55_spill] sm:$0xff] }
 0x415   :  { %v5606_v28 = vpop.f32.mrf.mxu0  ;;  %9165 = vst [vmem:[#allocation60_spill] sm:$0xff] %v7951_v27  ;;  %v3643_v43 = vadd.f32 %v7825_v16, %v9166_v32 }
 0x416   :  { %v4079_v12 = vpack.c.bf16 %v4057_v5, %v4056_v63  ;;  %v5607_v17 = vadd.f32 %v5606_v28, %v5605_v19  ;;  %v4026_v48 = vadd.f32 %v3994_v61, %v3641_v57 }
 0x417   :  { %v5608_v10 = vpop.f32.mrf.mxu0 }
 0x418   :  { %v3995_v56 = vmul.f32 %v5607_v17, %v7945_v58  ;;  %4305 = vmatmul.mubr.bf16.gmra.mxu1 %v4079_v12  ;;  %v4058_v63 = vmax.f32 %v4026_v48, 0.0  ;;  %v7956_v17 = vpop.permute.xlu1 %3931  ;;  %v9168_v58 = vld [vmem:[#allocation56_spill] sm:$0xff] }
 0x419   :  { %v5609_v29 = vpop.f32.mrf.mxu0  ;;  %4314 = vmatprep.mubr.bf16.mxu1 %v9135_v38  ;;  %9167 = vst [vmem:[#allocation62_spill] sm:$0xff] %v7956_v17 }
 0x41a   :  { %v4027_v23 = vadd.f32 %v3995_v56, %v3642_v44  ;;  %v5610_v6 = vadd.f32 %v5609_v29, %v5608_v10  ;;  %v3644_v44 = vadd.f32 %v7825_v16, %v9168_v58 }
 0x41b   :  { %v5611_v8 = vpop.f32.mrf.mxu0 }
 0x41c   :  { %v4059_v19 = vmax.f32 %v4027_v23, 0.0  ;;  %v3996_v5 = vmul.f32 %v5610_v6, %v7951_v27  ;;  %v7962_v6 = vpop.permute.xlu0 %3936  ;;  %v9170_v27 = vld [vmem:[#allocation36_spill] sm:$0xff] }
 0x41d   :  { %v5612_v28 = vpop.f32.mrf.mxu0  ;;  %9169 = vst [vmem:[#allocation63_spill] sm:$0xff] %v7962_v6  ;;  %v3645_v58 = vadd.f32 %v7825_v16, %v9170_v27 }
 0x41e   :  { %v4080_v61 = vpack.c.bf16 %v4059_v19, %v4058_v63  ;;  %v5613_v57 = vadd.f32 %v5612_v28, %v5611_v8  ;;  %v4028_v10 = vadd.f32 %v3996_v5, %v3643_v43 }
 0x41f   :  { %v5614_v12 = vpop.f32.mrf.mxu0 }
 0x420   :  { %v3997_v56 = vmul.f32 %v5613_v57, %v7956_v17  ;;  %4315 = vmatmul.mubr.bf16.gmra.mxu1 %v4080_v61  ;;  %v4060_v63 = vmax.f32 %v4028_v10, 0.0  ;;  %v7967_v57 = vpop.permute.xlu1 %3941 }
 0x421   :  { %v5615_v48 = vpop.f32.mrf.mxu0  ;;  %4324 = vmatprep.mubr.bf16.mxu1 %v9135_v38  ;;  %9171 = vst [vmem:[#allocation44_spill] sm:$0xff] %v7967_v57 }
 0x422   :  { %v4029_v29 = vadd.f32 %v3997_v56, %v3644_v44  ;;  %v5616_v23 = vadd.f32 %v5615_v48, %v5614_v12  ;;  %v3646_v44 = vadd.f32 %v7825_v16, %v7517_v55  ;;  %v3647_v55 = vadd.f32 %v7825_v16, %v7533_v20 }
 0x423   :  { %v5617_v32 = vpop.f32.mrf.mxu0 }
 0x424   :  { %v4061_v8 = vmax.f32 %v4029_v29, 0.0  ;;  %v3998_v19 = vmul.f32 %v5616_v23, %v7962_v6  ;;  %v7973_v23 = vpop.permute.xlu0 %3946  ;;  %v9175_v6 = vld [vmem:[#allocation25_spill] sm:$0xff] }
 0x425   :  { %v5618_v28 = vpop.f32.mrf.mxu0  ;;  %9172 = vst [vmem:[#allocation16_spill] sm:$0xff] %v7973_v23 }
 0x426   :  { %v4081_v5 = vpack.c.bf16 %v4061_v8, %v4060_v63  ;;  %v5619_v43 = vadd.f32 %v5618_v28, %v5617_v32  ;;  %v4030_v12 = vadd.f32 %v3998_v19, %v3645_v58 }
 0x427   :  { %v5620_v61 = vpop.f32.mrf.mxu0 }
 0x428   :  { %v3999_v56 = vmul.f32 %v5619_v43, %v7967_v57  ;;  %4325 = vmatmul.mubr.bf16.gmra.mxu1 %v4081_v5  ;;  %v4062_v63 = vmax.f32 %v4030_v12, 0.0  ;;  %v7978_v43 = vpop.permute.xlu1 %3951  ;;  %v9174_v57 = vld [vmem:[#allocation28_spill] sm:$0xff] }
 0x429   :  { %v5621_v10 = vpop.f32.mrf.mxu0  ;;  %4334 = vmatprep.mubr.bf16.mxu1 %v9135_v38  ;;  %9173 = vst [vmem:[#allocation15_spill] sm:$0xff] %v7978_v43 }
 0x42a   :  { %v4031_v48 = vadd.f32 %v3999_v56, %v3646_v44  ;;  %v5622_v29 = vadd.f32 %v5621_v10, %v5620_v61  ;;  %v2824_v44 = vadd.f32 %v9175_v6, %v9174_v57  ;;  %v9176_v61 = vld [vmem:[#allocation35_spill] sm:$0xff] }
 0x42b   :  { %v5623_v27 = vpop.f32.mrf.mxu0  ;;  %v3648_v56 = vadd.f32 %v7825_v16, %v9176_v61  ;;  %v9179_v61 = vld [vmem:[#allocation81_spill] sm:$0xff] }
 0x42c   :  { %v4063_v32 = vmax.f32 %v4031_v48, 0.0  ;;  %v4000_v8 = vmul.f32 %v5622_v29, %v7973_v23 }
 0x42d   :  { %v5624_v28 = vpop.f32.mrf.mxu0 }
 0x42e   :  { %v4082_v19 = vpack.c.bf16 %v4063_v32, %v4062_v63  ;;  %v5625_v58 = vadd.f32 %v5624_v28, %v5623_v27  ;;  %v4032_v10 = vadd.f32 %v4000_v8, %v3647_v55  ;;  %v7986_v63 = vpop.permute.xlu0 %3956  ;;  %v9178_v32 = vld [vmem:[#allocation26_spill] sm:$0xff]  ;;  %v3649_v55 = vadd.f32 %v7825_v16, %v7551_v18 }
 0x42f   :  { %v5626_v5 = vpop.f32.mrf.mxu0  ;;  %9177 = vst [vmem:[#allocation65_spill] sm:$0xff] %v7986_v63  ;;  %v3017_v28 = vadd.f32 %v9178_v32, %v2824_v44 }
 0x430   :  { %v4001_v12 = vmul.f32 %v5625_v58, %v7978_v43  ;;  %4335 = vmatmul.mubr.bf16.gmra.mxu1 %v4082_v19  ;;  %v4064_v23 = vmax.f32 %v4032_v10, 0.0  ;;  %v7993_v43 = vpop.permute.xlu1 %3961  ;;  %v3595_v10 = vpop.f32.mrf.mxu1 }
 0x431   :  { %v5627_v48 = vpop.f32.mrf.mxu0  ;;  %4344 = vmatprep.mubr.bf16.mxu1 %v9135_v38  ;;  %v3210_v8 = vadd.f32 %v9179_v61, %v3017_v28  ;;  %9180 = vst [vmem:[#allocation64_spill] sm:$0xff] %v7993_v43 }
 0x432   :  { %v4033_v29 = vadd.f32 %v4001_v12, %v3648_v56  ;;  %v5628_v20 = vadd.f32 %v5627_v48, %v5626_v5  ;;  %v3650_v56 = vadd.f32 %v7825_v16, %v7554_v39 }
 0x433   :  { %v5629_v27 = vpop.f32.mrf.mxu0 }
 0x434   :  { %v4065_v17 = vmax.f32 %v4033_v29, 0.0  ;;  %v4002_v6 = vmul.f32 %v5628_v20, %v7986_v63  ;;  %v3403_v29 = vadd.f32 %v7816_v3, %v3210_v8 }
 0x435   :  { %v5630_v57 = vpop.f32.mrf.mxu0 }
 0x436   :  { %v4083_v19 = vpack.c.bf16 %v4065_v17, %v4064_v23  ;;  %v5631_v58 = vadd.f32 %v5630_v57, %v5629_v27  ;;  %v4034_v12 = vadd.f32 %v4002_v6, %v3649_v55  ;;  %v8000_v17 = vpop.permute.xlu0 %3966  ;;  %v3596_v27 = vadd.f32 %v3595_v10, %v3403_v29 }
 0x437   :  { %v5632_v5 = vpop.f32.mrf.mxu0  ;;  %9181 = vst [vmem:[#allocation66_spill] sm:$0xff] %v8000_v17  ;;  %v3651_v57 = vadd.f32 %v7825_v16, %v7560_v47 }
 0x438   :  { %v4003_v44 = vmul.f32 %v5631_v58, %v7993_v43  ;;  %4345 = vmatmul.mubr.bf16.gmra.mxu1 %v4083_v19  ;;  %v4066_v32 = vmax.f32 %v4034_v12, 0.0  ;;  %v8005_v19 = vpop.permute.xlu1 %3971  ;;  %v3652_v3 = vadd.f32 %v7825_v16, %v3596_v27 }
 0x439   :  { %v5633_v48 = vpop.f32.mrf.mxu0  ;;  %4354 = vmatprep.mubr.bf16.mxu1 %v9135_v38  ;;  %9182 = vst [vmem:[#allocation67_spill] sm:$0xff] %v8005_v19 }
 0x43a   :  { %v4035_v20 = vadd.f32 %v4003_v44, %v3650_v56  ;;  %v5634_v18 = vadd.f32 %v5633_v48, %v5632_v5 }
 0x43b   :  { %v5635_v23 = vpop.f32.mrf.mxu0 }
 0x43c   :  { %v4067_v28 = vmax.f32 %v4035_v20, 0.0  ;;  %v4004_v39 = vmul.f32 %v5634_v18, %v8000_v17 }
 0x43d   :  { %v5636_v6 = vpop.f32.mrf.mxu0 }
 0x43e   :  { %v4084_v61 = vpack.c.bf16 %v4067_v28, %v4066_v32  ;;  %v5637_v55 = vadd.f32 %v5636_v6, %v5635_v23  ;;  %v4036_v8 = vadd.f32 %v4004_v39, %v3651_v57 }
 0x440   :  { %v4005_v58 = vmul.f32 %v5637_v55, %v8005_v19  ;;  %4355 = vmatmul.mubr.bf16.gmra.mxu1 %v4084_v61  ;;  %v4068_v56 = vmax.f32 %v4036_v8, 0.0 }
 0x441   :  { %4364 = vmatprep.mubr.bf16.mxu1 %v9135_v38 }
 0x442   :  { %v4037_v5 = vadd.f32 %v4005_v58, %v3652_v3 }
 0x444   :  { %v4069_v12 = vmax.f32 %v4037_v5, 0.0 }
 0x446   :  { %v4085_v44 = vpack.c.bf16 %v4069_v12, %v4068_v56 }
 0x448   :  { %4365 = vmatmul.mubr.bf16.gmra.mxu1 %v4085_v44 }
 0x490   :  { %v8010_v10 = vpop.f32.mrf.mxu1 }
 0x492   :  { %v8012_v47 = vpop.f32.mrf.mxu1 }
 0x494   :  { %v8014_v48 = vpop.f32.mrf.mxu1 }
 0x496   :  { %v8018_v29 = vpop.f32.mrf.mxu1 }
 0x498   :  { %v8020_v20 = vpop.f32.mrf.mxu1 }
 0x49a   :  { %v8022_v18 = vpop.f32.mrf.mxu1 }
 0x49c   :  { %v8024_v38 = vpop.f32.mrf.mxu1 }
 0x49e   :  { %v8028_v27 = vpop.f32.mrf.mxu1 }
 0x4a0   :  { %v8030_v32 = vpop.f32.mrf.mxu1 }
 0x4a2   :  { %v8032_v28 = vpop.f32.mrf.mxu1 }
 0x4a4   :  { %v8034_v39 = vpop.f32.mrf.mxu1 }
 0x4a6   :  { %v8038_v57 = vpop.f32.mrf.mxu1 }
 0x4a8   :  { %v8040_v61 = vpop.f32.mrf.mxu1 }
 0x4aa   :  { %v8042_v55 = vpop.f32.mrf.mxu1 }
 0x4ac   :  { %v8044_v3 = vpop.f32.mrf.mxu1 }
 0x4ae   :  { %v8048_v58 = vpop.f32.mrf.mxu1 }
 0x4af   :  { %9183 = vst [vmem:[#allocation68_spill] sm:$0xff] %v8048_v58 }
 0x4b0   :  { %v8050_v5 = vpop.f32.mrf.mxu1 }
 0x4b2   :  { %v8052_v56 = vpop.f32.mrf.mxu1 }
 0x4b3   :  { %9184 = vst [vmem:[#allocation45_spill] sm:$0xff] %v8052_v56 }
 0x4b4   :  { %v8054_v12 = vpop.f32.mrf.mxu1 }
 0x4b5   :  { %v4379_v44 = vpack.c.bf16 %v8054_v12, %v8050_v5 }
 0x4b6   :  { %v8058_v16 = vpop.f32.mrf.mxu1 }
 0x4b7   :  { %9185 = vst [vmem:[#allocation74_spill] sm:$0xff] %v8058_v16 }
 0x4b8   :  { %v4266_v23 = vpop.f32.mrf.mxu1 }
 0x4ba   :  { %v8060_v6 = vpop.f32.mrf.mxu1 }
 0x4bb   :  { %9186 = vst [vmem:[#allocation20_spill] sm:$0xff] %v8060_v6 }
 0x4bc   :  { %v4270_v19 = vpop.f32.mrf.mxu1 }
 0x4bd   :  { %v4380_v17 = vpack.c.bf16 %v4270_v19, %v4266_v23 }
 0x4be   :  { %v8062_v43 = vpop.f32.mrf.mxu1 }
 0x4bf   :  { %9187 = vst [vmem:[#allocation18_spill] sm:$0xff] %v8062_v43 }
 0x4c0   :  { %v4276_v8 = vpop.f32.mrf.mxu1 }
 0x4c2   :  { %v8064_v63 = vpop.f32.mrf.mxu1 }
 0x4c3   :  { %9188 = vst [vmem:[#allocation70_spill] sm:$0xff] %v8064_v63 }
 0x4c4   :  { %v4280_v2 = vpop.f32.mrf.mxu1 }
 0x4c5   :  { %v4381_v52 = vpack.c.bf16 %v4280_v2, %v4276_v8 }
 0x4c6   :  { %v8066_v1 = vpop.f32.mrf.mxu1 }
 0x4c7   :  { %9189 = vst [vmem:[#allocation69_spill] sm:$0xff] %v8066_v1 }
 0x4c8   :  { %v4286_v36 = vpop.f32.mrf.mxu1 }
 0x4ca   :  { %v8068_v49 = vpop.f32.mrf.mxu1 }
 0x4cb   :  { %9190 = vst [vmem:[#allocation72_spill] sm:$0xff] %v8068_v49 }
 0x4cc   :  { %v4290_v5 = vpop.f32.mrf.mxu1 }
 0x4cd   :  { %v4382_v12 = vpack.c.bf16 %v4290_v5, %v4286_v36 }
 0x4ce   :  { %v8070_v30 = vpop.f32.mrf.mxu1 }
 0x4cf   :  { %9191 = vst [vmem:[#allocation71_spill] sm:$0xff] %v8070_v30 }
 0x4d0   :  { %v4296_v4 = vpop.f32.mrf.mxu1 }
 0x4d2   :  { %v8072_v11 = vpop.f32.mrf.mxu1 }
 0x4d3   :  { %9192 = vst [vmem:[#allocation73_spill] sm:$0xff] %v8072_v11 }
 0x4d4   :  { %v4300_v19 = vpop.f32.mrf.mxu1 }
 0x4d5   :  { %v4383_v23 = vpack.c.bf16 %v4300_v19, %v4296_v4 }
 0x4d6   :  { %v8074_v59 = vpop.f32.mrf.mxu1 }
 0x4d7   :  { %9193 = vst [vmem:[#allocation75_spill] sm:$0xff] %v8074_v59 }
 0x4d8   :  { %v4306_v43 = vpop.f32.mrf.mxu1 }
 0x4da   :  { %v8076_v63 = vpop.f32.mrf.mxu1 }
 0x4db   :  { %9194 = vst [vmem:[#allocation19_spill] sm:$0xff] %v8076_v63 }
 0x4dc   :  { %v4310_v2 = vpop.f32.mrf.mxu1 }
 0x4dd   :  { %v4384_v8 = vpack.c.bf16 %v4310_v2, %v4306_v43 }
 0x4de   :  { %v8078_v1 = vpop.f32.mrf.mxu1 }
 0x4df   :  { %9195 = vst [vmem:[#allocation24_spill] sm:$0xff] %v8078_v1 }
 0x4e0   :  { %v4316_v31 = vpop.f32.mrf.mxu1 }
 0x4e2   :  { %v8080_v49 = vpop.f32.mrf.mxu1 }
 0x4e3   :  { %9196 = vst [vmem:[#allocation23_spill] sm:$0xff] %v8080_v49 }
 0x4e4   :  { %v4320_v36 = vpop.f32.mrf.mxu1 }
 0x4e6   :  { %v8082_v5 = vpop.f32.mrf.mxu1 }
 0x4e7   :  { %9197 = vst [vmem:[#allocation77_spill] sm:$0xff] %v8082_v5 }
 0x4e8   :  { %v4326_v30 = vpop.f32.mrf.mxu1 }
 0x4ea   :  { %v8084_v6 = vpop.f32.mrf.mxu1 }
 0x4eb   :  { %9198 = vst [vmem:[#allocation76_spill] sm:$0xff] %v8084_v6 }
 0x4ec   :  { %v4330_v11 = vpop.f32.mrf.mxu1 }
 0x4ee   :  { %v8086_v4 = vpop.f32.mrf.mxu1 }
 0x4ef   :  { %9199 = vst [vmem:[#allocation17_spill] sm:$0xff] %v8086_v4 }
 0x4f0   :  { %v4336_v19 = vpop.f32.mrf.mxu1 }
 0x4f2   :  { %v8088_v59 = vpop.f32.mrf.mxu1 }
 0x4f3   :  { %9200 = vst [vmem:[#allocation46_spill] sm:$0xff] %v8088_v59 }
 0x4f4   :  { %v4340_v63 = vpop.f32.mrf.mxu1 }
 0x4f6   :  { %v8090_v42 = vpop.f32.mrf.mxu1 }
 0x4f7   :  { %9201 = vst [vmem:[#allocation47_spill] sm:$0xff] %v8090_v42 }
 0x4f8   :  { %v4346_v43 = vpop.f32.mrf.mxu1 }
 0x4fa   :  { %v8092_v2 = vpop.f32.mrf.mxu1 }
 0x4fb   :  { %9202 = vst [vmem:[#allocation78_spill] sm:$0xff] %v8092_v2  ;;  %v4387_v2 = vpack.c.bf16 %v4340_v63, %v4336_v19  ;;  %v9217_v63 = vunpack.c.l.s8.bf16 %v7658_v60 }
 0x4fc   :  { %v4350_v1 = vpop.f32.mrf.mxu1 }
 0x4fd   :  { %v4388_v42 = vpack.c.bf16 %v4350_v1, %v4346_v43  ;;  %v9215_v1 = vunpack.c.h.s8.bf16 %v7633_v13 }
 0x4fe   :  { %v8094_v49 = vpop.f32.mrf.mxu1 }
 0x4ff   :  { %9203 = vst [vmem:[#allocation21_spill] sm:$0xff] %v8094_v49  ;;  %v4386_v49 = vpack.c.bf16 %v4330_v11, %v4326_v30  ;;  %v9212_v11 = vunpack.c.h.s8.bf16 %v7601_v25  ;;  %v9213_v30 = vunpack.c.l.s8.bf16 %v7633_v13  ;;  %v9222_v13 = vunpack.c.l.s8.bf16 %v7691_v54 }
 0x500   :  { %v4356_v16 = vpop.f32.mrf.mxu1 }
 0x502   :  { %v8096_v5 = vpop.f32.mrf.mxu1 }
 0x503   :  { %9204 = vst [vmem:[#allocation22_spill] sm:$0xff] %v8096_v5  ;;  %v4385_v5 = vpack.c.bf16 %v4320_v36, %v4316_v31  ;;  %v9210_v31 = vunpack.c.l.s8.bf16 %v7601_v25  ;;  %v9219_v25 = vunpack.c.h.s8.bf16 %v7658_v60  ;;  %v9226_v60 = vunpack.c.l.s8.bf16 %v7713_v34 }
 0x504   :  { %v4360_v14 = vpop.f32.mrf.mxu1 }
 0x505   :  { %v4389_v58 = vpack.c.bf16 %v4360_v14, %v4356_v16  ;;  %v9208_v14 = vpack.c.bf16 %v8024_v38, %v8020_v20  ;;  %v9225_v16 = vunpack.c.l.s8.bf16 %v7702_v9  ;;  %v9228_v20 = vunpack.c.h.s8.bf16 %v7713_v34 }
 0x506   :  { %v8098_v6 = vpop.f32.mrf.mxu1  ;;  %v9229_v38 = vunpack.c.l.s8.bf16 %v7730_v7  ;;  %v9235_v34 = vunpack.c.h.s8.bf16 %v7770_v0 }
 0x507   :  { %9205 = vst [vmem:[#allocation80_spill] sm:$0xff] %v8098_v6  ;;  %v9206_v6 = vpack.c.bf16 %v8044_v3, %v8040_v61  ;;  %v9237_v61 = vunpack.c.l.s8.bf16 %v7792_v45  ;;  %v9240_v3 = vunpack.c.h.s8.bf16 %v7803_v33 }
 0x508   :  { %v4366_v56 = vpop.f32.mrf.mxu1 }
 0x50a   :  { %v8100_v4 = vpop.f32.mrf.mxu1 }
 0x50c   :  { %v4370_v53 = vpop.f32.mrf.mxu1 }
 0x50d   :  { %v4390_v59 = vpack.c.bf16 %v4370_v53, %v4366_v56  ;;  %v9207_v53 = vpack.c.bf16 %v8034_v39, %v8030_v32  ;;  %v9232_v32 = vunpack.c.h.s8.bf16 %v7753_v15  ;;  %v9233_v39 = vunpack.c.l.s8.bf16 %v7770_v0  ;;  %v8179_v0 = vld [vmem:[%s8835_s6] ss:$0 sm:$0xff]  ;;  %s6593_s6 = smov [#allocation7]  }
 0x50e   :  { %v4687_v56 = vlaneseq  ;;  %v4399_v43 = vadd.f32 %v8179_v0, %v8018_v29  ;;  %v4400_v29 = vadd.f32 %v8179_v0, %v8022_v18  ;;  %v4401_v18 = vadd.f32 %v8179_v0, %v8028_v27  ;;  %s5111_s24 = sshll.u32 %s6593_s6, 4  ;;  %s5112_s24 = int_to_ptr.vmem [resolvable:$true] %s5111_s24 }
 0x50f   :  { %5638 = vmatprep.subr.bf16.mxu0 %v4390_v59  ;;  %v9211_v59 = vunpack.c.h.s8.bf16 %v7262_v24  ;;  %v9218_v24 = vunpack.c.l.s8.bf16 %v7669_v62  ;;  %v4402_v27 = vadd.f32 %v8179_v0, %v8032_v28  ;;  %v4403_v28 = vadd.f32 %v8179_v0, %v8038_v57  ;;  %s6560_s25 = scalar_lea.vmem %s5112_s24, 4096  ;;  %p6565_p11 = scmp.lt.s32.totalorder %s5112_s24, %s5112_s24 }
 0x510   :  { %5639 = vmatpush3.bf16.msra.mxu0 %v4382_v12  ;;  %v4404_v57 = vadd.f32 %v8179_v0, %v8042_v55  ;;  %p6561_p10 = scmp.ne.s32.totalorder %s5112_s24, %s6560_s25  ;;  %p6566_p12 = scmp.lt.s32.totalorder %s6560_s25, %s6560_s25 }
 0x511   :  { %5640 = vmatprep.subr.bf16.mxu0 %v4389_v58 }
 0x512   :  { %p6567_p13 = por %p6566_p12, %p6565_p11 }
 0x514   :  { %5641 = vmatpush3.bf16.msra.mxu0 %v4381_v52  ;;  %v9216_v52 = vunpack.c.h.s8.bf16 %v7647_v51  ;;  %p6568_p0 = pnand %p6567_p13, %p6561_p10 }
 0x515   :  { %5642 = vmatprep.subr.bf16.mxu0 %v4388_v42  ;;  %v9209_v42 = vpack.c.bf16 %v8014_v48, %v8010_v10  ;;  %v9221_v10 = vunpack.c.l.s8.bf16 %v7680_v50  ;;  %v9224_v48 = vunpack.c.h.s8.bf16 %v7691_v54  ;;  %v9231_v54 = vunpack.c.h.s8.bf16 %v7730_v7 }
 0x516   :  { %v9238_v7 = vunpack.c.l.s8.bf16 %v7803_v33 }
 0x518   :  { %5643 = vmatpush3.bf16.msra.mxu0 %v4380_v17  ;;  %v9220_v17 = vunpack.c.h.s8.bf16 %v7669_v62  ;;  %v9227_v62 = vunpack.c.h.s8.bf16 %v7702_v9  ;;  %v9234_v9 = vunpack.c.l.s8.bf16 %v7781_v46 }
 0x519   :  { %5644 = vmatprep.subr.bf16.mxu0 %v4387_v2 }
 0x51c   :  { %5645 = vmatpush3.bf16.msra.mxu0 %v4379_v44 }
 0x51d   :  { %5646 = vmatprep.subr.bf16.mxu0 %v4386_v49  ;;  %v9214_v49 = vunpack.c.l.s8.bf16 %v7647_v51  ;;  %v9223_v51 = vunpack.c.h.s8.bf16 %v7680_v50  ;;  %v9230_v50 = vunpack.c.l.s8.bf16 %v7753_v15  ;;  %v9239_v15 = vunpack.c.h.s8.bf16 %v7792_v45 }
 0x520   :  { %5647 = vmatpush3.bf16.msra.mxu0 %v9206_v6  ;;  %v9236_v6 = vunpack.c.h.s8.bf16 %v7781_v46 }
 0x521   :  { %5648 = vmatprep.subr.bf16.mxu0 %v4385_v5 }
 0x524   :  { %5649 = vmatpush3.bf16.msra.mxu0 %v9207_v53 }
 0x525   :  { %5650 = vmatprep.subr.bf16.mxu0 %v4384_v8  ;;  %v4398_v8 = vadd.f32 %v8179_v0, %v8012_v47 }
 0x528   :  { %5651 = vmatpush3.bf16.msra.mxu0 %v9208_v14 }
 0x529   :  { %5652 = vmatprep.subr.bf16.mxu0 %v4383_v23  ;;  %v8181_v23 = vand.u32 127, %v4687_v56  ;;  %v9242_v56 = vld [vmem:[#allocation11_spill] sm:$0xff] }
 0x52b   :  { %vm4689_vm0 = vcmp.lt.s32.totalorder %v8181_v23, 32 }
 0x52c   :  { %5653 = vmatpush3.bf16.msra.mxu0 %v9209_v42 }
 0x52f   :  { %4463 = vmatmul.mubr.bf16.vlgmr.msra.gmra.mxu0 %v9210_v31 }
 0x530   :  { %4470 = vmatprep.mubr.bf16.mxu0 %v9211_v59 }
 0x537   :  { %4471 = vmatmul.mubr.bf16.gmra.mxu0 %v9212_v11 }
 0x538   :  { %4478 = vmatprep.mubr.bf16.mxu0 %v9213_v30 }
 0x53f   :  { %4479 = vmatmul.mubr.bf16.gmra.mxu0 %v9214_v49 }
 0x540   :  { %4486 = vmatprep.mubr.bf16.mxu0 %v9215_v1 }
 0x547   :  { %4487 = vmatmul.mubr.bf16.gmra.mxu0 %v9216_v52 }
 0x548   :  { %4494 = vmatprep.mubr.bf16.mxu0 %v9217_v63 }
 0x54f   :  { %4495 = vmatmul.mubr.bf16.gmra.mxu0 %v9218_v24 }
 0x550   :  { %4502 = vmatprep.mubr.bf16.mxu0 %v9219_v25 }
 0x557   :  { %4503 = vmatmul.mubr.bf16.gmra.mxu0 %v9220_v17 }
 0x558   :  { %4510 = vmatprep.mubr.bf16.mxu0 %v9221_v10 }
 0x55f   :  { %4511 = vmatmul.mubr.bf16.gmra.mxu0 %v9222_v13 }
 0x560   :  { %4518 = vmatprep.mubr.bf16.mxu0 %v9223_v51 }
 0x567   :  { %4519 = vmatmul.mubr.bf16.gmra.mxu0 %v9224_v48 }
 0x568   :  { %4526 = vmatprep.mubr.bf16.mxu0 %v9225_v16 }
 0x56f   :  { %4527 = vmatmul.mubr.bf16.gmra.mxu0 %v9226_v60 }
 0x570   :  { %4534 = vmatprep.mubr.bf16.mxu0 %v9227_v62 }
 0x577   :  { %4535 = vmatmul.mubr.bf16.gmra.mxu0 %v9228_v20 }
 0x578   :  { %4542 = vmatprep.mubr.bf16.mxu0 %v9229_v38 }
 0x57f   :  { %4543 = vmatmul.mubr.bf16.gmra.mxu0 %v9230_v50 }
 0x580   :  { %4550 = vmatprep.mubr.bf16.mxu0 %v9231_v54 }
 0x587   :  { %4551 = vmatmul.mubr.bf16.gmra.mxu0 %v9232_v32 }
 0x588   :  { %4558 = vmatprep.mubr.bf16.mxu0 %v9233_v39 }
 0x58f   :  { %4559 = vmatmul.mubr.bf16.gmra.mxu0 %v9234_v9 }
 0x590   :  { %4566 = vmatprep.mubr.bf16.mxu0 %v9235_v34 }
 0x597   :  { %4567 = vmatmul.mubr.bf16.gmra.mxu0 %v9236_v6 }
 0x598   :  { %4574 = vmatprep.mubr.bf16.mxu0 %v9237_v61 }
 0x59f   :  { %4575 = vmatmul.mubr.bf16.gmra.mxu0 %v9238_v7 }
 0x5a0   :  { %4582 = vmatprep.mubr.bf16.mxu0 %v9239_v15 }
 0x5a7   :  { %4583 = vmatmul.mubr.bf16.gmra.mxu0 %v9240_v3 }
 0x5ef   :  { %v5654_v58 = vpop.f32.mrf.mxu0 }
 0x5f1   :  { %v5655_v46 = vpop.f32.mrf.mxu0 }
 0x5f2   :  { %v5656_v44 = vadd.f32 %v5655_v46, %v5654_v58  ;;  %v9241_v58 = vld [vmem:[#allocation68_spill] sm:$0xff] }
 0x5f3   :  { %v5657_v12 = vpop.f32.mrf.mxu0  ;;  %v4405_v55 = vadd.f32 %v8179_v0, %v9241_v58  ;;  %v9250_v58 = vld [vmem:[#allocation38_spill] sm:$0xff] }
 0x5f4   :  { %v4591_v45 = vmul.f32 %v5656_v44, %v7818_v35 }
 0x5f5   :  { %v5658_v36 = vpop.f32.mrf.mxu0 }
 0x5f6   :  { %v5659_v33 = vadd.f32 %v5658_v36, %v5657_v12  ;;  %v8186_v5 = vadd.f32 %v4591_v45, %v4398_v8 }
 0x5f7   :  { %v5660_v19 = vpop.f32.mrf.mxu0 }
 0x5f8   :  { %v4592_v2 = vmul.f32 %v5659_v33, %v7831_v40  ;;  %v8918_v53 = vmax.f32 %v8186_v5, 0.0  ;;  %v9243_v33 = vld [vmem:[#allocation45_spill] sm:$0xff] }
 0x5f9   :  { %v5661_v14 = vpop.f32.mrf.mxu0 }
 0x5fa   :  { %v5662_v42 = vadd.f32 %v5661_v14, %v5660_v19  ;;  %v8197_v35 = vsel %vm4689_vm0, %v8918_v53, -1e+30  ;;  %v8199_v47 = vadd.f32 %v4592_v2, %v4399_v43  ;;  %v4406_v19 = vadd.f32 %v8179_v0, %v9243_v33  ;;  %v9244_v43 = vld [vmem:[#allocation37_spill] sm:$0xff]  ;;  %v9285_v53 = vld [vmem:[#allocation44_spill] sm:$0xff] }
 0x5fb   :  { %v5663_v31 = vpop.f32.mrf.mxu0  ;;  %4722 = vmax.xlane.f32.xlu0 %v8197_v35 }
 0x5fc   :  { %v4593_v40 = vmul.f32 %v5662_v42, %v7835_v41  ;;  %v8916_v59 = vmax.f32 %v8199_v47, 0.0 }
 0x5fd   :  { %v5664_v11 = vpop.f32.mrf.mxu0 }
 0x5fe   :  { %v5665_v30 = vadd.f32 %v5664_v11, %v5663_v31  ;;  %v8210_v49 = vsel %vm4689_vm0, %v8916_v59, -1e+30  ;;  %v8212_v1 = vadd.f32 %v4593_v40, %v4400_v29 }
 0x5ff   :  { %v5666_v52 = vpop.f32.mrf.mxu0  ;;  %4724 = vmax.xlane.f32.xlu1 %v8210_v49 }
 0x600   :  { %v4594_v41 = vmul.f32 %v5665_v30, %v7843_v26  ;;  %v8915_v63 = vmax.f32 %v8212_v1, 0.0  ;;  %v9245_v30 = vld [vmem:[#allocation74_spill] sm:$0xff] }
 0x601   :  { %v5667_v24 = vpop.f32.mrf.mxu0 }
 0x602   :  { %v5668_v25 = vadd.f32 %v5667_v24, %v5666_v52  ;;  %v8223_v17 = vsel %vm4689_vm0, %v8915_v63, -1e+30  ;;  %v8225_v10 = vadd.f32 %v4594_v41, %v4401_v18  ;;  %v4407_v52 = vadd.f32 %v8179_v0, %v9245_v30  ;;  %v9246_v18 = vld [vmem:[#allocation57_spill] sm:$0xff]  ;;  %v9282_v63 = vld [vmem:[#allocation63_spill] sm:$0xff] }
 0x603   :  { %v5669_v13 = vpop.f32.mrf.mxu0  ;;  %4726 = vmax.xlane.f32.xlu0 %v8223_v17 }
 0x604   :  { %v4595_v26 = vmul.f32 %v5668_v25, %v7850_v22  ;;  %v8913_v51 = vmax.f32 %v8225_v10, 0.0 }
 0x605   :  { %v5670_v48 = vpop.f32.mrf.mxu0 }
 0x606   :  { %v5671_v16 = vadd.f32 %v5670_v48, %v5669_v13  ;;  %v8236_v60 = vsel %vm4689_vm0, %v8913_v51, -1e+30  ;;  %v8238_v62 = vadd.f32 %v4595_v26, %v4402_v27 }
 0x607   :  { %v5672_v20 = vpop.f32.mrf.mxu0  ;;  %4728 = vmax.xlane.f32.xlu0 %v8236_v60 }
 0x608   :  { %v4596_v22 = vmul.f32 %v5671_v16, %v7856_v21  ;;  %v8912_v38 = vmax.f32 %v8238_v62, 0.0  ;;  %v9247_v16 = vld [vmem:[#allocation20_spill] sm:$0xff] }
 0x609   :  { %v5673_v50 = vpop.f32.mrf.mxu0 }
 0x60a   :  { %v5674_v54 = vadd.f32 %v5673_v50, %v5672_v20  ;;  %v8249_v32 = vsel %vm4689_vm0, %v8912_v38, -1e+30  ;;  %v8251_v39 = vadd.f32 %v4596_v22, %v4403_v28  ;;  %v4408_v20 = vadd.f32 %v8179_v0, %v9247_v16  ;;  %v9248_v28 = vld [vmem:[#allocation58_spill] sm:$0xff] }
 0x60b   :  { %v5675_v9 = vpop.f32.mrf.mxu0  ;;  %4730 = vmax.xlane.f32.xlu1 %v8249_v32  ;;  %v9279_v38 = vld [vmem:[#allocation62_spill] sm:$0xff] }
 0x60c   :  { %v4597_v21 = vmul.f32 %v5674_v54, %v7863_v37  ;;  %v8910_v34 = vmax.f32 %v8251_v39, 0.0 }
 0x60d   :  { %v5676_v6 = vpop.f32.mrf.mxu0 }
 0x60e   :  { %v5677_v61 = vadd.f32 %v5676_v6, %v5675_v9  ;;  %v8262_v7 = vsel %vm4689_vm0, %v8910_v34, -1e+30  ;;  %v8264_v15 = vadd.f32 %v4597_v21, %v4404_v57 }
 0x60f   :  { %v5678_v3 = vpop.f32.mrf.mxu0  ;;  %4732 = vmax.xlane.f32.xlu0 %v8262_v7 }
 0x610   :  { %v4598_v37 = vmul.f32 %v5677_v61, %v9242_v56  ;;  %v8909_v46 = vmax.f32 %v8264_v15, 0.0  ;;  %v9249_v61 = vld [vmem:[#allocation18_spill] sm:$0xff] }
 0x611   :  { %v5679_v44 = vpop.f32.mrf.mxu0 }
 0x612   :  { %v5680_v12 = vadd.f32 %v5679_v44, %v5678_v3  ;;  %v8275_v8 = vsel %vm4689_vm0, %v8909_v46, -1e+30  ;;  %v8277_v45 = vadd.f32 %v4598_v37, %v4405_v55  ;;  %v4409_v3 = vadd.f32 %v8179_v0, %v9249_v61  ;;  %v9255_v61 = vld [vmem:[#allocation72_spill] sm:$0xff] }
 0x613   :  { %v5681_v36 = vpop.f32.mrf.mxu0  ;;  %4734 = vmax.xlane.f32.xlu1 %v8275_v8  ;;  %v9276_v46 = vld [vmem:[#allocation60_spill] sm:$0xff] }
 0x614   :  { %v4599_v2 = vmul.f32 %v5680_v12, %v9244_v43  ;;  %v8907_v14 = vmax.f32 %v8277_v45, 0.0 }
 0x615   :  { %v5682_v42 = vpop.f32.mrf.mxu0 }
 0x616   :  { %v5683_v31 = vadd.f32 %v5682_v42, %v5681_v36  ;;  %v8288_v29 = vsel %vm4689_vm0, %v8907_v14, -1e+30  ;;  %v8290_v40 = vadd.f32 %v4599_v2, %v4406_v19  ;;  %v9251_v19 = vld [vmem:[#allocation70_spill] sm:$0xff]  ;;  %v9252_v2 = vld [vmem:[#allocation12_spill] sm:$0xff] }
 0x617   :  { %v5684_v11 = vpop.f32.mrf.mxu0  ;;  %4736 = vmax.xlane.f32.xlu0 %v8288_v29  ;;  %v4410_v43 = vadd.f32 %v8179_v0, %v9251_v19 }
 0x618   :  { %v4600_v41 = vmul.f32 %v5683_v31, %v9246_v18  ;;  %v8906_v24 = vmax.f32 %v8290_v40, 0.0 }
 0x619   :  { %v5685_v25 = vpop.f32.mrf.mxu0 }
 0x61a   :  { %v5686_v13 = vadd.f32 %v5685_v25, %v5684_v11  ;;  %v8301_v27 = vsel %vm4689_vm0, %v8906_v24, -1e+30  ;;  %v8303_v26 = vadd.f32 %v4600_v41, %v4407_v52  ;;  %v9253_v25 = vld [vmem:[#allocation69_spill] sm:$0xff] }
 0x61b   :  { %v5687_v48 = vpop.f32.mrf.mxu0  ;;  %4738 = vmax.xlane.f32.xlu1 %v8301_v27  ;;  %v9273_v24 = vld [vmem:[#allocation61_spill] sm:$0xff] }
 0x61c   :  { %v4601_v22 = vmul.f32 %v5686_v13, %v9248_v28  ;;  %v8904_v50 = vmax.f32 %v8303_v26, 0.0  ;;  %v4411_v13 = vadd.f32 %v8179_v0, %v9253_v25 }
 0x61d   :  { %v5688_v54 = vpop.f32.mrf.mxu0 }
 0x61e   :  { %v5689_v9 = vadd.f32 %v5688_v54, %v5687_v48  ;;  %v8314_v57 = vsel %vm4689_vm0, %v8904_v50, -1e+30  ;;  %v8316_v21 = vadd.f32 %v4601_v22, %v4408_v20  ;;  %v9254_v48 = vld [vmem:[#allocation39_spill] sm:$0xff] }
 0x61f   :  { %v5690_v6 = vpop.f32.mrf.mxu0  ;;  %4740 = vmax.xlane.f32.xlu0 %v8314_v57 }
 0x620   :  { %v4602_v55 = vmul.f32 %v5689_v9, %v9250_v58  ;;  %v8903_v56 = vmax.f32 %v8316_v21, 0.0  ;;  %v9256_v58 = vld [vmem:[#allocation59_spill] sm:$0xff] }
 0x621   :  { %v5691_v37 = vpop.f32.mrf.mxu0 }
 0x622   :  { %v5692_v44 = vadd.f32 %v5691_v37, %v5690_v6  ;;  %v8327_v12 = vsel %vm4689_vm0, %v8903_v56, -1e+30  ;;  %v8329_v36 = vadd.f32 %v4602_v55, %v4409_v3  ;;  %v4412_v3 = vadd.f32 %v8179_v0, %v9255_v61  ;;  %v9270_v56 = vld [vmem:[#allocation43_spill] sm:$0xff] }
 0x623   :  { %v5693_v33 = vpop.f32.mrf.mxu0  ;;  %4742 = vmax.xlane.f32.xlu1 %v8327_v12 }
 0x624   :  { %v4603_v42 = vmul.f32 %v5692_v44, %v9252_v2  ;;  %v8901_v31 = vmax.f32 %v8329_v36, 0.0 }
 0x625   :  { %v5694_v11 = vpop.f32.mrf.mxu0 }
 0x626   :  { %v5695_v30 = vadd.f32 %v5694_v11, %v5693_v33  ;;  %v8340_v52 = vsel %vm4689_vm0, %v8901_v31, -1e+30  ;;  %v8342_v18 = vadd.f32 %v4603_v42, %v4410_v43  ;;  %v9257_v42 = vld [vmem:[#allocation71_spill] sm:$0xff] }
 0x627   :  { %v5696_v41 = vpop.f32.mrf.mxu0  ;;  %4744 = vmax.xlane.f32.xlu0 %v8340_v52  ;;  %v4413_v11 = vadd.f32 %v8179_v0, %v9257_v42 }
 0x628   :  { %v4604_v16 = vmul.f32 %v5695_v30, %v9254_v48  ;;  %v8900_v20 = vmax.f32 %v8342_v18, 0.0  ;;  %v9258_v30 = vld [vmem:[#allocation40_spill] sm:$0xff] }
 0x629   :  { %v5697_v28 = vpop.f32.mrf.mxu0 }
 0x62a   :  { %v5698_v22 = vadd.f32 %v5697_v28, %v5696_v41  ;;  %v8353_v54 = vsel %vm4689_vm0, %v8900_v20, -1e+30  ;;  %v8355_v9 = vadd.f32 %v4604_v16, %v4411_v13  ;;  %v9267_v20 = vld [vmem:[#allocation14_spill] sm:$0xff] }
 0x62b   :  { %v5699_v6 = vpop.f32.mrf.mxu0  ;;  %4746 = vmax.xlane.f32.xlu1 %v8353_v54 }
 0x62c   :  { %v4605_v55 = vmul.f32 %v5698_v22, %v9256_v58  ;;  %v8898_v37 = vmax.f32 %v8355_v9, 0.0 }
 0x62d   :  { %v5700_v44 = vpop.f32.mrf.mxu0 }
 0x62e   :  { %v5701_v33 = vadd.f32 %v5700_v44, %v5699_v6  ;;  %v8366_v19 = vsel %vm4689_vm0, %v8898_v37, -1e+30  ;;  %v8368_v43 = vadd.f32 %v4605_v55, %v4412_v3  ;;  %v9259_v6 = vld [vmem:[#allocation73_spill] sm:$0xff] }
 0x62f   :  { %v5702_v2 = vpop.f32.mrf.mxu0  ;;  %4748 = vmax.xlane.f32.xlu0 %v8366_v19  ;;  %v4414_v61 = vadd.f32 %v8179_v0, %v9259_v6  ;;  %v9260_v3 = vld [vmem:[#allocation13_spill] sm:$0xff] }
 0x630   :  { %v4606_v41 = vmul.f32 %v5701_v33, %v9258_v30  ;;  %v8897_v25 = vmax.f32 %v8368_v43, 0.0  ;;  %v9261_v30 = vld [vmem:[#allocation75_spill] sm:$0xff] }
 0x631   :  { %v5703_v13 = vpop.f32.mrf.mxu0 }
 0x632   :  { %v5704_v48 = vadd.f32 %v5703_v13, %v5702_v2  ;;  %v8379_v16 = vsel %vm4689_vm0, %v8897_v25, -1e+30  ;;  %v8381_v28 = vadd.f32 %v4606_v41, %v4413_v11  ;;  %v4415_v41 = vadd.f32 %v8179_v0, %v9261_v30  ;;  %v9262_v13 = vld [vmem:[#allocation41_spill] sm:$0xff]  ;;  %v9264_v25 = vld [vmem:[#allocation42_spill] sm:$0xff] }
 0x633   :  { %v5705_v22 = vpop.f32.mrf.mxu0  ;;  %4750 = vmax.xlane.f32.xlu1 %v8379_v16 }
 0x634   :  { %v4607_v58 = vmul.f32 %v5704_v48, %v9260_v3  ;;  %v8896_v55 = vmax.f32 %v8381_v28, 0.0 }
 0x635   :  { %v5706_v44 = vpop.f32.mrf.mxu0 }
 0x636   :  { %v5707_v33 = vadd.f32 %v5706_v44, %v5705_v22  ;;  %v8392_v2 = vsel %vm4689_vm0, %v8896_v55, -1e+30  ;;  %v8394_v42 = vadd.f32 %v4607_v58, %v4414_v61  ;;  %v9263_v55 = vld [vmem:[#allocation19_spill] sm:$0xff] }
 0x637   :  { %v5708_v11 = vpop.f32.mrf.mxu0  ;;  %4752 = vmax.xlane.f32.xlu0 %v8392_v2  ;;  %v4416_v30 = vadd.f32 %v8179_v0, %v9263_v55 }
 0x638   :  { %v4608_v48 = vmul.f32 %v5707_v33, %v9262_v13  ;;  %v8899_v6 = vmax.f32 %v8394_v42, 0.0 }
 0x639   :  { %v5709_v3 = vpop.f32.mrf.mxu0 }
 0x63a   :  { %v5710_v22 = vadd.f32 %v5709_v3, %v5708_v11  ;;  %v8405_v44 = vsel %vm4689_vm0, %v8899_v6, -1e+30  ;;  %v8407_v61 = vadd.f32 %v4608_v48, %v4415_v41  ;;  %v9266_v6 = vld [vmem:[#allocation24_spill] sm:$0xff] }
 0x63b   :  { %v5711_v58 = vpop.f32.mrf.mxu0  ;;  %4754 = vmax.xlane.f32.xlu1 %v8405_v44  ;;  %v4417_v55 = vadd.f32 %v8179_v0, %v9266_v6 }
 0x63c   :  { %v4609_v33 = vmul.f32 %v5710_v22, %v9264_v25  ;;  %v8902_v13 = vmax.f32 %v8407_v61, 0.0 }
 0x63d   :  { %v5712_v37 = vpop.f32.mrf.mxu0 }
 0x63e   :  { %v5713_v11 = vadd.f32 %v5712_v37, %v5711_v58  ;;  %v8418_v3 = vsel %vm4689_vm0, %v8902_v13, -1e+30  ;;  %v8420_v41 = vadd.f32 %v4609_v33, %v4416_v30  ;;  %v9269_v13 = vld [vmem:[#allocation23_spill] sm:$0xff] }
 0x63f   :  { %v5714_v48 = vpop.f32.mrf.mxu0  ;;  %4756 = vmax.xlane.f32.xlu0 %v8418_v3  ;;  %v4418_v6 = vadd.f32 %v8179_v0, %v9269_v13 }
 0x640   :  { %9265 = vst [vmem:[#allocation79_spill] sm:$0xff] %v8420_v41  ;;  %v4610_v25 = vmul.f32 %v5713_v11, %v9267_v20  ;;  %v8905_v22 = vmax.f32 %v8420_v41, 0.0 }
 0x641   :  { %v5715_v31 = vpop.f32.mrf.mxu0 }
 0x642   :  { %v5716_v37 = vadd.f32 %v5715_v31, %v5714_v48  ;;  %v8431_v58 = vsel %vm4689_vm0, %v8905_v22, -1e+30  ;;  %v8433_v30 = vadd.f32 %v4610_v25, %v4417_v55  ;;  %v9272_v22 = vld [vmem:[#allocation77_spill] sm:$0xff] }
 0x643   :  { %v5717_v33 = vpop.f32.mrf.mxu0  ;;  %4758 = vmax.xlane.f32.xlu1 %v8431_v58  ;;  %v4419_v13 = vadd.f32 %v8179_v0, %v9272_v22 }
 0x644   :  { %9268 = vst [vmem:[#allocation48_spill] sm:$0xff] %v8433_v30  ;;  %v4611_v20 = vmul.f32 %v5716_v37, %v9270_v56  ;;  %v8908_v11 = vmax.f32 %v8433_v30, 0.0 }
 0x645   :  { %v5718_v50 = vpop.f32.mrf.mxu0 }
 0x646   :  { %v5719_v31 = vadd.f32 %v5718_v50, %v5717_v33  ;;  %v8444_v48 = vsel %vm4689_vm0, %v8908_v11, -1e+30  ;;  %v8446_v55 = vadd.f32 %v4611_v20, %v4418_v6  ;;  %v9275_v11 = vld [vmem:[#allocation76_spill] sm:$0xff] }
 0x647   :  { %v5720_v25 = vpop.f32.mrf.mxu0  ;;  %4760 = vmax.xlane.f32.xlu0 %v8444_v48  ;;  %v4420_v22 = vadd.f32 %v8179_v0, %v9275_v11 }
 0x648   :  { %9271 = vst [vmem:[#allocation27_spill] sm:$0xff] %v8446_v55  ;;  %v4612_v56 = vmul.f32 %v5719_v31, %v9273_v24  ;;  %v8911_v37 = vmax.f32 %v8446_v55, 0.0 }
 0x649   :  { %v5721_v14 = vpop.f32.mrf.mxu0 }
 0x64a   :  { %v5722_v50 = vadd.f32 %v5721_v14, %v5720_v25  ;;  %v8457_v33 = vsel %vm4689_vm0, %v8911_v37, -1e+30  ;;  %v8459_v6 = vadd.f32 %v4612_v56, %v4419_v13  ;;  %v9278_v37 = vld [vmem:[#allocation17_spill] sm:$0xff] }
 0x64b   :  { %v5723_v20 = vpop.f32.mrf.mxu0  ;;  %4762 = vmax.xlane.f32.xlu1 %v8457_v33  ;;  %v4421_v11 = vadd.f32 %v8179_v0, %v9278_v37 }
 0x64c   :  { %9274 = vst [vmem:[#allocation50_spill] sm:$0xff] %v8459_v6  ;;  %v4613_v24 = vmul.f32 %v5722_v50, %v9276_v46  ;;  %v8914_v31 = vmax.f32 %v8459_v6, 0.0 }
 0x64d   :  { %v5724_v34 = vpop.f32.mrf.mxu0 }
 0x64e   :  { %v5725_v14 = vadd.f32 %v5724_v34, %v5723_v20  ;;  %v8470_v25 = vsel %vm4689_vm0, %v8914_v31, -1e+30  ;;  %v8472_v13 = vadd.f32 %v4613_v24, %v4420_v22  ;;  %v9281_v31 = vld [vmem:[#allocation46_spill] sm:$0xff] }
 0x64f   :  { %v5726_v56 = vpop.f32.mrf.mxu0  ;;  %4764 = vmax.xlane.f32.xlu0 %v8470_v25  ;;  %v4422_v37 = vadd.f32 %v8179_v0, %v9281_v31 }
 0x650   :  { %9277 = vst [vmem:[#allocation49_spill] sm:$0xff] %v8472_v13  ;;  %v4614_v46 = vmul.f32 %v5725_v14, %v9279_v38  ;;  %v8917_v50 = vmax.f32 %v8472_v13, 0.0 }
 0x651   :  { %v5727_v51 = vpop.f32.mrf.mxu0 }
 0x652   :  { %v5728_v34 = vadd.f32 %v5727_v51, %v5726_v56  ;;  %v8483_v20 = vsel %vm4689_vm0, %v8917_v50, -1e+30  ;;  %v8485_v22 = vadd.f32 %v4614_v46, %v4421_v11  ;;  %v9284_v50 = vld [vmem:[#allocation47_spill] sm:$0xff] }
 0x653   :  { %v5729_v24 = vpop.f32.mrf.mxu0  ;;  %4766 = vmax.xlane.f32.xlu1 %v8483_v20  ;;  %v4423_v31 = vadd.f32 %v8179_v0, %v9284_v50 }
 0x654   :  { %9280 = vst [vmem:[#allocation83_spill] sm:$0xff] %v8485_v22  ;;  %v4615_v38 = vmul.f32 %v5728_v34, %v9282_v63  ;;  %v8920_v14 = vmax.f32 %v8485_v22, 0.0  ;;  %v9288_v22 = vld [vmem:[#allocation16_spill] sm:$0xff] }
 0x655   :  { %v5730_v59 = vpop.f32.mrf.mxu0 }
 0x656   :  { %v5731_v51 = vadd.f32 %v5730_v59, %v5729_v24  ;;  %v8496_v56 = vsel %vm4689_vm0, %v8920_v14, -1e+30  ;;  %v8498_v11 = vadd.f32 %v4615_v38, %v4422_v37  ;;  %v9287_v14 = vld [vmem:[#allocation78_spill] sm:$0xff] }
 0x657   :  { %v5732_v46 = vpop.f32.mrf.mxu0  ;;  %4768 = vmax.xlane.f32.xlu0 %v8496_v56  ;;  %v4424_v50 = vadd.f32 %v8179_v0, %v9287_v14 }
 0x658   :  { %9283 = vst [vmem:[#allocation82_spill] sm:$0xff] %v8498_v11  ;;  %v4616_v63 = vmul.f32 %v5731_v51, %v9285_v53  ;;  %v8923_v34 = vmax.f32 %v8498_v11, 0.0  ;;  %v9291_v11 = vld [vmem:[#allocation15_spill] sm:$0xff] }
 0x659   :  { %v5733_v13 = vpop.f32.mrf.mxu0 }
 0x65a   :  { %v5734_v59 = vadd.f32 %v5733_v13, %v5732_v46  ;;  %v8509_v24 = vsel %vm4689_vm0, %v8923_v34, -1e+30  ;;  %v8511_v37 = vadd.f32 %v4616_v63, %v4423_v31  ;;  %v9290_v34 = vld [vmem:[#allocation21_spill] sm:$0xff] }
 0x65b   :  { %v5735_v38 = vpop.f32.mrf.mxu0  ;;  %4770 = vmax.xlane.f32.xlu1 %v8509_v24  ;;  %v4425_v14 = vadd.f32 %v8179_v0, %v9290_v34 }
 0x65c   :  { %9286 = vst [vmem:[#allocation52_spill] sm:$0xff] %v8511_v37  ;;  %v4617_v53 = vmul.f32 %v5734_v59, %v9288_v22  ;;  %v8926_v51 = vmax.f32 %v8511_v37, 0.0  ;;  %v9294_v37 = vld [vmem:[#allocation65_spill] sm:$0xff] }
 0x65d   :  { %v5736_v6 = vpop.f32.mrf.mxu0 }
 0x65e   :  { %v5737_v13 = vadd.f32 %v5736_v6, %v5735_v38  ;;  %v8522_v46 = vsel %vm4689_vm0, %v8926_v51, -1e+30  ;;  %v8524_v31 = vadd.f32 %v4617_v53, %v4424_v50  ;;  %v9293_v51 = vld [vmem:[#allocation22_spill] sm:$0xff] }
 0x65f   :  { %v5738_v63 = vpop.f32.mrf.mxu0  ;;  %4772 = vmax.xlane.f32.xlu0 %v8522_v46  ;;  %v4426_v34 = vadd.f32 %v8179_v0, %v9293_v51 }
 0x660   :  { %9289 = vst [vmem:[#allocation51_spill] sm:$0xff] %v8524_v31  ;;  %v4618_v22 = vmul.f32 %v5737_v13, %v9291_v11  ;;  %v8929_v59 = vmax.f32 %v8524_v31, 0.0  ;;  %v9297_v31 = vld [vmem:[#allocation64_spill] sm:$0xff] }
 0x661   :  { %v5739_v55 = vpop.f32.mrf.mxu0 }
 0x662   :  { %v5740_v6 = vadd.f32 %v5739_v55, %v5738_v63  ;;  %v8535_v38 = vsel %vm4689_vm0, %v8929_v59, -1e+30  ;;  %v8537_v50 = vadd.f32 %v4618_v22, %v4425_v14  ;;  %v9296_v59 = vld [vmem:[#allocation80_spill] sm:$0xff] }
 0x663   :  { %v5741_v53 = vpop.f32.mrf.mxu0  ;;  %4774 = vmax.xlane.f32.xlu1 %v8535_v38  ;;  %v4427_v51 = vadd.f32 %v8179_v0, %v9296_v59  ;;  %v4428_v59 = vadd.f32 %v8179_v0, %v8100_v4  ;;  %v9300_v4 = vld [vmem:[#allocation67_spill] sm:$0xff] }
 0x664   :  { %9292 = vst [vmem:[#allocation85_spill] sm:$0xff] %v8537_v50  ;;  %v4619_v11 = vmul.f32 %v5740_v6, %v9294_v37  ;;  %v8932_v13 = vmax.f32 %v8537_v50, 0.0  ;;  %v4372_v50 = vpop.f32.mrf.mxu1 }
 0x665   :  { %v5742_v30 = vpop.f32.mrf.mxu0 }
 0x666   :  { %v5743_v55 = vadd.f32 %v5742_v30, %v5741_v53  ;;  %v8548_v63 = vsel %vm4689_vm0, %v8932_v13, -1e+30  ;;  %v8550_v14 = vadd.f32 %v4619_v11, %v4426_v34  ;;  %v9298_v13 = vld [vmem:[#allocation66_spill] sm:$0xff] }
 0x667   :  { %v5744_v22 = vpop.f32.mrf.mxu0  ;;  %4776 = vmax.xlane.f32.xlu0 %v8548_v63 }
 0x668   :  { %9295 = vst [vmem:[#allocation84_spill] sm:$0xff] %v8550_v14  ;;  %v4620_v37 = vmul.f32 %v5743_v55, %v9297_v31  ;;  %v8934_v6 = vmax.f32 %v8550_v14, 0.0 }
 0x669   :  { %v5745_v41 = vpop.f32.mrf.mxu0 }
 0x66a   :  { %v5746_v30 = vadd.f32 %v5745_v41, %v5744_v22  ;;  %v8561_v53 = vsel %vm4689_vm0, %v8934_v6, -1e+30  ;;  %v8563_v34 = vadd.f32 %v4620_v37, %v4427_v51  ;;  %v4429_v37 = vadd.f32 %v8179_v0, %v4372_v50 }
 0x66b   :  { %v5747_v11 = vpop.f32.mrf.mxu0  ;;  %4778 = vmax.xlane.f32.xlu1 %v8561_v53 }
 0x66c   :  { %v4621_v31 = vmul.f32 %v5746_v30, %v9298_v13  ;;  %v8938_v55 = vmax.f32 %v8563_v34, 0.0 }
 0x66d   :  { %v5748_v41 = vpop.f32.mrf.mxu0 }
 0x66e   :  { %v5749_v22 = vadd.f32 %v5748_v41, %v5747_v11  ;;  %v8574_v6 = vsel %vm4689_vm0, %v8938_v55, -1e+30  ;;  %v8576_v51 = vadd.f32 %v4621_v31, %v4428_v59 }
 0x66f   :  { %4780 = vmax.xlane.f32.xlu0 %v8574_v6 }
 0x670   :  { %9299 = vst [vmem:[#allocation54_spill] sm:$0xff] %v8576_v51  ;;  %v4622_v14 = vmul.f32 %v5749_v22, %v9300_v4  ;;  %v8937_v13 = vmax.f32 %v8576_v51, 0.0  ;;  %v9305_v51 = vmax.f32 %v8212_v1, 0.0  ;;  %v9307_v1 = vmax.f32 %v8238_v62, 0.0 }
 0x671   :  { %v9309_v62 = vmax.f32 %v8264_v15, 0.0  ;;  %v9311_v15 = vmax.f32 %v8290_v40, 0.0  ;;  %v9313_v40 = vmax.f32 %v8316_v21, 0.0  ;;  %v9315_v21 = vmax.f32 %v8342_v18, 0.0 }
 0x672   :  { %v8586_v30 = vsel %vm4689_vm0, %v8937_v13, -1e+30  ;;  %v8588_v11 = vadd.f32 %v4622_v14, %v4429_v37  ;;  %v9317_v18 = vmax.f32 %v8368_v43, 0.0  ;;  %v9319_v43 = vmax.f32 %v8394_v42, 0.0 }
 0x673   :  { %4782 = vmax.xlane.f32.xlu1 %v8586_v30 }
 0x674   :  { %9301 = vst [vmem:[#allocation53_spill] sm:$0xff] %v8588_v11  ;;  %v8936_v59 = vmax.f32 %v8588_v11, 0.0 }
 0x676   :  { %v8596_v0 = vsel %vm4689_vm0, %v8936_v59, -1e+30 }
 0x677   :  { %4784 = vmax.xlane.f32.xlu0 %v8596_v0 }
 0x684   :  { %v8599_v50 = vpop.xlane.xlu0 %4722 }
 0x685   :  { %v4786_v31 = vsub.f32 %v8197_v35, %v8599_v50 }
 0x687   :  { %v4818_v41 = vmul.f32 1.442695, %v4786_v31 }
 0x688   :  { %v8603_v14 = vpop.xlane.xlu1 %4724 }
 0x689   :  { %6392 = vpow2.f32 %v4818_v41  ;;  %v4787_v22 = vsub.f32 %v8210_v49, %v8603_v14 }
 0x68b   :  { %v4820_v37 = vmul.f32 1.442695, %v4787_v22 }
 0x68c   :  { %v8607_v4 = vpop.xlane.xlu0 %4726 }
 0x68d   :  { %6394 = vpow2.f32 %v4820_v37  ;;  %v4788_v23 = vsub.f32 %v8223_v17, %v8607_v4 }
 0x68f   :  { %v4822_v59 = vmul.f32 1.442695, %v4788_v23 }
 0x690   :  { %v8611_v13 = vpop.xlane.xlu0 %4728 }
 0x691   :  { %6396 = vpow2.f32 %v4822_v59  ;;  %v4789_v35 = vsub.f32 %v8236_v60, %v8611_v13 }
 0x693   :  { %v4824_v31 = vmul.f32 1.442695, %v4789_v35 }
 0x694   :  { %v8615_v55 = vpop.xlane.xlu1 %4730 }
 0x695   :  { %6398 = vpow2.f32 %v4824_v31  ;;  %v4790_v49 = vsub.f32 %v8249_v32, %v8615_v55 }
 0x696   :  { %v6393_v41 = vpop.eup %6392 }
 0x697   :  { %v4826_v22 = vmul.f32 1.442695, %v4790_v49  ;;  %4882 = vadd.xlane.f32.xlu1 %v6393_v41 }
 0x698   :  { %v8619_v37 = vpop.xlane.xlu0 %4732 }
 0x699   :  { %6400 = vpow2.f32 %v4826_v22  ;;  %v4791_v17 = vsub.f32 %v8262_v7, %v8619_v37 }
 0x69a   :  { %v6395_v59 = vpop.eup %6394 }
 0x69b   :  { %v4828_v23 = vmul.f32 1.442695, %v4791_v17  ;;  %4884 = vadd.xlane.f32.xlu0 %v6395_v59 }
 0x69c   :  { %v8623_v60 = vpop.xlane.xlu1 %4734 }
 0x69d   :  { %6402 = vpow2.f32 %v4828_v23  ;;  %v4792_v35 = vsub.f32 %v8275_v8, %v8623_v60 }
 0x69e   :  { %v6397_v31 = vpop.eup %6396 }
 0x69f   :  { %v4830_v32 = vmul.f32 1.442695, %v4792_v35  ;;  %4886 = vadd.xlane.f32.xlu1 %v6397_v31 }
 0x6a0   :  { %v8627_v49 = vpop.xlane.xlu0 %4736 }
 0x6a1   :  { %6404 = vpow2.f32 %v4830_v32  ;;  %v4793_v41 = vsub.f32 %v8288_v29, %v8627_v49 }
 0x6a2   :  { %v6399_v22 = vpop.eup %6398 }
 0x6a3   :  { %v4832_v7 = vmul.f32 1.442695, %v4793_v41  ;;  %4888 = vadd.xlane.f32.xlu0 %v6399_v22 }
 0x6a4   :  { %v8631_v17 = vpop.xlane.xlu1 %4738 }
 0x6a5   :  { %6406 = vpow2.f32 %v4832_v7  ;;  %v4794_v59 = vsub.f32 %v8301_v27, %v8631_v17 }
 0x6a6   :  { %v6401_v23 = vpop.eup %6400 }
 0x6a7   :  { %v4834_v8 = vmul.f32 1.442695, %v4794_v59  ;;  %4890 = vadd.xlane.f32.xlu1 %v6401_v23 }
 0x6a8   :  { %v8635_v35 = vpop.xlane.xlu0 %4740 }
 0x6a9   :  { %6408 = vpow2.f32 %v4834_v8  ;;  %v4795_v31 = vsub.f32 %v8314_v57, %v8635_v35 }
 0x6aa   :  { %v6403_v32 = vpop.eup %6402 }
 0x6ab   :  { %v4836_v29 = vmul.f32 1.442695, %v4795_v31  ;;  %4892 = vadd.xlane.f32.xlu0 %v6403_v32 }
 0x6ac   :  { %v8639_v41 = vpop.xlane.xlu1 %4742 }
 0x6ad   :  { %6410 = vpow2.f32 %v4836_v29  ;;  %v4796_v22 = vsub.f32 %v8327_v12, %v8639_v41 }
 0x6ae   :  { %v6405_v7 = vpop.eup %6404 }
 0x6af   :  { %v4838_v27 = vmul.f32 1.442695, %v4796_v22  ;;  %4894 = vadd.xlane.f32.xlu1 %v6405_v7 }
 0x6b0   :  { %v8643_v59 = vpop.xlane.xlu0 %4744 }
 0x6b1   :  { %6412 = vpow2.f32 %v4838_v27  ;;  %v4797_v23 = vsub.f32 %v8340_v52, %v8643_v59 }
 0x6b2   :  { %v6407_v8 = vpop.eup %6406 }
 0x6b3   :  { %v4840_v57 = vmul.f32 1.442695, %v4797_v23  ;;  %4896 = vadd.xlane.f32.xlu0 %v6407_v8 }
 0x6b4   :  { %v8647_v31 = vpop.xlane.xlu1 %4746 }
 0x6b5   :  { %6414 = vpow2.f32 %v4840_v57  ;;  %v4798_v32 = vsub.f32 %v8353_v54, %v8647_v31 }
 0x6b6   :  { %v6409_v29 = vpop.eup %6408 }
 0x6b7   :  { %v4842_v12 = vmul.f32 1.442695, %v4798_v32  ;;  %4898 = vadd.xlane.f32.xlu1 %v6409_v29 }
 0x6b8   :  { %v8651_v22 = vpop.xlane.xlu0 %4748 }
 0x6b9   :  { %6416 = vpow2.f32 %v4842_v12  ;;  %v4799_v7 = vsub.f32 %v8366_v19, %v8651_v22 }
 0x6ba   :  { %v6411_v27 = vpop.eup %6410 }
 0x6bb   :  { %v4844_v52 = vmul.f32 1.442695, %v4799_v7  ;;  %4900 = vadd.xlane.f32.xlu0 %v6411_v27 }
 0x6bc   :  { %v8655_v23 = vpop.xlane.xlu1 %4750 }
 0x6bd   :  { %6418 = vpow2.f32 %v4844_v52  ;;  %v4800_v8 = vsub.f32 %v8379_v16, %v8655_v23 }
 0x6be   :  { %v6413_v57 = vpop.eup %6412 }
 0x6bf   :  { %v4846_v54 = vmul.f32 1.442695, %v4800_v8  ;;  %4902 = vadd.xlane.f32.xlu1 %v6413_v57 }
 0x6c0   :  { %v8659_v32 = vpop.xlane.xlu0 %4752 }
 0x6c1   :  { %6420 = vpow2.f32 %v4846_v54  ;;  %v4801_v29 = vsub.f32 %v8392_v2, %v8659_v32 }
 0x6c2   :  { %v6415_v12 = vpop.eup %6414 }
 0x6c3   :  { %v4848_v19 = vmul.f32 1.442695, %v4801_v29  ;;  %4904 = vadd.xlane.f32.xlu0 %v6415_v12 }
 0x6c4   :  { %v8663_v7 = vpop.xlane.xlu1 %4754 }
 0x6c5   :  { %6422 = vpow2.f32 %v4848_v19  ;;  %v4802_v27 = vsub.f32 %v8405_v44, %v8663_v7 }
 0x6c6   :  { %v6417_v52 = vpop.eup %6416 }
 0x6c7   :  { %v4850_v16 = vmul.f32 1.442695, %v4802_v27  ;;  %4906 = vadd.xlane.f32.xlu1 %v6417_v52 }
 0x6c8   :  { %v8667_v8 = vpop.xlane.xlu0 %4756 }
 0x6c9   :  { %6424 = vpow2.f32 %v4850_v16  ;;  %v4803_v57 = vsub.f32 %v8418_v3, %v8667_v8 }
 0x6ca   :  { %v6419_v54 = vpop.eup %6418 }
 0x6cb   :  { %v4852_v2 = vmul.f32 1.442695, %v4803_v57  ;;  %4908 = vadd.xlane.f32.xlu0 %v6419_v54 }
 0x6cc   :  { %v8671_v29 = vpop.xlane.xlu1 %4758 }
 0x6cd   :  { %6426 = vpow2.f32 %v4852_v2  ;;  %v4804_v12 = vsub.f32 %v8431_v58, %v8671_v29 }
 0x6ce   :  { %v6421_v19 = vpop.eup %6420 }
 0x6cf   :  { %v4854_v44 = vmul.f32 1.442695, %v4804_v12  ;;  %4910 = vadd.xlane.f32.xlu1 %v6421_v19 }
 0x6d0   :  { %v8675_v27 = vpop.xlane.xlu0 %4760 }
 0x6d1   :  { %6428 = vpow2.f32 %v4854_v44  ;;  %v4805_v52 = vsub.f32 %v8444_v48, %v8675_v27 }
 0x6d2   :  { %v6423_v16 = vpop.eup %6422 }
 0x6d3   :  { %v4856_v3 = vmul.f32 1.442695, %v4805_v52  ;;  %4912 = vadd.xlane.f32.xlu0 %v6423_v16 }
 0x6d4   :  { %v8679_v57 = vpop.xlane.xlu1 %4762 }
 0x6d5   :  { %6430 = vpow2.f32 %v4856_v3  ;;  %v4806_v54 = vsub.f32 %v8457_v33, %v8679_v57 }
 0x6d6   :  { %v6425_v2 = vpop.eup %6424 }
 0x6d7   :  { %v4858_v58 = vmul.f32 1.442695, %v4806_v54  ;;  %4914 = vadd.xlane.f32.xlu1 %v6425_v2 }
 0x6d8   :  { %v8683_v12 = vpop.xlane.xlu0 %4764 }
 0x6d9   :  { %6432 = vpow2.f32 %v4858_v58  ;;  %v4807_v19 = vsub.f32 %v8470_v25, %v8683_v12 }
 0x6da   :  { %v6427_v44 = vpop.eup %6426 }
 0x6db   :  { %v4860_v48 = vmul.f32 1.442695, %v4807_v19  ;;  %4916 = vadd.xlane.f32.xlu0 %v6427_v44 }
 0x6dc   :  { %v8687_v52 = vpop.xlane.xlu1 %4766 }
 0x6dd   :  { %6434 = vpow2.f32 %v4860_v48  ;;  %v4808_v16 = vsub.f32 %v8483_v20, %v8687_v52 }
 0x6de   :  { %v6429_v3 = vpop.eup %6428 }
 0x6df   :  { %v4862_v33 = vmul.f32 1.442695, %v4808_v16  ;;  %4918 = vadd.xlane.f32.xlu1 %v6429_v3 }
 0x6e0   :  { %v8691_v54 = vpop.xlane.xlu0 %4768 }
 0x6e1   :  { %6436 = vpow2.f32 %v4862_v33  ;;  %v4809_v2 = vsub.f32 %v8496_v56, %v8691_v54 }
 0x6e2   :  { %v6431_v58 = vpop.eup %6430 }
 0x6e3   :  { %v4864_v25 = vmul.f32 1.442695, %v4809_v2  ;;  %4920 = vadd.xlane.f32.xlu0 %v6431_v58 }
 0x6e4   :  { %v8695_v19 = vpop.xlane.xlu1 %4770 }
 0x6e5   :  { %6438 = vpow2.f32 %v4864_v25  ;;  %v4810_v44 = vsub.f32 %v8509_v24, %v8695_v19 }
 0x6e6   :  { %v6433_v48 = vpop.eup %6432 }
 0x6e7   :  { %v4866_v20 = vmul.f32 1.442695, %v4810_v44  ;;  %4922 = vadd.xlane.f32.xlu1 %v6433_v48 }
 0x6e8   :  { %v8699_v16 = vpop.xlane.xlu0 %4772 }
 0x6e9   :  { %6440 = vpow2.f32 %v4866_v20  ;;  %v4811_v3 = vsub.f32 %v8522_v46, %v8699_v16 }
 0x6ea   :  { %v6435_v33 = vpop.eup %6434 }
 0x6eb   :  { %v4868_v56 = vmul.f32 1.442695, %v4811_v3  ;;  %4924 = vadd.xlane.f32.xlu0 %v6435_v33 }
 0x6ec   :  { %v8703_v2 = vpop.xlane.xlu1 %4774 }
 0x6ed   :  { %6442 = vpow2.f32 %v4868_v56  ;;  %v4812_v58 = vsub.f32 %v8535_v38, %v8703_v2 }
 0x6ee   :  { %v6437_v25 = vpop.eup %6436 }
 0x6ef   :  { %v4870_v24 = vmul.f32 1.442695, %v4812_v58  ;;  %4926 = vadd.xlane.f32.xlu1 %v6437_v25 }
 0x6f0   :  { %v8707_v44 = vpop.xlane.xlu0 %4776 }
 0x6f1   :  { %6444 = vpow2.f32 %v4870_v24  ;;  %v4813_v48 = vsub.f32 %v8548_v63, %v8707_v44 }
 0x6f2   :  { %v6439_v20 = vpop.eup %6438 }
 0x6f3   :  { %v4872_v46 = vmul.f32 1.442695, %v4813_v48  ;;  %4928 = vadd.xlane.f32.xlu0 %v6439_v20 }
 0x6f4   :  { %v8711_v3 = vpop.xlane.xlu1 %4778 }
 0x6f5   :  { %6446 = vpow2.f32 %v4872_v46  ;;  %v4814_v33 = vsub.f32 %v8561_v53, %v8711_v3 }
 0x6f6   :  { %v6441_v56 = vpop.eup %6440 }
 0x6f7   :  { %v4874_v38 = vmul.f32 1.442695, %v4814_v33  ;;  %4930 = vadd.xlane.f32.xlu1 %v6441_v56 }
 0x6f8   :  { %v8715_v58 = vpop.xlane.xlu0 %4780 }
 0x6f9   :  { %6448 = vpow2.f32 %v4874_v38  ;;  %v4815_v25 = vsub.f32 %v8574_v6, %v8715_v58 }
 0x6fa   :  { %v6443_v24 = vpop.eup %6442 }
 0x6fb   :  { %v4876_v63 = vmul.f32 1.442695, %v4815_v25  ;;  %4932 = vadd.xlane.f32.xlu0 %v6443_v24 }
 0x6fc   :  { %v8719_v48 = vpop.xlane.xlu1 %4782 }
 0x6fd   :  { %6450 = vpow2.f32 %v4876_v63  ;;  %v4816_v20 = vsub.f32 %v8586_v30, %v8719_v48 }
 0x6fe   :  { %v6445_v46 = vpop.eup %6444 }
 0x6ff   :  { %v4878_v53 = vmul.f32 1.442695, %v4816_v20  ;;  %4934 = vadd.xlane.f32.xlu1 %v6445_v46 }
 0x700   :  { %v8723_v33 = vpop.xlane.xlu0 %4784 }
 0x701   :  { %9302 = vst [vmem:[#allocation87_spill] sm:$0xff] %v8723_v33  ;;  %6452 = vpow2.f32 %v4878_v53  ;;  %v4817_v56 = vsub.f32 %v8596_v0, %v8723_v33 }
 0x702   :  { %v6447_v38 = vpop.eup %6446 }
 0x703   :  { %v4880_v6 = vmul.f32 1.442695, %v4817_v56  ;;  %4936 = vadd.xlane.f32.xlu0 %v6447_v38  ;;  %v9303_v56 = vmax.f32 %v8186_v5, 0.0  ;;  %v5012_v5 = vsub.f32 %v9305_v51, %v8607_v4  ;;  %v5014_v51 = vsub.f32 %v9307_v1, %v8615_v55 }
 0x704   :  { %v5016_v55 = vsub.f32 %v9309_v62, %v8623_v60  ;;  %v5018_v60 = vsub.f32 %v9311_v15, %v8631_v17  ;;  %v5020_v17 = vsub.f32 %v9313_v40, %v8639_v41  ;;  %v5022_v41 = vsub.f32 %v9315_v21, %v8647_v31  ;;  %v9325_v21 = vld [vmem:[#allocation27_spill] sm:$0xff] }
 0x705   :  { %6454 = vpow2.f32 %v4880_v6  ;;  %v5010_v38 = vsub.f32 %v9303_v56, %v8599_v50  ;;  %v5024_v31 = vsub.f32 %v9317_v18, %v8655_v23  ;;  %v5026_v23 = vsub.f32 %v9319_v43, %v8663_v7  ;;  %v9329_v18 = vld [vmem:[#allocation49_spill] sm:$0xff]  ;;  %v9333_v43 = vld [vmem:[#allocation82_spill] sm:$0xff] }
 0x706   :  { %v6449_v25 = vpop.eup %6448 }
 0x707   :  { %4938 = vadd.xlane.f32.xlu1 %v6449_v25 }
 0x70a   :  { %v6451_v24 = vpop.eup %6450 }
 0x70b   :  { %4940 = vadd.xlane.f32.xlu0 %v6451_v24 }
 0x70e   :  { %v6453_v63 = vpop.eup %6452 }
 0x70f   :  { %4942 = vadd.xlane.f32.xlu1 %v6453_v63 }
 0x712   :  { %v6455_v30 = vpop.eup %6454 }
 0x713   :  { %4944 = vadd.xlane.f32.xlu0 %v6455_v30  ;;  %v9304_v30 = vmax.f32 %v8199_v47, 0.0  ;;  %v9306_v47 = vmax.f32 %v8225_v10, 0.0  ;;  %v9308_v10 = vmax.f32 %v8251_v39, 0.0  ;;  %v9310_v39 = vmax.f32 %v8277_v45, 0.0 }
 0x714   :  { %v9312_v45 = vmax.f32 %v8303_v26, 0.0  ;;  %v9314_v26 = vmax.f32 %v8329_v36, 0.0  ;;  %v9316_v36 = vmax.f32 %v8355_v9, 0.0  ;;  %v9318_v9 = vmax.f32 %v8381_v28, 0.0 }
 0x715   :  { %v9320_v28 = vmax.f32 %v8407_v61, 0.0 }
 0x720   :  { %v4883_v20 = vpop.xlane.xlu1 %4882 }
 0x721   :  { %6456 = vlog2.f32 %v4883_v20  ;;  %v5011_v20 = vsub.f32 %v9304_v30, %v8603_v14  ;;  %v5013_v14 = vsub.f32 %v9306_v47, %v8611_v13  ;;  %v5015_v13 = vsub.f32 %v9308_v10, %v8619_v37 }
 0x722   :  { %v5017_v37 = vsub.f32 %v9310_v39, %v8627_v49  ;;  %v5019_v49 = vsub.f32 %v9312_v45, %v8635_v35  ;;  %v5021_v35 = vsub.f32 %v9314_v26, %v8643_v59  ;;  %v5023_v59 = vsub.f32 %v9316_v36, %v8651_v22  ;;  %v9327_v36 = vld [vmem:[#allocation50_spill] sm:$0xff] }
 0x723   :  { %v5025_v22 = vsub.f32 %v9318_v9, %v8659_v32  ;;  %v5027_v32 = vsub.f32 %v9320_v28, %v8667_v8  ;;  %v9331_v9 = vld [vmem:[#allocation83_spill] sm:$0xff]  ;;  %v9335_v28 = vld [vmem:[#allocation52_spill] sm:$0xff] }
 0x724   :  { %v4885_v46 = vpop.xlane.xlu0 %4884 }
 0x725   :  { %6458 = vlog2.f32 %v4885_v46 }
 0x728   :  { %v4887_v53 = vpop.xlane.xlu1 %4886 }
 0x729   :  { %6460 = vlog2.f32 %v4887_v53 }
 0x72c   :  { %v4889_v11 = vpop.xlane.xlu0 %4888 }
 0x72d   :  { %6462 = vlog2.f32 %v4889_v11 }
 0x72e   :  { %v6457_v0 = vpop.eup %6456 }
 0x72f   :  { %v4947_v6 = vmul.f32 0.6931472, %v6457_v0 }
 0x730   :  { %v4891_v25 = vpop.xlane.xlu1 %4890 }
 0x731   :  { %v5042_v24 = vsub.f32 %v5010_v38, %v4947_v6  ;;  %6464 = vlog2.f32 %v4891_v25 }
 0x732   :  { %v6459_v63 = vpop.eup %6458 }
 0x733   :  { %5074 = vst [vmem:[#allocation7] sm:$0xff] %v5042_v24  ;;  %v4949_v46 = vmul.f32 0.6931472, %v6459_v63 }
 0x734   :  { %v4893_v33 = vpop.xlane.xlu0 %4892 }
 0x735   :  { %v5043_v53 = vsub.f32 %v5011_v20, %v4949_v46  ;;  %6466 = vlog2.f32 %v4893_v33 }
 0x736   :  { %v6461_v11 = vpop.eup %6460 }
 0x737   :  { %5075 = vst [vmem:[#allocation7 + $0x8] sm:$0xff] %v5043_v53  ;;  %v4951_v50 = vmul.f32 0.6931472, %v6461_v11 }
 0x738   :  { %v4895_v0 = vpop.xlane.xlu1 %4894 }
 0x739   :  { %v5044_v56 = vsub.f32 %v5012_v5, %v4951_v50  ;;  %6468 = vlog2.f32 %v4895_v0 }
 0x73a   :  { %v6463_v38 = vpop.eup %6462 }
 0x73b   :  { %5076 = vst [vmem:[#allocation7 + $0x10] sm:$0xff] %v5044_v56  ;;  %v4953_v6 = vmul.f32 0.6931472, %v6463_v38 }
 0x73c   :  { %v4897_v25 = vpop.xlane.xlu0 %4896 }
 0x73d   :  { %v5045_v24 = vsub.f32 %v5013_v14, %v4953_v6  ;;  %6470 = vlog2.f32 %v4897_v25 }
 0x73e   :  { %v6465_v33 = vpop.eup %6464 }
 0x73f   :  { %5077 = vst [vmem:[#allocation7 + $0x18] sm:$0xff] %v5045_v24  ;;  %v4955_v4 = vmul.f32 0.6931472, %v6465_v33 }
 0x740   :  { %v4899_v63 = vpop.xlane.xlu1 %4898 }
 0x741   :  { %v5046_v30 = vsub.f32 %v5014_v51, %v4955_v4  ;;  %6472 = vlog2.f32 %v4899_v63 }
 0x742   :  { %v6467_v20 = vpop.eup %6466 }
 0x743   :  { %5078 = vst [vmem:[#allocation7 + $0x20] sm:$0xff] %v5046_v30  ;;  %v4957_v46 = vmul.f32 0.6931472, %v6467_v20 }
 0x744   :  { %v4901_v53 = vpop.xlane.xlu0 %4900 }
 0x745   :  { %v5047_v11 = vsub.f32 %v5015_v13, %v4957_v46  ;;  %6474 = vlog2.f32 %v4901_v53 }
 0x746   :  { %v6469_v5 = vpop.eup %6468 }
 0x747   :  { %5079 = vst [vmem:[#allocation7 + $0x28] sm:$0xff] %v5047_v11  ;;  %v4959_v50 = vmul.f32 0.6931472, %v6469_v5 }
 0x748   :  { %v4903_v0 = vpop.xlane.xlu1 %4902 }
 0x749   :  { %v5048_v56 = vsub.f32 %v5016_v55, %v4959_v50  ;;  %6476 = vlog2.f32 %v4903_v0 }
 0x74a   :  { %v6471_v38 = vpop.eup %6470 }
 0x74b   :  { %5080 = vst [vmem:[#allocation7 + $0x30] sm:$0xff] %v5048_v56  ;;  %v4961_v47 = vmul.f32 0.6931472, %v6471_v38 }
 0x74c   :  { %v4905_v14 = vpop.xlane.xlu0 %4904 }
 0x74d   :  { %v5049_v6 = vsub.f32 %v5017_v37, %v4961_v47  ;;  %6478 = vlog2.f32 %v4905_v14 }
 0x74e   :  { %v6473_v25 = vpop.eup %6472 }
 0x74f   :  { %5081 = vst [vmem:[#allocation7 + $0x38] sm:$0xff] %v5049_v6  ;;  %v4963_v24 = vmul.f32 0.6931472, %v6473_v25 }
 0x750   :  { %v4907_v33 = vpop.xlane.xlu1 %4906 }
 0x751   :  { %v5050_v1 = vsub.f32 %v5018_v60, %v4963_v24  ;;  %6480 = vlog2.f32 %v4907_v33 }
 0x752   :  { %v6475_v51 = vpop.eup %6474 }
 0x753   :  { %5082 = vst [vmem:[#allocation7 + $0x40] sm:$0xff] %v5050_v1  ;;  %v4965_v4 = vmul.f32 0.6931472, %v6475_v51 }
 0x754   :  { %v4909_v63 = vpop.xlane.xlu0 %4908 }
 0x755   :  { %v5051_v30 = vsub.f32 %v5019_v49, %v4965_v4  ;;  %6482 = vlog2.f32 %v4909_v63 }
 0x756   :  { %v6477_v20 = vpop.eup %6476 }
 0x757   :  { %5083 = vst [vmem:[#allocation7 + $0x48] sm:$0xff] %v5051_v30  ;;  %v4967_v10 = vmul.f32 0.6931472, %v6477_v20 }
 0x758   :  { %v4911_v13 = vpop.xlane.xlu1 %4910 }
 0x759   :  { %v5052_v46 = vsub.f32 %v5020_v17, %v4967_v10  ;;  %6484 = vlog2.f32 %v4911_v13  ;;  %v9321_v10 = vld [vmem:[#allocation79_spill] sm:$0xff] }
 0x75a   :  { %v6479_v53 = vpop.eup %6478  ;;  %v9322_v42 = vmax.f32 %v9321_v10, 0.0  ;;  %v9337_v10 = vld [vmem:[#allocation51_spill] sm:$0xff] }
 0x75b   :  { %5084 = vst [vmem:[#allocation7 + $0x50] sm:$0xff] %v5052_v46  ;;  %v4969_v11 = vmul.f32 0.6931472, %v6479_v53 }
 0x75c   :  { %v4913_v5 = vpop.xlane.xlu0 %4912  ;;  %v5028_v7 = vsub.f32 %v9322_v42, %v8671_v29  ;;  %v9338_v42 = vmax.f32 %v9337_v10, 0.0 }
 0x75d   :  { %v5053_v62 = vsub.f32 %v5021_v35, %v4969_v11  ;;  %6486 = vlog2.f32 %v4913_v5  ;;  %v9323_v35 = vld [vmem:[#allocation48_spill] sm:$0xff] }
 0x75e   :  { %v6481_v55 = vpop.eup %6480  ;;  %v9324_v61 = vmax.f32 %v9323_v35, 0.0 }
 0x75f   :  { %5085 = vst [vmem:[#allocation7 + $0x58] sm:$0xff] %v5053_v62  ;;  %v4971_v50 = vmul.f32 0.6931472, %v6481_v55 }
 0x760   :  { %v4915_v0 = vpop.xlane.xlu1 %4914  ;;  %v5029_v8 = vsub.f32 %v9324_v61, %v8675_v27 }
 0x761   :  { %v5054_v56 = vsub.f32 %v5022_v41, %v4971_v50  ;;  %6488 = vlog2.f32 %v4915_v0  ;;  %v9326_v41 = vmax.f32 %v9325_v21, 0.0 }
 0x762   :  { %v6483_v38 = vpop.eup %6482 }
 0x763   :  { %5086 = vst [vmem:[#allocation7 + $0x60] sm:$0xff] %v5054_v56  ;;  %v4973_v39 = vmul.f32 0.6931472, %v6483_v38  ;;  %v5030_v29 = vsub.f32 %v9326_v41, %v8679_v57 }
 0x764   :  { %v4917_v37 = vpop.xlane.xlu0 %4916 }
 0x765   :  { %v5055_v47 = vsub.f32 %v5023_v59, %v4973_v39  ;;  %6490 = vlog2.f32 %v4917_v37  ;;  %v9328_v59 = vmax.f32 %v9327_v36, 0.0  ;;  %v9344_v36 = vld [vmem:[#allocation54_spill] sm:$0xff] }
 0x766   :  { %v6485_v14 = vpop.eup %6484 }
 0x767   :  { %5087 = vst [vmem:[#allocation7 + $0x68] sm:$0xff] %v5055_v47  ;;  %v4975_v6 = vmul.f32 0.6931472, %v6485_v14  ;;  %v5031_v27 = vsub.f32 %v9328_v59, %v8683_v12  ;;  %v9345_v59 = vmax.f32 %v9344_v36, 0.0 }
 0x768   :  { %v4919_v25 = vpop.xlane.xlu1 %4918 }
 0x769   :  { %v5056_v15 = vsub.f32 %v5024_v31, %v4975_v6  ;;  %6492 = vlog2.f32 %v4919_v25  ;;  %v9330_v31 = vmax.f32 %v9329_v18, 0.0 }
 0x76a   :  { %v6487_v60 = vpop.eup %6486 }
 0x76b   :  { %5088 = vst [vmem:[#allocation7 + $0x70] sm:$0xff] %v5056_v15  ;;  %v4977_v24 = vmul.f32 0.6931472, %v6487_v60  ;;  %v5032_v57 = vsub.f32 %v9330_v31, %v8687_v52 }
 0x76c   :  { %v4921_v33 = vpop.xlane.xlu0 %4920 }
 0x76d   :  { %v5057_v1 = vsub.f32 %v5025_v22, %v4977_v24  ;;  %6494 = vlog2.f32 %v4921_v33  ;;  %v9332_v22 = vmax.f32 %v9331_v9, 0.0 }
 0x76e   :  { %v6489_v51 = vpop.eup %6488 }
 0x76f   :  { %5089 = vst [vmem:[#allocation7 + $0x78] sm:$0xff] %v5057_v1  ;;  %v4979_v45 = vmul.f32 0.6931472, %v6489_v51  ;;  %v5033_v12 = vsub.f32 %v9332_v22, %v8691_v54 }
 0x770   :  { %v4923_v49 = vpop.xlane.xlu1 %4922 }
 0x771   :  { %v5058_v4 = vsub.f32 %v5026_v23, %v4979_v45  ;;  %6496 = vlog2.f32 %v4923_v49  ;;  %v9334_v23 = vmax.f32 %v9333_v43, 0.0 }
 0x772   :  { %v6491_v63 = vpop.eup %6490 }
 0x773   :  { %5090 = vst [vmem:[#allocation7 + $0x80] sm:$0xff] %v5058_v4  ;;  %v4981_v30 = vmul.f32 0.6931472, %v6491_v63  ;;  %v5034_v52 = vsub.f32 %v9334_v23, %v8695_v19  ;;  %v5036_v19 = vsub.f32 %v9338_v42, %v8703_v2 }
 0x774   :  { %v4925_v20 = vpop.xlane.xlu0 %4924 }
 0x775   :  { %v5059_v40 = vsub.f32 %v5027_v32, %v4981_v30  ;;  %6498 = vlog2.f32 %v4925_v20  ;;  %v9336_v32 = vmax.f32 %v9335_v28, 0.0 }
 0x776   :  { %v6493_v17 = vpop.eup %6492 }
 0x777   :  { %5091 = vst [vmem:[#allocation7 + $0x88] sm:$0xff] %v5059_v40  ;;  %v4983_v13 = vmul.f32 0.6931472, %v6493_v17  ;;  %v5035_v54 = vsub.f32 %v9336_v32, %v8699_v16 }
 0x778   :  { %v4927_v46 = vpop.xlane.xlu1 %4926 }
 0x779   :  { %v5060_v53 = vsub.f32 %v5028_v7, %v4983_v13  ;;  %6500 = vlog2.f32 %v4927_v46 }
 0x77a   :  { %v6495_v26 = vpop.eup %6494 }
 0x77b   :  { %5092 = vst [vmem:[#allocation7 + $0x90] sm:$0xff] %v5060_v53  ;;  %v4985_v11 = vmul.f32 0.6931472, %v6495_v26  ;;  %v9339_v26 = vld [vmem:[#allocation85_spill] sm:$0xff] }
 0x77c   :  { %v4929_v5 = vpop.xlane.xlu0 %4928  ;;  %v9340_v35 = vmax.f32 %v9339_v26, 0.0 }
 0x77d   :  { %v5061_v62 = vsub.f32 %v5029_v8, %v4985_v11  ;;  %6502 = vlog2.f32 %v4929_v5 }
 0x77e   :  { %v6497_v55 = vpop.eup %6496  ;;  %v5037_v16 = vsub.f32 %v9340_v35, %v8707_v44 }
 0x77f   :  { %5093 = vst [vmem:[#allocation7 + $0x98] sm:$0xff] %v5061_v62  ;;  %v4987_v50 = vmul.f32 0.6931472, %v6497_v55  ;;  %v9341_v62 = vld [vmem:[#allocation84_spill] sm:$0xff] }
 0x780   :  { %v4931_v0 = vpop.xlane.xlu1 %4930  ;;  %v9342_v55 = vmax.f32 %v9341_v62, 0.0 }
 0x781   :  { %v5062_v56 = vsub.f32 %v5030_v29, %v4987_v50  ;;  %6504 = vlog2.f32 %v4931_v0  ;;  %v9343_v50 = vmax.f32 %v8563_v34, 0.0 }
 0x782   :  { %v6499_v38 = vpop.eup %6498  ;;  %v5038_v2 = vsub.f32 %v9342_v55, %v8711_v3 }
 0x783   :  { %5094 = vst [vmem:[#allocation7 + $0xa0] sm:$0xff] %v5062_v56  ;;  %v4989_v39 = vmul.f32 0.6931472, %v6499_v38  ;;  %v5039_v0 = vsub.f32 %v9343_v50, %v8715_v58 }
 0x784   :  { %v4933_v37 = vpop.xlane.xlu0 %4932 }
 0x785   :  { %v5063_v47 = vsub.f32 %v5031_v27, %v4989_v39  ;;  %6506 = vlog2.f32 %v4933_v37  ;;  %v5040_v27 = vsub.f32 %v9345_v59, %v8719_v48 }
 0x786   :  { %v6501_v14 = vpop.eup %6500 }
 0x787   :  { %5095 = vst [vmem:[#allocation7 + $0xa8] sm:$0xff] %v5063_v47  ;;  %v4991_v6 = vmul.f32 0.6931472, %v6501_v14  ;;  %v9346_v47 = vld [vmem:[#allocation87_spill] sm:$0xff]  ;;  %v9347_v14 = vld [vmem:[#allocation53_spill] sm:$0xff] }
 0x788   :  { %v4935_v25 = vpop.xlane.xlu1 %4934  ;;  %v9348_v18 = vmax.f32 %v9347_v14, 0.0 }
 0x789   :  { %v5064_v15 = vsub.f32 %v5032_v57, %v4991_v6  ;;  %6508 = vlog2.f32 %v4935_v25 }
 0x78a   :  { %v6503_v60 = vpop.eup %6502  ;;  %v5041_v31 = vsub.f32 %v9348_v18, %v9346_v47 }
 0x78b   :  { %5096 = vst [vmem:[#allocation7 + $0xb0] sm:$0xff] %v5064_v15  ;;  %v4993_v24 = vmul.f32 0.6931472, %v6503_v60 }
 0x78c   :  { %v4937_v33 = vpop.xlane.xlu0 %4936 }
 0x78d   :  { %v5065_v1 = vsub.f32 %v5033_v12, %v4993_v24  ;;  %6510 = vlog2.f32 %v4937_v33 }
 0x78e   :  { %v6505_v51 = vpop.eup %6504 }
 0x78f   :  { %5097 = vst [vmem:[#allocation7 + $0xb8] sm:$0xff] %v5065_v1  ;;  %v4995_v45 = vmul.f32 0.6931472, %v6505_v51 }
 0x790   :  { %v4939_v49 = vpop.xlane.xlu1 %4938 }
 0x791   :  { %v5066_v4 = vsub.f32 %v5034_v52, %v4995_v45  ;;  %6512 = vlog2.f32 %v4939_v49 }
 0x792   :  { %v6507_v63 = vpop.eup %6506 }
 0x793   :  { %5098 = vst [vmem:[#allocation7 + $0xc0] sm:$0xff] %v5066_v4  ;;  %v4997_v30 = vmul.f32 0.6931472, %v6507_v63 }
 0x794   :  { %v4941_v20 = vpop.xlane.xlu0 %4940 }
 0x795   :  { %v5067_v40 = vsub.f32 %v5035_v54, %v4997_v30  ;;  %6514 = vlog2.f32 %v4941_v20 }
 0x796   :  { %v6509_v17 = vpop.eup %6508 }
 0x797   :  { %5099 = vst [vmem:[#allocation7 + $0xc8] sm:$0xff] %v5067_v40  ;;  %v4999_v7 = vmul.f32 0.6931472, %v6509_v17 }
 0x798   :  { %v4943_v13 = vpop.xlane.xlu1 %4942 }
 0x799   :  { %v5068_v46 = vsub.f32 %v5036_v19, %v4999_v7  ;;  %6516 = vlog2.f32 %v4943_v13 }
 0x79a   :  { %v6511_v53 = vpop.eup %6510 }
 0x79b   :  { %5100 = vst [vmem:[#allocation7 + $0xd0] sm:$0xff] %v5068_v46  ;;  %v5001_v61 = vmul.f32 0.6931472, %v6511_v53 }
 0x79c   :  { %v4945_v8 = vpop.xlane.xlu0 %4944 }
 0x79d   :  { %v5069_v11 = vsub.f32 %v5037_v16, %v5001_v61  ;;  %6518 = vlog2.f32 %v4945_v8 }
 0x79e   :  { %v6513_v5 = vpop.eup %6512 }
 0x79f   :  { %5101 = vst [vmem:[#allocation7 + $0xd8] sm:$0xff] %v5069_v11  ;;  %v5003_v21 = vmul.f32 0.6931472, %v6513_v5 }
 0x7a1   :  { %v5070_v41 = vsub.f32 %v5038_v2, %v5003_v21 }
 0x7a2   :  { %v6515_v29 = vpop.eup %6514 }
 0x7a3   :  { %5102 = vst [vmem:[#allocation7 + $0xe0] sm:$0xff] %v5070_v41  ;;  %v5005_v44 = vmul.f32 0.6931472, %v6515_v29 }
 0x7a5   :  { %v5071_v56 = vsub.f32 %v5039_v0, %v5005_v44 }
 0x7a6   :  { %v6517_v38 = vpop.eup %6516 }
 0x7a7   :  { %5103 = vst [vmem:[#allocation7 + $0xe8] sm:$0xff] %v5071_v56  ;;  %v5007_v39 = vmul.f32 0.6931472, %v6517_v38 }
 0x7a9   :  { %v5072_v37 = vsub.f32 %v5040_v27, %v5007_v39 }
 0x7aa   :  { %v6519_v3 = vpop.eup %6518 }
 0x7ab   :  { %5104 = vst [vmem:[#allocation7 + $0xf0] sm:$0xff] %v5072_v37  ;;  %v5009_v34 = vmul.f32 0.6931472, %v6519_v3 }
 0x7ad   :  { %v5073_v58 = vsub.f32 %v5041_v31, %v5009_v34 }
 0x7af   :  { %5105 = vst [vmem:[#allocation7 + $0xf8] sm:$0xff] %v5073_v58 }
 0x7b0   :  { %6571 = shalt.err (!%p6568_p0)
}
 0x7b1   :  { %5117 = dma.vmem_to_hbm [thread:$0]  %s5112_s24, 4096, %s8836_s7, [#allocation4], %s6590_s11, %s6590_s11, %s6591_s12  }
 0x7b2   :  { %6584 = dma.done.wait [#allocation4], 4096  }
 0x7b3   :  { %6585 = vsyncadd [#allocation4], 4294963200 }
 0x7b4   :  { %5121 = vsyncpa [#allocation3], 1 }
 0x7b5   :  { %5122 = vsyncpa [#allocation6], 1 }
 0x7b6   :  { %5123 = vsyncpa [#allocation4], 1 }

</bundles_post_ra>
